<compile_context>
chip_gen: v5e
topology: v5e:2x2
jax: 0.10.0
libtpu: 0.0.40
codegen_flags: <defaults>
</compile_context>

<pallas_src>
import functools

import jax
import jax.numpy as jnp
import numpy as np
from jax.experimental import pallas as pl
from jax.experimental.pallas import tpu as pltpu

PAD = 2        # 'same' padding for the 5x5 convs
KSIZE = 5      # conv kernel size
NPAD_OUT = 128  # fc2 output padded to a full lane group


# ---------------- fused whole-network kernel ----------------

def _make_fused_kernel(H, W, C1, C2, ksize, pad):
    H2, W2 = H // 2, W // 2        # after pool1
    H4, W4 = H2 // 2, W2 // 2      # after pool2

    def kernel(x_ref, m1_ref, b1_ref, m2_ref, b2_ref,
               g1_ref, fb1_ref, g2_ref, fb2_ref, o_ref):
        f32 = jnp.float32

        # ---------- conv1 (5x5, pad 2) as `ksize` banded matmuls ----------
        x = x_ref[...]                                            # (H, W)
        zc = jnp.zeros((H, pad), f32)
        xp = jnp.concatenate([zc, x, zc], axis=1)                 # (H, W+2P)
        zr = jnp.zeros((pad, W + 2 * pad), f32)
        xp = jnp.concatenate([zr, xp, zr], axis=0)                # (H+2P, W+2P)

        acc1 = jnp.zeros((H, W * C1), f32)
        for kh in range(ksize):
            acc1 = acc1 + jnp.dot(xp[kh:kh + H, :], m1_ref[kh],
                                  preferred_element_type=f32)
        y1 = jnp.maximum(acc1 + b1_ref[...], 0.0)                 # (H, W*C1), lane = w*C1+c

        # ---------- fused 2x2 max-pool #1 (rows, then 16-lane groups) ----------
        rows = [jnp.maximum(y1[2 * i:2 * i + 1, :], y1[2 * i + 1:2 * i + 2, :])
                for i in range(H2)]
        yh = jnp.concatenate(rows, axis=0)                        # (H2, W*C1)
        cols = [jnp.maximum(yh[:, (2 * j) * C1:(2 * j + 1) * C1],
                            yh[:, (2 * j + 1) * C1:(2 * j + 2) * C1])
                for j in range(W2)]
        p1 = jnp.concatenate(cols, axis=1)                        # (H2, W2*C1)

        # ---------- conv2 (5x5, pad 2) ----------
        zc2 = jnp.zeros((H2, pad * C1), f32)
        p1p = jnp.concatenate([zc2, p1, zc2], axis=1)             # (H2, (W2+2P)*C1)
        zr2 = jnp.zeros((pad, (W2 + 2 * pad) * C1), f32)
        p1p = jnp.concatenate([zr2, p1p, zr2], axis=0)            # (H2+2P, (W2+2P)*C1)

        acc2 = jnp.zeros((H2, W2 * C2), f32)
        for kh in range(ksize):
            acc2 = acc2 + jnp.dot(p1p[kh:kh + H2, :], m2_ref[kh],
                                  preferred_element_type=f32)
        y2 = jnp.maximum(acc2 + b2_ref[...], 0.0)                 # (H2, W2*C2), lane = w*C2+c

        # ---------- fused 2x2 max-pool #2 ----------
        rows2 = [jnp.maximum(y2[2 * i:2 * i + 1, :], y2[2 * i + 1:2 * i + 2, :])
                 for i in range(H4)]
        yh2 = jnp.concatenate(rows2, axis=0)                      # (H4, W2*C2)
        cols2 = [jnp.maximum(yh2[:, (2 * j) * C2:(2 * j + 1) * C2],
                             yh2[:, (2 * j + 1) * C2:(2 * j + 2) * C2])
                 for j in range(W4)]
        p2 = jnp.concatenate(cols2, axis=1)                       # (H4, W4*C2)

        # ---------- fc1 -> ReLU -> fc2 (fc1 rows already permuted to this order) ----------
        feat = jnp.concatenate([p2[h:h + 1, :] for h in range(H4)], axis=1)  # (1, H4*W4*C2)
        h1 = jnp.maximum(
            jnp.dot(feat, g1_ref[...], preferred_element_type=f32) + fb1_ref[...], 0.0)
        o_ref[...] = (jnp.dot(h1, g2_ref[...], preferred_element_type=f32)
                      + fb2_ref[...])                             # (1, 128) lane-dense store

    return kernel


# ---------------- weight preprocessing (one-time, outside the kernel) ----------------

def _conv_band_matrices(w_hwio, w_out, pad):
    """M[kh, v*Cin+ci, w*Cout+co] = w[kh, v-w, ci, co] for 0 <= v-w < KW else 0.

    Folds the width dim of a stride-1 'same' conv into banded matmuls so the
    kernel only needs height (row) shifts + plain 2-D dots."""
    kh_, kw_, cin, cout = w_hwio.shape
    v = w_out + 2 * pad
    sel = (jnp.arange(v)[None, :, None]
           == jnp.arange(w_out)[None, None, :] + jnp.arange(kw_)[:, None, None]
           ).astype(w_hwio.dtype)                                  # (KW, V, Wout)
    m = jnp.einsum('kvw,hkio->hviwo', sel, w_hwio)                 # (KH, V, Cin, Wout, Cout)
    return m.reshape(kh_, v * cin, w_out * cout)


def preprocess_params(params, H=28, W=28):
    c1 = params['conv1_b'].shape[0]
    c2 = params['conv2_b'].shape[0]
    h4, w4 = H // 4, W // 4
    nfc1 = params['fc1_w'].shape[1]
    outdim = params['fc2_w'].shape[1]

    m1 = _conv_band_matrices(params['conv1_w'], W, PAD)            # (5, W+4,        W*c1)
    m2 = _conv_band_matrices(params['conv2_w'], W // 2, PAD)       # (5, (W/2+4)*c1, (W/2)*c2)
    b1 = jnp.tile(params['conv1_b'], W).reshape(1, -1)             # (1, W*c1)
    b2 = jnp.tile(params['conv2_b'], W // 2).reshape(1, -1)        # (1, (W/2)*c2)

    # fc1 rows: PyTorch NCHW-flatten order (c*h4*w4 + h*w4 + w) -> kernel
    # feature order (h*w4*c2 + w*c2 + c).  Done once here, not per forward.
    g1 = (params['fc1_w']
          .reshape(c2, h4, w4, nfc1)
          .transpose(1, 2, 0, 3)
          .reshape(h4 * w4 * c2, nfc1))
    fb1 = params['fc1_b'].reshape(1, -1)

    # Pad fc2 to 128 output lanes for an unmasked, lane-dense final store.
    g2 = jnp.zeros((nfc1, NPAD_OUT), jnp.float32).at[:, :outdim].set(params['fc2_w'])
    fb2 = jnp.zeros((1, NPAD_OUT), jnp.float32).at[:, :outdim].set(params['fc2_b'])
    return dict(m1=m1, b1=b1, m2=m2, b2=b2, g1=g1, fb1=fb1, g2=g2, fb2=fb2)


# ---------------- forward pass ----------------

@functools.partial(jax.jit, static_argnames=('outdim',))
def mnist_cnn_forward(x_nchw, prep, outdim=10):
    B = x_nchw.shape[0]
    H, W = x_nchw.shape[2], x_nchw.shape[3]
    x = x_nchw.reshape(B, H, W).astype(jnp.float32)                # C_in == 1
    c1 = prep['b1'].shape[1] // W
    c2 = prep['b2'].shape[1] // (W // 2)

    kernel = _make_fused_kernel(H, W, c1, c2, KSIZE, PAD)
    inv2 = lambda b: (0, 0)
    inv3 = lambda b: (0, 0, 0)

    flops = B * 2 * (KSIZE * H * (W + 2 * PAD) * (W * c1)
                     + KSIZE * (H // 2) * ((W // 2 + 2 * PAD) * c1) * ((W // 2) * c2)
                     + prep['g1'].shape[0] * prep['g1'].shape[1]
                     + prep['g2'].shape[0] * prep['g2'].shape[1])
    wbytes = sum(int(np.prod(prep[k].shape)) * 4 for k in prep)
    bytes_accessed = B * H * W * 4 + wbytes + B * NPAD_OUT * 4

    out = pl.pallas_call(
        kernel,
        out_shape=jax.ShapeDtypeStruct((B, 1, NPAD_OUT), jnp.float32),
        grid=(B,),
        in_specs=[
            pl.BlockSpec((None, H, W), lambda b: (b, 0, 0)),       # one image per grid step
            pl.BlockSpec(prep['m1'].shape, inv3),                  # grid-invariant weights:
            pl.BlockSpec(prep['b1'].shape, inv2),                  # loaded once, stay in VMEM
            pl.BlockSpec(prep['m2'].shape, inv3),
            pl.BlockSpec(prep['b2'].shape, inv2),
            pl.BlockSpec(prep['g1'].shape, inv2),
            pl.BlockSpec(prep['fb1'].shape, inv2),
            pl.BlockSpec(prep['g2'].shape, inv2),
            pl.BlockSpec(prep['fb2'].shape, inv2),
        ],
        out_specs=pl.BlockSpec((None, 1, NPAD_OUT), lambda b: (b, 0, 0)),
        compiler_params=pltpu.CompilerParams(
            dimension_semantics=("parallel",),                     # both TCs on v7x
            vmem_limit_bytes=32 * 1024 * 1024,
        ),
        cost_estimate=pl.CostEstimate(
            flops=int(flops), transcendentals=0, bytes_accessed=int(bytes_accessed)),
    )(x, prep['m1'], prep['b1'], prep['m2'], prep['b2'],
      prep['g1'], prep['fb1'], prep['g2'], prep['fb2'])

    return out.reshape(B, NPAD_OUT)[:, :outdim]


# ---------------- init + pure-JAX reference (verification only) ----------------

def init_params(key, in_channels=1, channels=16, outdim=10):
    ks = jax.random.split(key, 8)

    def u(k, shape, fan_in):
        bound = 1.0 / np.sqrt(fan_in)
        return jax.random.uniform(k, shape, jnp.float32, -bound, bound)

    return {
        'conv1_w': u(ks[0], (5, 5, in_channels, channels), in_channels * 25),
        'conv1_b': u(ks[1], (channels,), in_channels * 25),
        'conv2_w': u(ks[2], (5, 5, channels, 2 * channels), channels * 25),
        'conv2_b': u(ks[3], (2 * channels,), channels * 25),
        'fc1_w': u(ks[4], (2 * channels * 7 * 7, 128), 2 * channels * 7 * 7),
        'fc1_b': u(ks[5], (128,), 2 * channels * 7 * 7),
        'fc2_w': u(ks[6], (128, outdim), 128),
        'fc2_b': u(ks[7], (128,), 128)[:outdim] * 0 + u(ks[7], (outdim,), 128),
    }


def reference_forward(x_nchw, params):
    x = jnp.transpose(x_nchw, (0, 2, 3, 1)).astype(jnp.float32)

    def conv(h, w, b):
        y = jax.lax.conv_general_dilated(
            h, w, window_strides=(1, 1), padding='SAME',
            dimension_numbers=('NHWC', 'HWIO', 'NHWC'))
        return jax.nn.relu(y + b)

    def pool(h):
        return jax.lax.reduce_window(h, -jnp.inf, jax.lax.max,
                                     (1, 2, 2, 1), (1, 2, 2, 1), 'VALID')

    y = pool(conv(x, params['conv1_w'], params['conv1_b']))
    y = pool(conv(y, params['conv2_w'], params['conv2_b']))
    B = x.shape[0]
    feat = jnp.transpose(y, (0, 3, 1, 2)).reshape(B, -1)
    h = jax.nn.relu(feat @ params['fc1_w'] + params['fc1_b'])
    return h @ params['fc2_w'] + params['fc2_b']


if __name__ == "__main__":
    key = jax.random.PRNGKey(0)
    kx, kp = jax.random.split(key)

    # MNIST-shaped input (fc1 hard-codes 28x28 spatial), small batch.
    x = jax.random.normal(kx, (2, 1, 28, 28), jnp.float32)   # NCHW
    params = init_params(kp, in_channels=1, channels=16, outdim=10)
    prep = preprocess_params(params)                          # one-time weight prep

    out = mnist_cnn_forward(x, prep)
    out = jax.block_until_ready(out)
    assert out.shape == (2, 10)

    ref = reference_forward(x, params)
    np.testing.assert_allclose(np.asarray(out), np.asarray(ref), rtol=2e-3, atol=2e-3)

    print("KERNEL_OK")
</pallas_src>

<mosaic_0001>
module attributes {stable_mosaic.version = 11 : i64} {
  func.func @kernel(%arg0: i32, %arg1: memref<1x28x28xf32, #tpu.memory_space<vmem>>, %arg2: memref<5x32x448xf32, #tpu.memory_space<vmem>>, %arg3: memref<1x448xf32, #tpu.memory_space<vmem>>, %arg4: memref<5x288x448xf32, #tpu.memory_space<vmem>>, %arg5: memref<1x448xf32, #tpu.memory_space<vmem>>, %arg6: memref<1568x128xf32, #tpu.memory_space<vmem>>, %arg7: memref<1x128xf32, #tpu.memory_space<vmem>>, %arg8: memref<128x128xf32, #tpu.memory_space<vmem>>, %arg9: memref<1x128xf32, #tpu.memory_space<vmem>>, %arg10: memref<1x1x128xf32, #tpu.memory_space<vmem>>) attributes {dimension_semantics = [#tpu.dimension_semantics<parallel>], iteration_bounds = array<i64: 2>, scalar_prefetch = 0 : i64, scratch_operands = 0 : i64, tpu.core_type = #tpu.core_type<tc>, window_params = [{transform_indices = @transform_0, window_bounds = array<i64: 1, 28, 28>}, {pipeline_mode = #tpu.pipeline_mode<synchronous>, transform_indices = @transform_1, window_bounds = array<i64: 5, 32, 448>}, {pipeline_mode = #tpu.pipeline_mode<synchronous>, transform_indices = @transform_2, window_bounds = array<i64: 1, 448>}, {pipeline_mode = #tpu.pipeline_mode<synchronous>, transform_indices = @transform_3, window_bounds = array<i64: 5, 288, 448>}, {pipeline_mode = #tpu.pipeline_mode<synchronous>, transform_indices = @transform_4, window_bounds = array<i64: 1, 448>}, {pipeline_mode = #tpu.pipeline_mode<synchronous>, transform_indices = @transform_5, window_bounds = array<i64: 1568, 128>}, {pipeline_mode = #tpu.pipeline_mode<synchronous>, transform_indices = @transform_6, window_bounds = array<i64: 1, 128>}, {pipeline_mode = #tpu.pipeline_mode<synchronous>, transform_indices = @transform_7, window_bounds = array<i64: 128, 128>}, {pipeline_mode = #tpu.pipeline_mode<synchronous>, transform_indices = @transform_8, window_bounds = array<i64: 1, 128>}, {transform_indices = @transform_9, window_bounds = array<i64: 1, 1, 128>}]} {
    %c0 = arith.constant 0 : index
    %c0_0 = arith.constant 0 : index
    %c0_1 = arith.constant 0 : index
    %0 = vector.load %arg1[%c0, %c0_0, %c0_1] : memref<1x28x28xf32, #tpu.memory_space<vmem>>, vector<1x28x28xf32>
    %1 = vector.shape_cast %0 : vector<1x28x28xf32> to vector<28x28xf32>
    %cst = arith.constant 0.000000e+00 : f32
    %2 = vector.broadcast %cst : f32 to vector<28x2xf32>
    %3 = tpu.concatenate %2, %1, %2 in 1 : vector<28x2xf32>, vector<28x28xf32>, vector<28x2xf32> -> vector<28x32xf32>
    %cst_2 = arith.constant 0.000000e+00 : f32
    %4 = vector.broadcast %cst_2 : f32 to vector<2x32xf32>
    %5 = tpu.concatenate %4, %3, %4 in 0 : vector<2x32xf32>, vector<28x32xf32>, vector<2x32xf32> -> vector<32x32xf32>
    %cst_3 = arith.constant 0.000000e+00 : f32
    %6 = vector.broadcast %cst_3 : f32 to vector<28x448xf32>
    %7 = vector.extract_strided_slice %5 {offsets = [0, 0], sizes = [28, 32], strides = [1, 1]} : vector<32x32xf32> to vector<28x32xf32>
    %c0_4 = arith.constant 0 : index
    %c0_5 = arith.constant 0 : index
    %c0_6 = arith.constant 0 : index
    %8 = vector.load %arg2[%c0_4, %c0_5, %c0_6] : memref<5x32x448xf32, #tpu.memory_space<vmem>>, vector<1x32x448xf32>
    %9 = vector.shape_cast %8 : vector<1x32x448xf32> to vector<32x448xf32>
    %cst_7 = arith.constant dense<0.000000e+00> : vector<28x448xf32>
    %10 = tpu.matmul %7, %9, %cst_7 {dimension_numbers = #tpu.dot_dimension_numbers<[1], [0], [0], [1], [0, 0, 1, 1], [], []>} : vector<28x32xf32>, vector<32x448xf32>, vector<28x448xf32> -> vector<28x448xf32>
    %11 = arith.addf %6, %10 : vector<28x448xf32>
    %12 = vector.extract_strided_slice %5 {offsets = [1, 0], sizes = [28, 32], strides = [1, 1]} : vector<32x32xf32> to vector<28x32xf32>
    %c1 = arith.constant 1 : index
    %c0_8 = arith.constant 0 : index
    %c0_9 = arith.constant 0 : index
    %13 = vector.load %arg2[%c1, %c0_8, %c0_9] : memref<5x32x448xf32, #tpu.memory_space<vmem>>, vector<1x32x448xf32>
    %14 = vector.shape_cast %13 : vector<1x32x448xf32> to vector<32x448xf32>
    %cst_10 = arith.constant dense<0.000000e+00> : vector<28x448xf32>
    %15 = tpu.matmul %12, %14, %cst_10 {dimension_numbers = #tpu.dot_dimension_numbers<[1], [0], [0], [1], [0, 0, 1, 1], [], []>} : vector<28x32xf32>, vector<32x448xf32>, vector<28x448xf32> -> vector<28x448xf32>
    %16 = arith.addf %11, %15 : vector<28x448xf32>
    %17 = vector.extract_strided_slice %5 {offsets = [2, 0], sizes = [28, 32], strides = [1, 1]} : vector<32x32xf32> to vector<28x32xf32>
    %c2 = arith.constant 2 : index
    %c0_11 = arith.constant 0 : index
    %c0_12 = arith.constant 0 : index
    %18 = vector.load %arg2[%c2, %c0_11, %c0_12] : memref<5x32x448xf32, #tpu.memory_space<vmem>>, vector<1x32x448xf32>
    %19 = vector.shape_cast %18 : vector<1x32x448xf32> to vector<32x448xf32>
    %cst_13 = arith.constant dense<0.000000e+00> : vector<28x448xf32>
    %20 = tpu.matmul %17, %19, %cst_13 {dimension_numbers = #tpu.dot_dimension_numbers<[1], [0], [0], [1], [0, 0, 1, 1], [], []>} : vector<28x32xf32>, vector<32x448xf32>, vector<28x448xf32> -> vector<28x448xf32>
    %21 = arith.addf %16, %20 : vector<28x448xf32>
    %22 = vector.extract_strided_slice %5 {offsets = [3, 0], sizes = [28, 32], strides = [1, 1]} : vector<32x32xf32> to vector<28x32xf32>
    %c3 = arith.constant 3 : index
    %c0_14 = arith.constant 0 : index
    %c0_15 = arith.constant 0 : index
    %23 = vector.load %arg2[%c3, %c0_14, %c0_15] : memref<5x32x448xf32, #tpu.memory_space<vmem>>, vector<1x32x448xf32>
    %24 = vector.shape_cast %23 : vector<1x32x448xf32> to vector<32x448xf32>
    %cst_16 = arith.constant dense<0.000000e+00> : vector<28x448xf32>
    %25 = tpu.matmul %22, %24, %cst_16 {dimension_numbers = #tpu.dot_dimension_numbers<[1], [0], [0], [1], [0, 0, 1, 1], [], []>} : vector<28x32xf32>, vector<32x448xf32>, vector<28x448xf32> -> vector<28x448xf32>
    %26 = arith.addf %21, %25 : vector<28x448xf32>
    %27 = vector.extract_strided_slice %5 {offsets = [4, 0], sizes = [28, 32], strides = [1, 1]} : vector<32x32xf32> to vector<28x32xf32>
    %c4 = arith.constant 4 : index
    %c0_17 = arith.constant 0 : index
    %c0_18 = arith.constant 0 : index
    %28 = vector.load %arg2[%c4, %c0_17, %c0_18] : memref<5x32x448xf32, #tpu.memory_space<vmem>>, vector<1x32x448xf32>
    %29 = vector.shape_cast %28 : vector<1x32x448xf32> to vector<32x448xf32>
    %cst_19 = arith.constant dense<0.000000e+00> : vector<28x448xf32>
    %30 = tpu.matmul %27, %29, %cst_19 {dimension_numbers = #tpu.dot_dimension_numbers<[1], [0], [0], [1], [0, 0, 1, 1], [], []>} : vector<28x32xf32>, vector<32x448xf32>, vector<28x448xf32> -> vector<28x448xf32>
    %31 = arith.addf %26, %30 : vector<28x448xf32>
    %c0_20 = arith.constant 0 : index
    %c0_21 = arith.constant 0 : index
    %32 = vector.load %arg3[%c0_20, %c0_21] : memref<1x448xf32, #tpu.memory_space<vmem>>, vector<1x448xf32>
    %33 = vector.broadcast %32 : vector<1x448xf32> to vector<28x448xf32>
    %34 = arith.addf %31, %33 : vector<28x448xf32>
    %cst_22 = arith.constant 0.000000e+00 : f32
    %35 = vector.broadcast %cst_22 : f32 to vector<28x448xf32>
    %36 = arith.maximumf %34, %35 : vector<28x448xf32>
    %37 = vector.extract_strided_slice %36 {offsets = [0, 0], sizes = [1, 448], strides = [1, 1]} : vector<28x448xf32> to vector<1x448xf32>
    %38 = vector.extract_strided_slice %36 {offsets = [1, 0], sizes = [1, 448], strides = [1, 1]} : vector<28x448xf32> to vector<1x448xf32>
    %39 = arith.maximumf %37, %38 : vector<1x448xf32>
    %40 = vector.extract_strided_slice %36 {offsets = [2, 0], sizes = [1, 448], strides = [1, 1]} : vector<28x448xf32> to vector<1x448xf32>
    %41 = vector.extract_strided_slice %36 {offsets = [3, 0], sizes = [1, 448], strides = [1, 1]} : vector<28x448xf32> to vector<1x448xf32>
    %42 = arith.maximumf %40, %41 : vector<1x448xf32>
    %43 = vector.extract_strided_slice %36 {offsets = [4, 0], sizes = [1, 448], strides = [1, 1]} : vector<28x448xf32> to vector<1x448xf32>
    %44 = vector.extract_strided_slice %36 {offsets = [5, 0], sizes = [1, 448], strides = [1, 1]} : vector<28x448xf32> to vector<1x448xf32>
    %45 = arith.maximumf %43, %44 : vector<1x448xf32>
    %46 = vector.extract_strided_slice %36 {offsets = [6, 0], sizes = [1, 448], strides = [1, 1]} : vector<28x448xf32> to vector<1x448xf32>
    %47 = vector.extract_strided_slice %36 {offsets = [7, 0], sizes = [1, 448], strides = [1, 1]} : vector<28x448xf32> to vector<1x448xf32>
    %48 = arith.maximumf %46, %47 : vector<1x448xf32>
    %49 = vector.extract_strided_slice %36 {offsets = [8, 0], sizes = [1, 448], strides = [1, 1]} : vector<28x448xf32> to vector<1x448xf32>
    %50 = vector.extract_strided_slice %36 {offsets = [9, 0], sizes = [1, 448], strides = [1, 1]} : vector<28x448xf32> to vector<1x448xf32>
    %51 = arith.maximumf %49, %50 : vector<1x448xf32>
    %52 = vector.extract_strided_slice %36 {offsets = [10, 0], sizes = [1, 448], strides = [1, 1]} : vector<28x448xf32> to vector<1x448xf32>
    %53 = vector.extract_strided_slice %36 {offsets = [11, 0], sizes = [1, 448], strides = [1, 1]} : vector<28x448xf32> to vector<1x448xf32>
    %54 = arith.maximumf %52, %53 : vector<1x448xf32>
    %55 = vector.extract_strided_slice %36 {offsets = [12, 0], sizes = [1, 448], strides = [1, 1]} : vector<28x448xf32> to vector<1x448xf32>
    %56 = vector.extract_strided_slice %36 {offsets = [13, 0], sizes = [1, 448], strides = [1, 1]} : vector<28x448xf32> to vector<1x448xf32>
    %57 = arith.maximumf %55, %56 : vector<1x448xf32>
    %58 = vector.extract_strided_slice %36 {offsets = [14, 0], sizes = [1, 448], strides = [1, 1]} : vector<28x448xf32> to vector<1x448xf32>
    %59 = vector.extract_strided_slice %36 {offsets = [15, 0], sizes = [1, 448], strides = [1, 1]} : vector<28x448xf32> to vector<1x448xf32>
    %60 = arith.maximumf %58, %59 : vector<1x448xf32>
    %61 = vector.extract_strided_slice %36 {offsets = [16, 0], sizes = [1, 448], strides = [1, 1]} : vector<28x448xf32> to vector<1x448xf32>
    %62 = vector.extract_strided_slice %36 {offsets = [17, 0], sizes = [1, 448], strides = [1, 1]} : vector<28x448xf32> to vector<1x448xf32>
    %63 = arith.maximumf %61, %62 : vector<1x448xf32>
    %64 = vector.extract_strided_slice %36 {offsets = [18, 0], sizes = [1, 448], strides = [1, 1]} : vector<28x448xf32> to vector<1x448xf32>
    %65 = vector.extract_strided_slice %36 {offsets = [19, 0], sizes = [1, 448], strides = [1, 1]} : vector<28x448xf32> to vector<1x448xf32>
    %66 = arith.maximumf %64, %65 : vector<1x448xf32>
    %67 = vector.extract_strided_slice %36 {offsets = [20, 0], sizes = [1, 448], strides = [1, 1]} : vector<28x448xf32> to vector<1x448xf32>
    %68 = vector.extract_strided_slice %36 {offsets = [21, 0], sizes = [1, 448], strides = [1, 1]} : vector<28x448xf32> to vector<1x448xf32>
    %69 = arith.maximumf %67, %68 : vector<1x448xf32>
    %70 = vector.extract_strided_slice %36 {offsets = [22, 0], sizes = [1, 448], strides = [1, 1]} : vector<28x448xf32> to vector<1x448xf32>
    %71 = vector.extract_strided_slice %36 {offsets = [23, 0], sizes = [1, 448], strides = [1, 1]} : vector<28x448xf32> to vector<1x448xf32>
    %72 = arith.maximumf %70, %71 : vector<1x448xf32>
    %73 = vector.extract_strided_slice %36 {offsets = [24, 0], sizes = [1, 448], strides = [1, 1]} : vector<28x448xf32> to vector<1x448xf32>
    %74 = vector.extract_strided_slice %36 {offsets = [25, 0], sizes = [1, 448], strides = [1, 1]} : vector<28x448xf32> to vector<1x448xf32>
    %75 = arith.maximumf %73, %74 : vector<1x448xf32>
    %76 = vector.extract_strided_slice %36 {offsets = [26, 0], sizes = [1, 448], strides = [1, 1]} : vector<28x448xf32> to vector<1x448xf32>
    %77 = vector.extract_strided_slice %36 {offsets = [27, 0], sizes = [1, 448], strides = [1, 1]} : vector<28x448xf32> to vector<1x448xf32>
    %78 = arith.maximumf %76, %77 : vector<1x448xf32>
    %79 = tpu.concatenate %39, %42, %45, %48, %51, %54, %57, %60, %63, %66, %69, %72, %75, %78 in 0 : vector<1x448xf32>, vector<1x448xf32>, vector<1x448xf32>, vector<1x448xf32>, vector<1x448xf32>, vector<1x448xf32>, vector<1x448xf32>, vector<1x448xf32>, vector<1x448xf32>, vector<1x448xf32>, vector<1x448xf32>, vector<1x448xf32>, vector<1x448xf32>, vector<1x448xf32> -> vector<14x448xf32>
    %80 = vector.extract_strided_slice %79 {offsets = [0, 0], sizes = [14, 16], strides = [1, 1]} : vector<14x448xf32> to vector<14x16xf32>
    %81 = vector.extract_strided_slice %79 {offsets = [0, 16], sizes = [14, 16], strides = [1, 1]} : vector<14x448xf32> to vector<14x16xf32>
    %82 = arith.maximumf %80, %81 : vector<14x16xf32>
    %83 = vector.extract_strided_slice %79 {offsets = [0, 32], sizes = [14, 16], strides = [1, 1]} : vector<14x448xf32> to vector<14x16xf32>
    %84 = vector.extract_strided_slice %79 {offsets = [0, 48], sizes = [14, 16], strides = [1, 1]} : vector<14x448xf32> to vector<14x16xf32>
    %85 = arith.maximumf %83, %84 : vector<14x16xf32>
    %86 = vector.extract_strided_slice %79 {offsets = [0, 64], sizes = [14, 16], strides = [1, 1]} : vector<14x448xf32> to vector<14x16xf32>
    %87 = vector.extract_strided_slice %79 {offsets = [0, 80], sizes = [14, 16], strides = [1, 1]} : vector<14x448xf32> to vector<14x16xf32>
    %88 = arith.maximumf %86, %87 : vector<14x16xf32>
    %89 = vector.extract_strided_slice %79 {offsets = [0, 96], sizes = [14, 16], strides = [1, 1]} : vector<14x448xf32> to vector<14x16xf32>
    %90 = vector.extract_strided_slice %79 {offsets = [0, 112], sizes = [14, 16], strides = [1, 1]} : vector<14x448xf32> to vector<14x16xf32>
    %91 = arith.maximumf %89, %90 : vector<14x16xf32>
    %92 = vector.extract_strided_slice %79 {offsets = [0, 128], sizes = [14, 16], strides = [1, 1]} : vector<14x448xf32> to vector<14x16xf32>
    %93 = vector.extract_strided_slice %79 {offsets = [0, 144], sizes = [14, 16], strides = [1, 1]} : vector<14x448xf32> to vector<14x16xf32>
    %94 = arith.maximumf %92, %93 : vector<14x16xf32>
    %95 = vector.extract_strided_slice %79 {offsets = [0, 160], sizes = [14, 16], strides = [1, 1]} : vector<14x448xf32> to vector<14x16xf32>
    %96 = vector.extract_strided_slice %79 {offsets = [0, 176], sizes = [14, 16], strides = [1, 1]} : vector<14x448xf32> to vector<14x16xf32>
    %97 = arith.maximumf %95, %96 : vector<14x16xf32>
    %98 = vector.extract_strided_slice %79 {offsets = [0, 192], sizes = [14, 16], strides = [1, 1]} : vector<14x448xf32> to vector<14x16xf32>
    %99 = vector.extract_strided_slice %79 {offsets = [0, 208], sizes = [14, 16], strides = [1, 1]} : vector<14x448xf32> to vector<14x16xf32>
    %100 = arith.maximumf %98, %99 : vector<14x16xf32>
    %101 = vector.extract_strided_slice %79 {offsets = [0, 224], sizes = [14, 16], strides = [1, 1]} : vector<14x448xf32> to vector<14x16xf32>
    %102 = vector.extract_strided_slice %79 {offsets = [0, 240], sizes = [14, 16], strides = [1, 1]} : vector<14x448xf32> to vector<14x16xf32>
    %103 = arith.maximumf %101, %102 : vector<14x16xf32>
    %104 = vector.extract_strided_slice %79 {offsets = [0, 256], sizes = [14, 16], strides = [1, 1]} : vector<14x448xf32> to vector<14x16xf32>
    %105 = vector.extract_strided_slice %79 {offsets = [0, 272], sizes = [14, 16], strides = [1, 1]} : vector<14x448xf32> to vector<14x16xf32>
    %106 = arith.maximumf %104, %105 : vector<14x16xf32>
    %107 = vector.extract_strided_slice %79 {offsets = [0, 288], sizes = [14, 16], strides = [1, 1]} : vector<14x448xf32> to vector<14x16xf32>
    %108 = vector.extract_strided_slice %79 {offsets = [0, 304], sizes = [14, 16], strides = [1, 1]} : vector<14x448xf32> to vector<14x16xf32>
    %109 = arith.maximumf %107, %108 : vector<14x16xf32>
    %110 = vector.extract_strided_slice %79 {offsets = [0, 320], sizes = [14, 16], strides = [1, 1]} : vector<14x448xf32> to vector<14x16xf32>
    %111 = vector.extract_strided_slice %79 {offsets = [0, 336], sizes = [14, 16], strides = [1, 1]} : vector<14x448xf32> to vector<14x16xf32>
    %112 = arith.maximumf %110, %111 : vector<14x16xf32>
    %113 = vector.extract_strided_slice %79 {offsets = [0, 352], sizes = [14, 16], strides = [1, 1]} : vector<14x448xf32> to vector<14x16xf32>
    %114 = vector.extract_strided_slice %79 {offsets = [0, 368], sizes = [14, 16], strides = [1, 1]} : vector<14x448xf32> to vector<14x16xf32>
    %115 = arith.maximumf %113, %114 : vector<14x16xf32>
    %116 = vector.extract_strided_slice %79 {offsets = [0, 384], sizes = [14, 16], strides = [1, 1]} : vector<14x448xf32> to vector<14x16xf32>
    %117 = vector.extract_strided_slice %79 {offsets = [0, 400], sizes = [14, 16], strides = [1, 1]} : vector<14x448xf32> to vector<14x16xf32>
    %118 = arith.maximumf %116, %117 : vector<14x16xf32>
    %119 = vector.extract_strided_slice %79 {offsets = [0, 416], sizes = [14, 16], strides = [1, 1]} : vector<14x448xf32> to vector<14x16xf32>
    %120 = vector.extract_strided_slice %79 {offsets = [0, 432], sizes = [14, 16], strides = [1, 1]} : vector<14x448xf32> to vector<14x16xf32>
    %121 = arith.maximumf %119, %120 : vector<14x16xf32>
    %122 = tpu.concatenate %82, %85, %88, %91, %94, %97, %100, %103, %106, %109, %112, %115, %118, %121 in 1 : vector<14x16xf32>, vector<14x16xf32>, vector<14x16xf32>, vector<14x16xf32>, vector<14x16xf32>, vector<14x16xf32>, vector<14x16xf32>, vector<14x16xf32>, vector<14x16xf32>, vector<14x16xf32>, vector<14x16xf32>, vector<14x16xf32>, vector<14x16xf32>, vector<14x16xf32> -> vector<14x224xf32>
    %cst_23 = arith.constant 0.000000e+00 : f32
    %123 = vector.broadcast %cst_23 : f32 to vector<14x32xf32>
    %124 = tpu.concatenate %123, %122, %123 in 1 : vector<14x32xf32>, vector<14x224xf32>, vector<14x32xf32> -> vector<14x288xf32>
    %cst_24 = arith.constant 0.000000e+00 : f32
    %125 = vector.broadcast %cst_24 : f32 to vector<2x288xf32>
    %126 = tpu.concatenate %125, %124, %125 in 0 : vector<2x288xf32>, vector<14x288xf32>, vector<2x288xf32> -> vector<18x288xf32>
    %cst_25 = arith.constant 0.000000e+00 : f32
    %127 = vector.broadcast %cst_25 : f32 to vector<14x448xf32>
    %128 = vector.extract_strided_slice %126 {offsets = [0, 0], sizes = [14, 288], strides = [1, 1]} : vector<18x288xf32> to vector<14x288xf32>
    %c0_26 = arith.constant 0 : index
    %c0_27 = arith.constant 0 : index
    %c0_28 = arith.constant 0 : index
    %129 = vector.load %arg4[%c0_26, %c0_27, %c0_28] : memref<5x288x448xf32, #tpu.memory_space<vmem>>, vector<1x288x448xf32>
    %130 = vector.shape_cast %129 : vector<1x288x448xf32> to vector<288x448xf32>
    %cst_29 = arith.constant dense<0.000000e+00> : vector<14x448xf32>
    %131 = tpu.matmul %128, %130, %cst_29 {dimension_numbers = #tpu.dot_dimension_numbers<[1], [0], [0], [1], [0, 0, 1, 1], [], []>} : vector<14x288xf32>, vector<288x448xf32>, vector<14x448xf32> -> vector<14x448xf32>
    %132 = arith.addf %127, %131 : vector<14x448xf32>
    %133 = vector.extract_strided_slice %126 {offsets = [1, 0], sizes = [14, 288], strides = [1, 1]} : vector<18x288xf32> to vector<14x288xf32>
    %c1_30 = arith.constant 1 : index
    %c0_31 = arith.constant 0 : index
    %c0_32 = arith.constant 0 : index
    %134 = vector.load %arg4[%c1_30, %c0_31, %c0_32] : memref<5x288x448xf32, #tpu.memory_space<vmem>>, vector<1x288x448xf32>
    %135 = vector.shape_cast %134 : vector<1x288x448xf32> to vector<288x448xf32>
    %cst_33 = arith.constant dense<0.000000e+00> : vector<14x448xf32>
    %136 = tpu.matmul %133, %135, %cst_33 {dimension_numbers = #tpu.dot_dimension_numbers<[1], [0], [0], [1], [0, 0, 1, 1], [], []>} : vector<14x288xf32>, vector<288x448xf32>, vector<14x448xf32> -> vector<14x448xf32>
    %137 = arith.addf %132, %136 : vector<14x448xf32>
    %138 = vector.extract_strided_slice %126 {offsets = [2, 0], sizes = [14, 288], strides = [1, 1]} : vector<18x288xf32> to vector<14x288xf32>
    %c2_34 = arith.constant 2 : index
    %c0_35 = arith.constant 0 : index
    %c0_36 = arith.constant 0 : index
    %139 = vector.load %arg4[%c2_34, %c0_35, %c0_36] : memref<5x288x448xf32, #tpu.memory_space<vmem>>, vector<1x288x448xf32>
    %140 = vector.shape_cast %139 : vector<1x288x448xf32> to vector<288x448xf32>
    %cst_37 = arith.constant dense<0.000000e+00> : vector<14x448xf32>
    %141 = tpu.matmul %138, %140, %cst_37 {dimension_numbers = #tpu.dot_dimension_numbers<[1], [0], [0], [1], [0, 0, 1, 1], [], []>} : vector<14x288xf32>, vector<288x448xf32>, vector<14x448xf32> -> vector<14x448xf32>
    %142 = arith.addf %137, %141 : vector<14x448xf32>
    %143 = vector.extract_strided_slice %126 {offsets = [3, 0], sizes = [14, 288], strides = [1, 1]} : vector<18x288xf32> to vector<14x288xf32>
    %c3_38 = arith.constant 3 : index
    %c0_39 = arith.constant 0 : index
    %c0_40 = arith.constant 0 : index
    %144 = vector.load %arg4[%c3_38, %c0_39, %c0_40] : memref<5x288x448xf32, #tpu.memory_space<vmem>>, vector<1x288x448xf32>
    %145 = vector.shape_cast %144 : vector<1x288x448xf32> to vector<288x448xf32>
    %cst_41 = arith.constant dense<0.000000e+00> : vector<14x448xf32>
    %146 = tpu.matmul %143, %145, %cst_41 {dimension_numbers = #tpu.dot_dimension_numbers<[1], [0], [0], [1], [0, 0, 1, 1], [], []>} : vector<14x288xf32>, vector<288x448xf32>, vector<14x448xf32> -> vector<14x448xf32>
    %147 = arith.addf %142, %146 : vector<14x448xf32>
    %148 = vector.extract_strided_slice %126 {offsets = [4, 0], sizes = [14, 288], strides = [1, 1]} : vector<18x288xf32> to vector<14x288xf32>
    %c4_42 = arith.constant 4 : index
    %c0_43 = arith.constant 0 : index
    %c0_44 = arith.constant 0 : index
    %149 = vector.load %arg4[%c4_42, %c0_43, %c0_44] : memref<5x288x448xf32, #tpu.memory_space<vmem>>, vector<1x288x448xf32>
    %150 = vector.shape_cast %149 : vector<1x288x448xf32> to vector<288x448xf32>
    %cst_45 = arith.constant dense<0.000000e+00> : vector<14x448xf32>
    %151 = tpu.matmul %148, %150, %cst_45 {dimension_numbers = #tpu.dot_dimension_numbers<[1], [0], [0], [1], [0, 0, 1, 1], [], []>} : vector<14x288xf32>, vector<288x448xf32>, vector<14x448xf32> -> vector<14x448xf32>
    %152 = arith.addf %147, %151 : vector<14x448xf32>
    %c0_46 = arith.constant 0 : index
    %c0_47 = arith.constant 0 : index
    %153 = vector.load %arg5[%c0_46, %c0_47] : memref<1x448xf32, #tpu.memory_space<vmem>>, vector<1x448xf32>
    %154 = vector.broadcast %153 : vector<1x448xf32> to vector<14x448xf32>
    %155 = arith.addf %152, %154 : vector<14x448xf32>
    %cst_48 = arith.constant 0.000000e+00 : f32
    %156 = vector.broadcast %cst_48 : f32 to vector<14x448xf32>
    %157 = arith.maximumf %155, %156 : vector<14x448xf32>
    %158 = vector.extract_strided_slice %157 {offsets = [0, 0], sizes = [1, 448], strides = [1, 1]} : vector<14x448xf32> to vector<1x448xf32>
    %159 = vector.extract_strided_slice %157 {offsets = [1, 0], sizes = [1, 448], strides = [1, 1]} : vector<14x448xf32> to vector<1x448xf32>
    %160 = arith.maximumf %158, %159 : vector<1x448xf32>
    %161 = vector.extract_strided_slice %157 {offsets = [2, 0], sizes = [1, 448], strides = [1, 1]} : vector<14x448xf32> to vector<1x448xf32>
    %162 = vector.extract_strided_slice %157 {offsets = [3, 0], sizes = [1, 448], strides = [1, 1]} : vector<14x448xf32> to vector<1x448xf32>
    %163 = arith.maximumf %161, %162 : vector<1x448xf32>
    %164 = vector.extract_strided_slice %157 {offsets = [4, 0], sizes = [1, 448], strides = [1, 1]} : vector<14x448xf32> to vector<1x448xf32>
    %165 = vector.extract_strided_slice %157 {offsets = [5, 0], sizes = [1, 448], strides = [1, 1]} : vector<14x448xf32> to vector<1x448xf32>
    %166 = arith.maximumf %164, %165 : vector<1x448xf32>
    %167 = vector.extract_strided_slice %157 {offsets = [6, 0], sizes = [1, 448], strides = [1, 1]} : vector<14x448xf32> to vector<1x448xf32>
    %168 = vector.extract_strided_slice %157 {offsets = [7, 0], sizes = [1, 448], strides = [1, 1]} : vector<14x448xf32> to vector<1x448xf32>
    %169 = arith.maximumf %167, %168 : vector<1x448xf32>
    %170 = vector.extract_strided_slice %157 {offsets = [8, 0], sizes = [1, 448], strides = [1, 1]} : vector<14x448xf32> to vector<1x448xf32>
    %171 = vector.extract_strided_slice %157 {offsets = [9, 0], sizes = [1, 448], strides = [1, 1]} : vector<14x448xf32> to vector<1x448xf32>
    %172 = arith.maximumf %170, %171 : vector<1x448xf32>
    %173 = vector.extract_strided_slice %157 {offsets = [10, 0], sizes = [1, 448], strides = [1, 1]} : vector<14x448xf32> to vector<1x448xf32>
    %174 = vector.extract_strided_slice %157 {offsets = [11, 0], sizes = [1, 448], strides = [1, 1]} : vector<14x448xf32> to vector<1x448xf32>
    %175 = arith.maximumf %173, %174 : vector<1x448xf32>
    %176 = vector.extract_strided_slice %157 {offsets = [12, 0], sizes = [1, 448], strides = [1, 1]} : vector<14x448xf32> to vector<1x448xf32>
    %177 = vector.extract_strided_slice %157 {offsets = [13, 0], sizes = [1, 448], strides = [1, 1]} : vector<14x448xf32> to vector<1x448xf32>
    %178 = arith.maximumf %176, %177 : vector<1x448xf32>
    %179 = tpu.concatenate %160, %163, %166, %169, %172, %175, %178 in 0 : vector<1x448xf32>, vector<1x448xf32>, vector<1x448xf32>, vector<1x448xf32>, vector<1x448xf32>, vector<1x448xf32>, vector<1x448xf32> -> vector<7x448xf32>
    %180 = vector.extract_strided_slice %179 {offsets = [0, 0], sizes = [7, 32], strides = [1, 1]} : vector<7x448xf32> to vector<7x32xf32>
    %181 = vector.extract_strided_slice %179 {offsets = [0, 32], sizes = [7, 32], strides = [1, 1]} : vector<7x448xf32> to vector<7x32xf32>
    %182 = arith.maximumf %180, %181 : vector<7x32xf32>
    %183 = vector.extract_strided_slice %179 {offsets = [0, 64], sizes = [7, 32], strides = [1, 1]} : vector<7x448xf32> to vector<7x32xf32>
    %184 = vector.extract_strided_slice %179 {offsets = [0, 96], sizes = [7, 32], strides = [1, 1]} : vector<7x448xf32> to vector<7x32xf32>
    %185 = arith.maximumf %183, %184 : vector<7x32xf32>
    %186 = vector.extract_strided_slice %179 {offsets = [0, 128], sizes = [7, 32], strides = [1, 1]} : vector<7x448xf32> to vector<7x32xf32>
    %187 = vector.extract_strided_slice %179 {offsets = [0, 160], sizes = [7, 32], strides = [1, 1]} : vector<7x448xf32> to vector<7x32xf32>
    %188 = arith.maximumf %186, %187 : vector<7x32xf32>
    %189 = vector.extract_strided_slice %179 {offsets = [0, 192], sizes = [7, 32], strides = [1, 1]} : vector<7x448xf32> to vector<7x32xf32>
    %190 = vector.extract_strided_slice %179 {offsets = [0, 224], sizes = [7, 32], strides = [1, 1]} : vector<7x448xf32> to vector<7x32xf32>
    %191 = arith.maximumf %189, %190 : vector<7x32xf32>
    %192 = vector.extract_strided_slice %179 {offsets = [0, 256], sizes = [7, 32], strides = [1, 1]} : vector<7x448xf32> to vector<7x32xf32>
    %193 = vector.extract_strided_slice %179 {offsets = [0, 288], sizes = [7, 32], strides = [1, 1]} : vector<7x448xf32> to vector<7x32xf32>
    %194 = arith.maximumf %192, %193 : vector<7x32xf32>
    %195 = vector.extract_strided_slice %179 {offsets = [0, 320], sizes = [7, 32], strides = [1, 1]} : vector<7x448xf32> to vector<7x32xf32>
    %196 = vector.extract_strided_slice %179 {offsets = [0, 352], sizes = [7, 32], strides = [1, 1]} : vector<7x448xf32> to vector<7x32xf32>
    %197 = arith.maximumf %195, %196 : vector<7x32xf32>
    %198 = vector.extract_strided_slice %179 {offsets = [0, 384], sizes = [7, 32], strides = [1, 1]} : vector<7x448xf32> to vector<7x32xf32>
    %199 = vector.extract_strided_slice %179 {offsets = [0, 416], sizes = [7, 32], strides = [1, 1]} : vector<7x448xf32> to vector<7x32xf32>
    %200 = arith.maximumf %198, %199 : vector<7x32xf32>
    %201 = tpu.concatenate %182, %185, %188, %191, %194, %197, %200 in 1 : vector<7x32xf32>, vector<7x32xf32>, vector<7x32xf32>, vector<7x32xf32>, vector<7x32xf32>, vector<7x32xf32>, vector<7x32xf32> -> vector<7x224xf32>
    %202 = vector.extract_strided_slice %201 {offsets = [0, 0], sizes = [1, 224], strides = [1, 1]} : vector<7x224xf32> to vector<1x224xf32>
    %203 = vector.extract_strided_slice %201 {offsets = [1, 0], sizes = [1, 224], strides = [1, 1]} : vector<7x224xf32> to vector<1x224xf32>
    %204 = vector.extract_strided_slice %201 {offsets = [2, 0], sizes = [1, 224], strides = [1, 1]} : vector<7x224xf32> to vector<1x224xf32>
    %205 = vector.extract_strided_slice %201 {offsets = [3, 0], sizes = [1, 224], strides = [1, 1]} : vector<7x224xf32> to vector<1x224xf32>
    %206 = vector.extract_strided_slice %201 {offsets = [4, 0], sizes = [1, 224], strides = [1, 1]} : vector<7x224xf32> to vector<1x224xf32>
    %207 = vector.extract_strided_slice %201 {offsets = [5, 0], sizes = [1, 224], strides = [1, 1]} : vector<7x224xf32> to vector<1x224xf32>
    %208 = vector.extract_strided_slice %201 {offsets = [6, 0], sizes = [1, 224], strides = [1, 1]} : vector<7x224xf32> to vector<1x224xf32>
    %209 = tpu.concatenate %202, %203, %204, %205, %206, %207, %208 in 1 : vector<1x224xf32>, vector<1x224xf32>, vector<1x224xf32>, vector<1x224xf32>, vector<1x224xf32>, vector<1x224xf32>, vector<1x224xf32> -> vector<1x1568xf32>
    %c0_49 = arith.constant 0 : index
    %c0_50 = arith.constant 0 : index
    %210 = vector.load %arg6[%c0_49, %c0_50] : memref<1568x128xf32, #tpu.memory_space<vmem>>, vector<1568x128xf32>
    %cst_51 = arith.constant dense<0.000000e+00> : vector<1x128xf32>
    %211 = tpu.matmul %209, %210, %cst_51 {dimension_numbers = #tpu.dot_dimension_numbers<[1], [0], [0], [1], [0, 0, 1, 1], [], []>} : vector<1x1568xf32>, vector<1568x128xf32>, vector<1x128xf32> -> vector<1x128xf32>
    %c0_52 = arith.constant 0 : index
    %c0_53 = arith.constant 0 : index
    %212 = vector.load %arg7[%c0_52, %c0_53] : memref<1x128xf32, #tpu.memory_space<vmem>>, vector<1x128xf32>
    %213 = arith.addf %211, %212 : vector<1x128xf32>
    %cst_54 = arith.constant 0.000000e+00 : f32
    %214 = vector.broadcast %cst_54 : f32 to vector<1x128xf32>
    %215 = arith.maximumf %213, %214 : vector<1x128xf32>
    %c0_55 = arith.constant 0 : index
    %c0_56 = arith.constant 0 : index
    %216 = vector.load %arg8[%c0_55, %c0_56] : memref<128x128xf32, #tpu.memory_space<vmem>>, vector<128x128xf32>
    %cst_57 = arith.constant dense<0.000000e+00> : vector<1x128xf32>
    %217 = tpu.matmul %215, %216, %cst_57 {dimension_numbers = #tpu.dot_dimension_numbers<[1], [0], [0], [1], [0, 0, 1, 1], [], []>} : vector<1x128xf32>, vector<128x128xf32>, vector<1x128xf32> -> vector<1x128xf32>
    %c0_58 = arith.constant 0 : index
    %c0_59 = arith.constant 0 : index
    %218 = vector.load %arg9[%c0_58, %c0_59] : memref<1x128xf32, #tpu.memory_space<vmem>>, vector<1x128xf32>
    %219 = arith.addf %217, %218 : vector<1x128xf32>
    %c0_60 = arith.constant 0 : index
    %c0_61 = arith.constant 0 : index
    %c0_62 = arith.constant 0 : index
    %220 = vector.load %arg10[%c0_60, %c0_61, %c0_62] : memref<1x1x128xf32, #tpu.memory_space<vmem>>, vector<1x1x128xf32>
    %221 = vector.shape_cast %220 : vector<1x1x128xf32> to vector<1x128xf32>
    %222 = vector.shape_cast %219 : vector<1x128xf32> to vector<1x1x128xf32>
    tpu.vector_store %arg10[%c0_60, %c0_61, %c0_62], %222 {strides = array<i32>} : memref<1x1x128xf32, #tpu.memory_space<vmem>>, vector<1x1x128xf32>,
    return
  }
  func.func @transform_0(%arg0: i32) -> (i32, i32, i32) {
    %c0_i32 = arith.constant 0 : i32
    %c0_i32_0 = arith.constant 0 : i32
    %c0_i32_1 = arith.constant 0 : i32
    return %arg0, %c0_i32, %c0_i32_0 : i32, i32, i32
  }
  func.func @transform_1(%arg0: i32) -> (i32, i32, i32) {
    %c0_i32 = arith.constant 0 : i32
    %c0_i32_0 = arith.constant 0 : i32
    %c0_i32_1 = arith.constant 0 : i32
    %c0_i32_2 = arith.constant 0 : i32
    return %c0_i32, %c0_i32_0, %c0_i32_1 : i32, i32, i32
  }
  func.func @transform_2(%arg0: i32) -> (i32, i32) {
    %c0_i32 = arith.constant 0 : i32
    %c0_i32_0 = arith.constant 0 : i32
    %c0_i32_1 = arith.constant 0 : i32
    return %c0_i32, %c0_i32_0 : i32, i32
  }
  func.func @transform_3(%arg0: i32) -> (i32, i32, i32) {
    %c0_i32 = arith.constant 0 : i32
    %c0_i32_0 = arith.constant 0 : i32
    %c0_i32_1 = arith.constant 0 : i32
    %c0_i32_2 = arith.constant 0 : i32
    return %c0_i32, %c0_i32_0, %c0_i32_1 : i32, i32, i32
  }
  func.func @transform_4(%arg0: i32) -> (i32, i32) {
    %c0_i32 = arith.constant 0 : i32
    %c0_i32_0 = arith.constant 0 : i32
    %c0_i32_1 = arith.constant 0 : i32
    return %c0_i32, %c0_i32_0 : i32, i32
  }
  func.func @transform_5(%arg0: i32) -> (i32, i32) {
    %c0_i32 = arith.constant 0 : i32
    %c0_i32_0 = arith.constant 0 : i32
    %c0_i32_1 = arith.constant 0 : i32
    return %c0_i32, %c0_i32_0 : i32, i32
  }
  func.func @transform_6(%arg0: i32) -> (i32, i32) {
    %c0_i32 = arith.constant 0 : i32
    %c0_i32_0 = arith.constant 0 : i32
    %c0_i32_1 = arith.constant 0 : i32
    return %c0_i32, %c0_i32_0 : i32, i32
  }
  func.func @transform_7(%arg0: i32) -> (i32, i32) {
    %c0_i32 = arith.constant 0 : i32
    %c0_i32_0 = arith.constant 0 : i32
    %c0_i32_1 = arith.constant 0 : i32
    return %c0_i32, %c0_i32_0 : i32, i32
  }
  func.func @transform_8(%arg0: i32) -> (i32, i32) {
    %c0_i32 = arith.constant 0 : i32
    %c0_i32_0 = arith.constant 0 : i32
    %c0_i32_1 = arith.constant 0 : i32
    return %c0_i32, %c0_i32_0 : i32, i32
  }
  func.func @transform_9(%arg0: i32) -> (i32, i32, i32) {
    %c0_i32 = arith.constant 0 : i32
    %c0_i32_0 = arith.constant 0 : i32
    %c0_i32_1 = arith.constant 0 : i32
    return %arg0, %c0_i32, %c0_i32_0 : i32, i32, i32
  }
}

</mosaic_0001>

<bundles_post_ra>
// kernel: mnist_cnn_forward.1
= control target key start
LH: loop header
LB: loop body
LE: loop exit
PB: predicated region body
PF: predicated region fallthrough
CT: control target
= control target key end

     0   :  { %s6909_s0 = inlined_call_operand.vmem [shape: f32[2,28,28], index: 0, kind: input, shape index: {}]   ;;  %s6910_s1 = inlined_call_operand.hbm [shape: f32[5,32,448], index: 1, kind: input, shape index: {}]   ;;  %s6911_s2 = inlined_call_operand.hbm [shape: f32[1,448], index: 2, kind: input, shape index: {}]   ;;  %s6912_s3 = inlined_call_operand.hbm [shape: f32[5,288,448], index: 3, kind: input, shape index: {}]   ;;  %s6913_s4 = inlined_call_operand.hbm [shape: f32[1,448], index: 4, kind: input, shape index: {}]   ;;  %s6914_s5 = inlined_call_operand.hbm [shape: f32[1568,128], index: 5, kind: input, shape index: {}]   ;;  %s6915_s6 = inlined_call_operand.hbm [shape: f32[1,128], index: 6, kind: input, shape index: {}]   ;;  %s6916_s7 = inlined_call_operand.hbm [shape: f32[128,128], index: 7, kind: input, shape index: {}]   ;;  %s6917_s8 = inlined_call_operand.hbm [shape: f32[1,128], index: 8, kind: input, shape index: {}]   ;;  %s6918_s9 = inlined_call_operand.hbm [shape: f32[2,1,128], index: 9, kind: output, shape index: {}]  }
   0x1   :  { %6920 = sst [smem:[#allocation34_spill]] %s6910_s1 }
   0x2   :  { %6921 = sst [smem:[#allocation35_spill]] %s6911_s2 }
   0x3   :  { %6922 = sst [smem:[#allocation36_spill]] %s6912_s3 }
   0x4   :  { %6923 = sst [smem:[#allocation37_spill]] %s6913_s4 }
   0x5   :  { %6924 = sst [smem:[#allocation38_spill]] %s6914_s5 }
   0x6   :  { %14 = vsyncpa [#allocation3], 0 }
   0x7   :  { %15 = vsyncpa [#allocation6], 0 }
   0x8   :  { %16 = vsyncpa [#allocation9], 0 }
   0x9   :  { %17 = vsyncpa [#allocation12], 0 }
   0xa   :  { %18 = vsyncpa [#allocation15], 0 }
   0xb   :  { %19 = vsyncpa [#allocation4], 0 }
   0xc   :  { %21 = vsyncpa [#allocation4 + $0x1], 0  ;;  %s5594_s30 = smov 0   ;;  %s5596_s10 = smov 0  }
   0xd   :  { %s5598_s11 = smov 0   ;;  %s5600_s12 = smov 0  }
   0xe LB: > { %s5615_s13 = sadd.s32 4294967295, %s5521_s12   ;;  %s4840_s14 = sadd.s32 4294967294, %s5521_s12   ;;  %s5521_s12 = sphi %s5600_s12, %s6972_s12   ;;  %s5517_s11 = sphi %s5598_s11, %s6971_s11   ;;  %s5513_s10 = sphi %s5596_s10, %s6970_s10   ;;  %s5509_s30 = sphi %s5594_s30, %s6969_s30  }
   0xf   : > { %s5619_s15 = sadd.s32 1, %s5521_s12   ;;  %s228_s16 = sadd.s32 1, %s5517_s11 }
  0x10   : > { %s225_s17 = ssub.s32 %s5521_s12, %s5619_s15  ;;  %p238_p0 = scmp.ne.s32.totalorder %s5517_s11, %s5513_s10 }
  0x11   : > { %p226_p1 = scmp.eq.s32.totalorder %s225_s17, 0  ;;  %p239_p2 = scmp.eq.s32.totalorder %s5615_s13, 1 }
  0x12   : > { %p244_p3 = scmp.ne.s32.totalorder %s5513_s10, %s5509_s30  ;;  %p245_p4 = scmp.eq.s32.totalorder %s4840_s14, 1 }
  0x13   : > { %s5630_s18 = scalar_select %p226_p1, %s5517_s11, %s228_s16  }
  0x14   : > { %p5632_p5 = por %p239_p2, %p238_p0  ;;  %p5636_p6 = por %p245_p4, %p244_p3 }
  0x15   : > { %6925 = sst [smem:[#allocation23_spill]] %s5630_s18  ;;  %p4841_p7 = scmp.ge.s32.totalorder %s5521_s12, 1 }
  0x16   : > { %p252_p8 = scmp.lt.s32.totalorder %s5521_s12, 3  ;;  %p5069_p9 = scmp.eq.s32.totalorder %s5615_s13, 0 }
  0x17   : > { %s6929_s2 = sld [smem:[#allocation35_spill]]  ;;  %s5523_s25 = smov [#allocation5]  }
  0x18   : > { %p5643_p10 = pnand %p4841_p7, %p252_p8  ;;  %s280_s26 = sshll.u32 %s5523_s25, 4  ;;  %s281_s26 = int_to_ptr.vmem [resolvable:$true] %s280_s26 }
  0x19   : > { %s6930_s4 = sld [smem:[#allocation37_spill]]  ;;  %s330_s22 = sshll.u32 %s6915_s6, 4  ;;  %s331_s22 = int_to_ptr.hbm [resolvable:$true] %s330_s22 }
  0x1a   : > { %p5040_p11 = pneg %p5643_p10  ;;  %s5524_s23 = smov [#allocation8]  }
  0x1b   : > { %s306_s25 = sshll.u32 %s5524_s23, 4  ;;  %s6932_s1 = sld [smem:[#allocation34_spill]]  ;;  %s307_s25 = int_to_ptr.vmem [resolvable:$true] %s306_s25 }
  0x1c   : > { %p5657_p12 = pnand %p5069_p9, %p5040_p11  ;;  %s5526_s16 = smov [#allocation2]  }
  0x1d   : > { %s278_s24 = sshll.u32 %s6929_s2, 4  ;;  %s265_s17 = sshll.u32 %s5526_s16, 4  ;;  %s279_s24 = int_to_ptr.hbm [resolvable:$true] %s278_s24  ;;  %s266_s17 = int_to_ptr.vmem [resolvable:$true] %s265_s17 }
  0x1e   : > { %5046 = dma.hbm_to_vmem [thread:$0]  (!%p5657_p12), %s279_s24, 64, %s281_s26, [#allocation6]  }
  0x1f   : > { %s304_s29 = sshll.u32 %s6930_s4, 4  ;;  %s5525_s4 = smov [#allocation11]   ;;  %s305_s29 = int_to_ptr.hbm [resolvable:$true] %s304_s29 }
  0x20   : > { %5052 = dma.hbm_to_vmem [thread:$0]  (!%p5657_p12), %s305_s29, 64, %s307_s25, [#allocation9]  }
  0x21   : > { %s263_s2 = sshll.u32 %s6932_s1, 4  ;;  %s332_s18 = sshll.u32 %s5525_s4, 4  ;;  %s264_s2 = int_to_ptr.hbm [resolvable:$true] %s263_s2  ;;  %s333_s18 = int_to_ptr.vmem [resolvable:$true] %s332_s18 }
  0x22   : > { %5058 = dma.hbm_to_vmem [thread:$0]  (!%p5657_p12), %s331_s22, 16, %s333_s18, [#allocation12]  }
  0x23   : > { %s5527_s23 = smov 512   ;;  %s5528_s24 = smov 32  }
  0x24   : > { %5043 = dma.hbm_to_vmem [thread:$0]  (!%p5657_p12), %s264_s2, 10240, %s266_s17, [#allocation3], %s5527_s23, %s5527_s23, %s5528_s24  }
  0x25   : > { %s6933_s3 = sld [smem:[#allocation36_spill]]  ;;  %s5529_s27 = smov [#allocation7]  }
  0x26   : > { %s291_s4 = sshll.u32 %s5529_s27, 4  ;;  %s6934_s5 = sld [smem:[#allocation38_spill]]  ;;  %s292_s4 = int_to_ptr.vmem [resolvable:$true] %s291_s4 }
  0x27   : > { %s5530_s22 = smov [#allocation10]   ;;  %s5531_s2 = smov 128  }
  0x28   : > { %s317_s16 = sshll.u32 %s5530_s22, 4  ;;  %s5532_s17 = smov 8   ;;  %s318_s16 = int_to_ptr.vmem [resolvable:$true] %s317_s16 }
  0x29   : > { %s341_s27 = sshll.u32 %s6916_s7, 4  ;;  %s342_s27 = int_to_ptr.hbm [resolvable:$true] %s341_s27 }
  0x2b   : > { %s289_s25 = sshll.u32 %s6933_s3, 4  ;;  %s5533_s3 = smov [#allocation13]   ;;  %s290_s25 = int_to_ptr.hbm [resolvable:$true] %s289_s25 }
  0x2c   : > { %s315_s18 = sshll.u32 %s6934_s5, 4  ;;  %s343_s1 = sshll.u32 %s5533_s3, 4  ;;  %s316_s18 = int_to_ptr.hbm [resolvable:$true] %s315_s18  ;;  %s344_s1 = int_to_ptr.vmem [resolvable:$true] %s343_s1 }
  0x2d   : > { %5049 = dma.hbm_to_vmem [thread:$0]  (!%p5657_p12), %s290_s25, 92160, %s292_s4, [#allocation6], %s5527_s23, %s5527_s23, %s5528_s24  }
  0x2e   : > { %5055 = dma.hbm_to_vmem [thread:$0]  (!%p5657_p12), %s316_s18, 25088, %s318_s16, [#allocation9], %s5531_s2, %s5531_s2, %s5532_s17  }
  0x2f   : > { %s356_s23 = sshll.u32 %s6917_s8, 4  ;;  %s5534_s24 = smov [#allocation14]   ;;  %s357_s23 = int_to_ptr.hbm [resolvable:$true] %s356_s23 }
  0x30   : > { %5061 = dma.hbm_to_vmem [thread:$0]  (!%p5657_p12), %s342_s27, 2048, %s344_s1, [#allocation12], %s5531_s2, %s5531_s2, %s5532_s17  }
  0x31   : > { %s358_s25 = sshll.u32 %s5534_s24, 4  ;;  %379 = sbr.rel (%p5643_p10) target bundleno = 2086 (0x826), region = 56  ;;  %s359_s25 = int_to_ptr.vmem [resolvable:$true] %s358_s25 }
  0x32   : > { %5064 = dma.hbm_to_vmem [thread:$0]  (!%p5657_p12), %s357_s23, 16, %s359_s25, [#allocation15]  }
  0x36   : > { %5484 = dma.done.wait (%p5069_p9), [#allocation3], 10240  }
  0x37   : > { %5486 = vsyncadd (%p5069_p9), [#allocation3], 4294957056 }
  0x38   : > { %5488 = dma.done.wait (%p5069_p9), [#allocation6], 92224  }
  0x39   : > { %5490 = vsyncadd (%p5069_p9), [#allocation6], 4294875072 }
  0x3a   : > { %5492 = dma.done.wait (%p5069_p9), [#allocation9], 25152  }
  0x3b   : > { %5494 = vsyncadd (%p5069_p9), [#allocation9], 4294942144 }
  0x3c   : > { %5496 = dma.done.wait (%p5069_p9), [#allocation12], 2064  }
  0x3d   : > { %5498 = vsyncadd (%p5069_p9), [#allocation12], 4294965232 }
  0x3e   : > { %5500 = dma.done.wait (%p5069_p9), [#allocation15], 16  }
  0x3f   : > { %5502 = vsyncadd (%p5069_p9), [#allocation15], 4294967280  ;;  %p450_p13 = scmp.lt.s32.totalorder %s5615_s13, 1  ;;  %s5535_s18 = smov 2   ;;  %v531_v4 = vld [vmem:[#allocation2 + $0xe0] sm:$0xff]  ;;  %v532_v5 = vld [vmem:[#allocation2 + $0xe8] sm:$0xff] }
  0x40   : > { %v533_v6 = vld [vmem:[#allocation2 + $0xf0] sm:$0xff]  ;;  %566 = vmatpush.msra.mxu0 %v531_v4  ;;  %595 = vmatpush.msra.mxu1 %v532_v5  ;;  %v527_v7 = vld [vmem:[#allocation2 + $0xc0] sm:$0xff]  ;;  %v528_v8 = vld [vmem:[#allocation2 + $0xc8] sm:$0xff]  ;;  %vm475_vm0 = vcmask 15360   ;;  %vm480_vm1 = vcmask 244736   ;;  %vm489_vm2 = vcmask 1041408   ;;  %s4702_s24 = scalar_lea.hbm %s6918_s9, %s5615_s13 }
  0x41   : > { %s451_s3 = scalar_select %p450_p13, %s5615_s13, 1  ;;  %624 = vmatpush.msra.mxu2 %v533_v6  ;;  %5002 = vmatpush.msra.mxu3 %v533_v6  ;;  %v529_v9 = vld [vmem:[#allocation2 + $0xd0] sm:$0xff]  ;;  %v523_v10 = vld [vmem:[#allocation2 + $0xa0] sm:$0xff]  ;;  %v524_v11 = vld [vmem:[#allocation2 + $0xa8] sm:$0xff]  ;;  %vm500_vm3 = vcmask 1045504   ;;  %vm537_vm4 = vcmask 1046528  }
  0x42   : > { %567 = vmatpush.msra.mxu0 %v527_v7  ;;  %596 = vmatpush.msra.mxu1 %v528_v8  ;;  %v525_v12 = vld [vmem:[#allocation2 + $0xb0] sm:$0xff]  ;;  %v519_v13 = vld [vmem:[#allocation2 + $0x80] sm:$0xff]  ;;  %v520_v14 = vld [vmem:[#allocation2 + $0x88] sm:$0xff]  ;;  %vm545_vm5 = vcmask 261120   ;;  %vm975_vm6 = vcmask 1044480   ;;  %vm1140_vm7 = vcmask 1043456  }
  0x43   : > { %s5001_s5 = sshll.u32 %s451_s3, 5  ;;  %625 = vmatpush.msra.mxu2 %v529_v9  ;;  %5003 = vmatpush.msra.mxu3 %v529_v9  ;;  %v521_v15 = vld [vmem:[#allocation2 + $0x90] sm:$0xff]  ;;  %v534_v17 = vld [vmem:[#allocation2 + $0xf8] sm:$0xff]  ;;  %v514_v38 = vld [vmem:[#allocation2 + $0x60] sm:$0xff]  ;;  %vm1506_vm8 = vcmask 1040384   ;;  %vm1515_vm9 = vcmask 1042432  }
  0x44   : > { %s454_s4 = scalar_lea.vmem %s6909_s0, %s5001_s5  ;;  %568 = vmatpush.msra.mxu0 %v523_v10  ;;  %597 = vmatpush.msra.mxu1 %v524_v11  ;;  %v516_v16 = vld [vmem:[#allocation2 + $0x70] sm:$0xff]  ;;  %v530_v19 = vld [vmem:[#allocation2 + $0xd8] sm:$0xff]  ;;  %v515_v39 = vld [vmem:[#allocation2 + $0x68] sm:$0xff]  ;;  %s5536_s22 = smov 112   ;;  %vm1676_vm10 = vcmask 130048   ;;  %vm1684_vm11 = vcmask 523264  }
  0x45   : > { %v457_v0 = vld [vmem:[%s454_s4 + $0x10] sm:$0xff]  ;;  %v456_v1 = vld [vmem:[%s454_s4 + $0x8] sm:$0xff]  ;;  %v458_v2 = vld [vmem:[%s454_s4 + $0x18] sm:$0xf]  ;;  %626 = vmatpush.msra.mxu2 %v525_v12  ;;  %5004 = vmatpush.msra.mxu3 %v525_v12  ;;  %s5537_s16 = smov 80   ;;  %s5538_s2 = smov 96  }
  0x46   : > { %467 = vrot.lane.b32.xlu0 %v457_v0, %s5535_s18  ;;  %465 = vrot.lane.b32.xlu1 %v456_v1, %s5535_s18  ;;  %v455_v3 = vld [vmem:[%s454_s4] sm:$0xff]  ;;  %v512_v18 = vld [vmem:[#allocation2 + $0x50] sm:$0xff]  ;;  %v526_v21 = vld [vmem:[#allocation2 + $0xb8] sm:$0xff]  ;;  %s5539_s17 = smov 64   ;;  %s5540_s26 = smov 48   ;;  %vm1681_vm12 = vcmask 392192  }
  0x47   : > { %569 = vmatpush.msra.mxu0 %v519_v13  ;;  %598 = vmatpush.msra.mxu1 %v520_v14  ;;  %v508_v20 = vld [vmem:[#allocation2 + $0x30] sm:$0xff]  ;;  %v522_v25 = vld [vmem:[#allocation2 + $0x98] sm:$0xff]  ;;  %v510_v40 = vld [vmem:[#allocation2 + $0x40] sm:$0xff]  ;;  %s5541_s29 = smov 32   ;;  %s5542_s27 = smov 16   ;;  %vm1687_vm13 = vcmask 654336  }
  0x48   : > { %627 = vmatpush.msra.mxu2 %v521_v15  ;;  %5005 = vmatpush.msra.mxu3 %v521_v15  ;;  %v504_v22 = vld [vmem:[#allocation2 + $0x10] sm:$0xff]  ;;  %v511_v43 = vld [vmem:[#allocation2 + $0x48] sm:$0xff]  ;;  %v506_v45 = vld [vmem:[#allocation2 + $0x20] sm:$0xff]  ;;  %vm1690_vm14 = vcmask 785408   ;;  %vm1693_vm15 = vcmask 916480   ;;  %s448_s1 = sand.u32 1, %s5513_s10  }
  0x49   : > { %690 = vmatpush.msrb.mxu0 %v514_v38  ;;  %719 = vmatpush.msrb.mxu1 %v515_v39  ;;  %v507_v46 = vld [vmem:[#allocation2 + $0x28] sm:$0xff]  ;;  %v502_v57 = vld [vmem:[#allocation2] sm:$0xff]  ;;  %v805_v4 = vld [vmem:[#allocation2 + $0x150] sm:$0xff]  ;;  %s449_s25 = scalar_lea.vmem [#allocation16], %s448_s1  ;;  %s4706_s5 = sshll.u32 %s4702_s24, 4  ;;  %s4707_s5 = int_to_ptr.hbm [resolvable:$true] %s4706_s5 }
  0x4a   : > { %748 = vmatpush.msrb.mxu2 %v516_v16  ;;  %653 = vmatpush.msrb.mxu3 %v534_v17  ;;  %v503_v58 = vld [vmem:[#allocation2 + $0x8] sm:$0xff]  ;;  %v513_v5 = vld [vmem:[#allocation2 + $0x58] sm:$0xff]  ;;  %v801_v6 = vld [vmem:[#allocation2 + $0x130] sm:$0xff]  ;;  %s4704_s3 = sshll.u32 %s449_s25, 4  ;;  %s4694_s21 = scalar_lea.sflag [#allocation4], %s448_s1  ;;  %s4705_s3 = int_to_ptr.vmem [resolvable:$true] %s4704_s3 }
  0x4b   : > { %691 = vmatpush.msrb.mxu0 %v510_v40  ;;  %720 = vmatpush.msrb.mxu1 %v511_v43  ;;  %v509_v7 = vld [vmem:[#allocation2 + $0x38] sm:$0xff]  ;;  %v797_v8 = vld [vmem:[#allocation2 + $0x110] sm:$0xff]  ;;  %v807_v10 = vld [vmem:[#allocation2 + $0x160] sm:$0xff]  ;;  %s5453_s14 = sshra.s32 %s4707_s5, 4  ;;  %s5459_s13 = scalar_lea.hbm %s6918_s9, 2  ;;  %s5454_s14 = int_to_ptr.hbm [resolvable:$true] %s5453_s14 }
  0x4c   : > { %749 = vmatpush.msrb.mxu2 %v512_v18  ;;  %654 = vmatpush.msrb.mxu3 %v530_v19  ;;  %v505_v9 = vld [vmem:[#allocation2 + $0x18] sm:$0xff]  ;;  %v808_v11 = vld [vmem:[#allocation2 + $0x168] sm:$0xff]  ;;  %v803_v12 = vld [vmem:[#allocation2 + $0x140] sm:$0xff]  ;;  %s5455_s4 = scalar_lea.hbm %s5454_s14, 1  ;;  %p5460_p3 = scmp.lt.s32.totalorder %s5454_s14, %s6918_s9 }
  0x4d   : > { %692 = vmatpush.msrb.mxu0 %v506_v45  ;;  %721 = vmatpush.msrb.mxu1 %v507_v46  ;;  %v804_v13 = vld [vmem:[#allocation2 + $0x148] sm:$0xff]  ;;  %v799_v14 = vld [vmem:[#allocation2 + $0x120] sm:$0xff]  ;;  %v973_v18 = vld [vmem:[#allocation2 + $0x1f0] sm:$0xff]  ;;  %p5456_p0 = scmp.ne.s32.totalorder %s5454_s14, %s5455_s4  ;;  %p5461_p4 = scmp.lt.s32.totalorder %s5459_s13, %s5455_s4 }
  0x4e   : > { %469 = vrot.lane.b32.xlu0 %v458_v2, %s5535_s18  ;;  %463 = vrot.lane.b32.xlu1 %v455_v3, %s5535_s18  ;;  %v809_v2 = vld [vmem:[#allocation2 + $0x170] sm:$0xff]  ;;  %v517_v3 = vld [vmem:[#allocation2 + $0x78] sm:$0xff]  ;;  %v800_v15 = vld [vmem:[#allocation2 + $0x128] sm:$0xff] }
  0x4f   : > { %750 = vmatpush.msrb.mxu2 %v508_v20  ;;  %655 = vmatpush.msrb.mxu3 %v526_v21  ;;  %v795_v16 = vld [vmem:[#allocation2 + $0x100] sm:$0xff]  ;;  %v796_v17 = vld [vmem:[#allocation2 + $0x108] sm:$0xff]  ;;  %v810_v19 = vld [vmem:[#allocation2 + $0x178] sm:$0xff]  ;;  %p5457_p1 = pnand %p5456_p0, %p5632_p5  ;;  %p5462_p7 = por %p5461_p4, %p5460_p3 }
  0x50   : > { %693 = vmatpush.msrb.mxu0 %v502_v57  ;;  %722 = vmatpush.msrb.mxu1 %v503_v58  ;;  %v969_v20 = vld [vmem:[#allocation2 + $0x1d0] sm:$0xff]  ;;  %v806_v21 = vld [vmem:[#allocation2 + $0x158] sm:$0xff]  ;;  %v959_v38 = vld [vmem:[#allocation2 + $0x180] sm:$0xff] }
  0x51   : > { %751 = vmatpush.msrb.mxu2 %v504_v22  ;;  %656 = vmatpush.msrb.mxu3 %v522_v25  ;;  %v965_v22 = vld [vmem:[#allocation2 + $0x1b0] sm:$0xff]  ;;  %v960_v39 = vld [vmem:[#allocation2 + $0x188] sm:$0xff]  ;;  %v970_v45 = vld [vmem:[#allocation2 + $0x1d8] sm:$0xff]  ;;  %p5458_p2 = pneg %p5457_p1 }
  0x52   : > { %v1134_v43 = vld [vmem:[#allocation2 + $0x250] sm:$0xff]  ;;  %v1133_v57 = vld [vmem:[#allocation2 + $0x248] sm:$0xff] }
  0x53   : > { %v1130_v46 = vld [vmem:[#allocation2 + $0x230] sm:$0xff]  ;;  %p5463_p8 = pnand %p5462_p7, %p5458_p2 }
  0xb8   : > { %v468_v23 = vpop.permute.xlu0 %467  ;;  %v466_v24 = vpop.permute.xlu1 %465 }
  0xb9   : > { %v478_v26 = vsel %vm475_vm0, 0.0, %v468_v23  ;;  %v477_v27 = vsel %vm475_vm0, 0.0, %v466_v24  ;;  %v802_v23 = vld [vmem:[#allocation2 + $0x138] sm:$0xff] }
  0xba   : > { %v483_v28 = vsel %vm480_vm1, %v478_v26, 0.0  ;;  %v482_v29 = vsel %vm480_vm1, %v477_v27, 0.0  ;;  %v961_v26 = vld [vmem:[#allocation2 + $0x190] sm:$0xff] }
  0xbb   : > { %v493_v30 = vrot.slane %v483_v28, 6  ;;  %v491_v31 = vrot.slane %v482_v29, 6  ;;  %v798_v28 = vld [vmem:[#allocation2 + $0x118] sm:$0xff] }
  0xbd   : > { %v5727_v44 = vsel %vm489_vm2, %v491_v31, %v493_v30 }
  0xbe   : > { %v541_v53 = vrot.slane %v5727_v44, 1  ;;  %v814_v29 = vrot.slane %v5727_v44, 2 }
  0xc0   : > { %v470_v32 = vpop.permute.xlu0 %469  ;;  %v464_v33 = vpop.permute.xlu1 %463 }
  0xc1   : > { %v479_v34 = vsel %vm475_vm0, 0.0, %v470_v32  ;;  %v476_v35 = vsel %vm475_vm0, 0.0, %v464_v33  ;;  %v972_v32 = vld [vmem:[#allocation2 + $0x1e8] sm:$0xff]  ;;  %v967_v33 = vld [vmem:[#allocation2 + $0x1c0] sm:$0xff]  ;;  %vm6299_vm0 = vmneg %vm489_vm2 }
  0xc2   : > { %v484_v36 = vsel %vm480_vm1, %v479_v34, 0.0  ;;  %v481_v37 = vsel %vm480_vm1, %v476_v35, 0.0  ;;  %v968_v34 = vld [vmem:[#allocation2 + $0x1c8] sm:$0xff]  ;;  %v963_v35 = vld [vmem:[#allocation2 + $0x1a0] sm:$0xff] }
  0xc3   : > { %v495_v41 = vrot.slane %v484_v36, 6  ;;  %v490_v42 = vrot.slane %v481_v37, 6  ;;  %v964_v36 = vld [vmem:[#allocation2 + $0x1a8] sm:$0xff] }
  0xc5   : > { %v496_v47 = vsel %vm489_vm2, %v493_v30, %v495_v41  ;;  %v5731_v48 = vsel %vm489_vm2, %v490_v42, %v491_v31  ;;  %v5734_v49 = vsel %vm489_vm2, 0.0, %v490_v42  ;;  %v971_v31 = vld [vmem:[#allocation2 + $0x1e0] sm:$0xff]  ;;  %v1138_v41 = vld [vmem:[#allocation2 + $0x270] sm:$0xff]  ;;  %v974_v42 = vld [vmem:[#allocation2 + $0x1f8] sm:$0xff] }
  0xc6   : > { %v5737_v50 = vsel %vm500_vm3, %v496_v47, 0.0  ;;  %v538_v51 = vrot.slane %v5734_v49, 1  ;;  %v539_v52 = vrot.slane %v5731_v48, 1  ;;  %v976_v55 = vrot.slane %v5734_v49, 3  ;;  %v966_v47 = vld [vmem:[#allocation2 + $0x1b8] sm:$0xff] }
  0xc7   : > { %v5743_v54 = vrot.slane %v5737_v50, 1  ;;  %v977_v59 = vrot.slane %v5731_v48, 3  ;;  %v1141_v61 = vrot.slane %v5734_v49, 4  ;;  %v1142_v63 = vrot.slane %v5731_v48, 4 }
  0xc8   : > { %v540_v56 = vsel %vm537_vm4, %v538_v51, %v539_v52  ;;  %v542_v1 = vsel %vm537_vm4, %v539_v52, %v541_v53  ;;  %v811_v24 = vrot.slane %v5734_v49, 2  ;;  %v812_v25 = vrot.slane %v5731_v48, 2  ;;  %v962_v51 = vld [vmem:[#allocation2 + $0x198] sm:$0xff] }
  0xc9   : > { %4862 = vmatmul.msk.f32.vlgmr.msra.gmra.mxu0 %vm545_vm5, %v540_v56  ;;  %4866 = vmatmul.msk.f32.vlgmr.msra.gmra.mxu1 %vm545_vm5, %v540_v56  ;;  %v544_v60 = vsel %vm537_vm4, %v541_v53, %v5743_v54  ;;  %v5758_v62 = vsel %vm975_vm6, %v976_v55, %v977_v59  ;;  %v5764_v0 = vsel %vm1140_vm7, %v1141_v61, %v1142_v63  ;;  %v5819_v37 = vrot.slane %v5737_v50, 2  ;;  %v1137_v55 = vld [vmem:[#allocation2 + $0x268] sm:$0xff] }
  0xca   : > { %4870 = vmatmul.msk.f32.vlgmr.msra.gmra.mxu2 %vm545_vm5, %v540_v56  ;;  %4872 = vmatmul.msk.f32.vlgmr.msra.gmra.mxu3 %vm545_vm5, %v544_v60  ;;  %v813_v27 = vsel %vm500_vm3, %v811_v24, %v812_v25  ;;  %v815_v30 = vsel %vm500_vm3, %v812_v25, %v814_v29  ;;  %v979_v52 = vrot.slane %v5727_v44, 3  ;;  %v981_v58 = vrot.slane %v5737_v50, 3  ;;  %v1129_v61 = vld [vmem:[#allocation2 + $0x228] sm:$0xff] }
  0xcb   : > { %896 = vmatpush.msra.mxu2 %v809_v2  ;;  %777 = vmatpush.msra.mxu3 %v517_v3  ;;  %v817_v40 = vsel %vm500_vm3, %v814_v29, %v5819_v37  ;;  %v1139_v3 = vld [vmem:[#allocation2 + $0x278] sm:$0xff] }
  0xcc   : > { %838 = vmatpush.msra.mxu0 %v807_v10  ;;  %867 = vmatpush.msra.mxu1 %v808_v11  ;;  %v980_v53 = vsel %vm975_vm6, %v977_v59, %v979_v52  ;;  %v1125_v59 = vld [vmem:[#allocation2 + $0x208] sm:$0xff]  ;;  %v982_v2 = vsel %vm975_vm6, %v979_v52, %v981_v58 }
  0xcd   : > { %897 = vmatpush.msra.mxu2 %v805_v4  ;;  %778 = vmatpush.msra.mxu3 %v513_v5  ;;  %v1135_v4 = vld [vmem:[#allocation2 + $0x258] sm:$0xff] }
  0xce   : > { %839 = vmatpush.msra.mxu0 %v803_v12  ;;  %868 = vmatpush.msra.mxu1 %v804_v13  ;;  %v1131_v5 = vld [vmem:[#allocation2 + $0x238] sm:$0xff] }
  0xcf   : > { %898 = vmatpush.msra.mxu2 %v801_v6  ;;  %779 = vmatpush.msra.mxu3 %v509_v7  ;;  %v1127_v6 = vld [vmem:[#allocation2 + $0x218] sm:$0xff]  ;;  %v1144_v7 = vrot.slane %v5727_v44, 4 }
  0xd0   : > { %840 = vmatpush.msra.mxu0 %v799_v14  ;;  %869 = vmatpush.msra.mxu1 %v800_v15 }
  0xd1   : > { %4863 = vmatmul.msk.f32.gmra.mxu0 %vm545_vm5, %v542_v1  ;;  %4867 = vmatmul.msk.f32.gmra.mxu1 %vm545_vm5, %v542_v1 }
  0xd2   : > { %4871 = vmatmul.msk.f32.gmra.mxu2 %vm545_vm5, %v542_v1  ;;  %4873 = vmatmul.msk.f32.gmra.mxu3 %vm545_vm5, %v5743_v54 }
  0xd3   : > { %899 = vmatpush.msra.mxu2 %v797_v8  ;;  %780 = vmatpush.msra.mxu3 %v505_v9  ;;  %v1145_v8 = vsel %vm1140_vm7, %v1142_v63, %v1144_v7  ;;  %v1146_v9 = vrot.slane %v5737_v50, 4 }
  0xd4   : > { %841 = vmatpush.msra.mxu0 %v795_v16  ;;  %870 = vmatpush.msra.mxu1 %v796_v17 }
  0xd9   : > { %4864 = vmatmul.msk.f32.gmra.mxu0 %vm545_vm5, %v544_v60  ;;  %4868 = vmatmul.msk.f32.gmra.mxu1 %vm545_vm5, %v544_v60 }
  0xda   : > { %4886 = vmatmul.msk.f32.vlgmr.msrb.gmra.mxu2 %vm545_vm5, %v5734_v49  ;;  %4874 = vmatmul.msk.f32.vlgmr.msrb.gmra.mxu3 %vm545_vm5, %v540_v56  ;;  %v1132_v56 = vld [vmem:[#allocation2 + $0x240] sm:$0xff] }
  0xdb   : > { %1061 = vmatpush.msrb.mxu2 %v973_v18  ;;  %925 = vmatpush.msrb.mxu3 %v810_v19 }
  0xdd   : > { %1062 = vmatpush.msrb.mxu2 %v969_v20  ;;  %926 = vmatpush.msrb.mxu3 %v806_v21 }
  0xdf   : > { %1063 = vmatpush.msrb.mxu2 %v965_v22  ;;  %927 = vmatpush.msrb.mxu3 %v802_v23 }
  0xe1   : > { %4865 = vmatmul.msk.f32.gmra.mxu0 %vm545_vm5, %v5743_v54  ;;  %4869 = vmatmul.msk.f32.gmra.mxu1 %vm545_vm5, %v5743_v54 }
  0xe2   : > { %4887 = vmatmul.msk.f32.gmra.mxu2 %vm545_vm5, %v5731_v48  ;;  %4875 = vmatmul.msk.f32.gmra.mxu3 %vm545_vm5, %v542_v1  ;;  %v1124_v1 = vld [vmem:[#allocation2 + $0x200] sm:$0xff] }
  0xe3   : > { %1064 = vmatpush.msrb.mxu2 %v961_v26  ;;  %928 = vmatpush.msrb.mxu3 %v798_v28 }
  0xe9   : > { %4878 = vmatmul.msk.f32.vlgmr.msrb.gmra.mxu0 %vm545_vm5, %v5734_v49  ;;  %4882 = vmatmul.msk.f32.vlgmr.msrb.gmra.mxu1 %vm545_vm5, %v5734_v49 }
  0xea   : > { %4888 = vmatmul.msk.f32.gmra.mxu2 %vm545_vm5, %v5727_v44  ;;  %4876 = vmatmul.msk.f32.gmra.mxu3 %vm545_vm5, %v544_v60  ;;  %v1128_v60 = vld [vmem:[#allocation2 + $0x220] sm:$0xff] }
  0xeb   : > { %1003 = vmatpush.msrb.mxu0 %v971_v31  ;;  %1032 = vmatpush.msrb.mxu1 %v972_v32 }
  0xed   : > { %1004 = vmatpush.msrb.mxu0 %v967_v33  ;;  %1033 = vmatpush.msrb.mxu1 %v968_v34 }
  0xef   : > { %1005 = vmatpush.msrb.mxu0 %v963_v35  ;;  %1034 = vmatpush.msrb.mxu1 %v964_v36 }
  0xf1   : > { %4879 = vmatmul.msk.f32.gmra.mxu0 %vm545_vm5, %v5731_v48  ;;  %4883 = vmatmul.msk.f32.gmra.mxu1 %vm545_vm5, %v5731_v48 }
  0xf2   : > { %4889 = vmatmul.msk.f32.gmra.mxu2 %vm545_vm5, %v5737_v50  ;;  %4877 = vmatmul.msk.f32.gmra.mxu3 %vm545_vm5, %v5743_v54  ;;  %v1136_v54 = vld [vmem:[#allocation2 + $0x260] sm:$0xff] }
  0xf3   : > { %1006 = vmatpush.msrb.mxu0 %v959_v38  ;;  %1035 = vmatpush.msrb.mxu1 %v960_v39 }
  0xf9   : > { %4880 = vmatmul.msk.f32.gmra.mxu0 %vm545_vm5, %v5727_v44  ;;  %4884 = vmatmul.msk.f32.gmra.mxu1 %vm545_vm5, %v5727_v44 }
  0xfa   : > { %4902 = vmatmul.msk.f32.vlgmr.msra.gmra.mxu2 %vm545_vm5, %v813_v27  ;;  %4890 = vmatmul.msk.f32.vlgmr.msra.gmra.mxu3 %vm545_vm5, %v5734_v49  ;;  %v1126_v49 = vld [vmem:[#allocation2 + $0x210] sm:$0xff] }
  0xfb   : > { %1226 = vmatpush.msra.mxu2 %v1138_v41  ;;  %1090 = vmatpush.msra.mxu3 %v974_v42 }
  0xfd   : > { %1227 = vmatpush.msra.mxu2 %v1134_v43  ;;  %1091 = vmatpush.msra.mxu3 %v970_v45 }
  0xff   : > { %1228 = vmatpush.msra.mxu2 %v1130_v46  ;;  %1092 = vmatpush.msra.mxu3 %v966_v47 }
 0x101   : > { %4881 = vmatmul.msk.f32.gmra.mxu0 %vm545_vm5, %v5737_v50  ;;  %4885 = vmatmul.msk.f32.gmra.mxu1 %vm545_vm5, %v5737_v50 }
 0x102   : > { %4903 = vmatmul.msk.f32.gmra.mxu2 %vm545_vm5, %v815_v30  ;;  %4891 = vmatmul.msk.f32.gmra.mxu3 %vm545_vm5, %v5731_v48 }
 0x103   : > { %1229 = vmatpush.msra.mxu2 %v1126_v49  ;;  %1093 = vmatpush.msra.mxu3 %v962_v51 }
 0x109   : > { %4894 = vmatmul.msk.f32.vlgmr.msra.gmra.mxu0 %vm545_vm5, %v813_v27  ;;  %4898 = vmatmul.msk.f32.vlgmr.msra.gmra.mxu1 %vm545_vm5, %v813_v27 }
 0x10a   : > { %4904 = vmatmul.msk.f32.gmra.mxu2 %vm545_vm5, %v817_v40  ;;  %4892 = vmatmul.msk.f32.gmra.mxu3 %vm545_vm5, %v5727_v44  ;;  %v1147_v44 = vsel %vm1140_vm7, %v1144_v7, %v1146_v9 }
 0x10b   : > { %1168 = vmatpush.msra.mxu0 %v1136_v54  ;;  %1197 = vmatpush.msra.mxu1 %v1137_v55 }
 0x10d   : > { %1169 = vmatpush.msra.mxu0 %v1132_v56  ;;  %1198 = vmatpush.msra.mxu1 %v1133_v57 }
 0x10f   : > { %1170 = vmatpush.msra.mxu0 %v1128_v60  ;;  %1199 = vmatpush.msra.mxu1 %v1129_v61 }
 0x111   : > { %4895 = vmatmul.msk.f32.gmra.mxu0 %vm545_vm5, %v815_v30  ;;  %4899 = vmatmul.msk.f32.gmra.mxu1 %vm545_vm5, %v815_v30 }
 0x112   : > { %4905 = vmatmul.msk.f32.gmra.mxu2 %vm545_vm5, %v5819_v37  ;;  %4893 = vmatmul.msk.f32.gmra.mxu3 %vm545_vm5, %v5737_v50 }
 0x113   : > { %1171 = vmatpush.msra.mxu0 %v1124_v1  ;;  %1200 = vmatpush.msra.mxu1 %v1125_v59 }
 0x119   : > { %4896 = vmatmul.msk.f32.gmra.mxu0 %vm545_vm5, %v817_v40  ;;  %4900 = vmatmul.msk.f32.gmra.mxu1 %vm545_vm5, %v817_v40 }
 0x11a   : > { %4918 = vmatmul.msk.f32.vlgmr.msrb.gmra.mxu2 %vm545_vm5, %v5758_v62  ;;  %4906 = vmatmul.msk.f32.vlgmr.msrb.gmra.mxu3 %vm545_vm5, %v813_v27 }
 0x11b   : > { %1255 = vmatpush.msrb.mxu3 %v1139_v3 }
 0x11d   : > { %1256 = vmatpush.msrb.mxu3 %v1135_v4 }
 0x11f   : > { %1257 = vmatpush.msrb.mxu3 %v1131_v5 }
 0x121   : > { %4897 = vmatmul.msk.f32.gmra.mxu0 %vm545_vm5, %v5819_v37  ;;  %4901 = vmatmul.msk.f32.gmra.mxu1 %vm545_vm5, %v5819_v37 }
 0x122   : > { %4919 = vmatmul.msk.f32.gmra.mxu2 %vm545_vm5, %v980_v53  ;;  %4907 = vmatmul.msk.f32.gmra.mxu3 %vm545_vm5, %v815_v30 }
 0x123   : > { %1258 = vmatpush.msrb.mxu3 %v1127_v6  ;;  %v5982_v6 = vld [vmem:[#allocation5] sm:$0xf] }
 0x129   : > { %4910 = vmatmul.msk.f32.vlgmr.msrb.gmra.mxu0 %vm545_vm5, %v5758_v62  ;;  %4914 = vmatmul.msk.f32.vlgmr.msrb.gmra.mxu1 %vm545_vm5, %v5758_v62 }
 0x12a   : > { %4920 = vmatmul.msk.f32.gmra.mxu2 %vm545_vm5, %v982_v2  ;;  %4908 = vmatmul.msk.f32.gmra.mxu3 %vm545_vm5, %v817_v40 }
 0x131   : > { %4911 = vmatmul.msk.f32.gmra.mxu0 %vm545_vm5, %v980_v53  ;;  %4915 = vmatmul.msk.f32.gmra.mxu1 %vm545_vm5, %v980_v53 }
 0x132   : > { %4921 = vmatmul.msk.f32.gmra.mxu2 %vm545_vm5, %v981_v58  ;;  %4909 = vmatmul.msk.f32.gmra.mxu3 %vm545_vm5, %v5819_v37 }
 0x139   : > { %4912 = vmatmul.msk.f32.gmra.mxu0 %vm545_vm5, %v982_v2  ;;  %4916 = vmatmul.msk.f32.gmra.mxu1 %vm545_vm5, %v982_v2 }
 0x13a   : > { %4934 = vmatmul.msk.f32.vlgmr.msra.gmra.mxu2 %vm545_vm5, %v5764_v0  ;;  %4922 = vmatmul.msk.f32.vlgmr.msra.gmra.mxu3 %vm545_vm5, %v5758_v62 }
 0x141   : > { %4913 = vmatmul.msk.f32.gmra.mxu0 %vm545_vm5, %v981_v58  ;;  %4917 = vmatmul.msk.f32.gmra.mxu1 %vm545_vm5, %v981_v58 }
 0x142   : > { %4935 = vmatmul.msk.f32.gmra.mxu2 %vm545_vm5, %v1145_v8  ;;  %4923 = vmatmul.msk.f32.gmra.mxu3 %vm545_vm5, %v980_v53 }
 0x146   : > { %v5877_v10 = vpop.f32.mrf.mxu0  ;;  %v5879_v62 = vpop.f32.mrf.mxu1 }
 0x149   : > { %4926 = vmatmul.msk.f32.vlgmr.msra.gmra.mxu0 %vm545_vm5, %v5764_v0  ;;  %4930 = vmatmul.msk.f32.vlgmr.msra.gmra.mxu1 %vm545_vm5, %v5764_v0 }
 0x14a   : > { %4936 = vmatmul.msk.f32.gmra.mxu2 %vm545_vm5, %v1147_v44  ;;  %4924 = vmatmul.msk.f32.gmra.mxu3 %vm545_vm5, %v982_v2 }
 0x14d   : > { %v5888_v48 = vpop.f32.mrf.mxu2  ;;  %v5890_v63 = vpop.f32.mrf.mxu3 }
 0x14e   : > { %v5892_v50 = vpop.f32.mrf.mxu0  ;;  %v5894_v11 = vpop.f32.mrf.mxu1 }
 0x151   : > { %4927 = vmatmul.msk.f32.gmra.mxu0 %vm545_vm5, %v1145_v8  ;;  %4931 = vmatmul.msk.f32.gmra.mxu1 %vm545_vm5, %v1145_v8 }
 0x152   : > { %4937 = vmatmul.msk.f32.gmra.mxu2 %vm545_vm5, %v1146_v9  ;;  %4925 = vmatmul.msk.f32.gmra.mxu3 %vm545_vm5, %v981_v58 }
 0x155   : > { %v5900_v12 = vpop.f32.mrf.mxu2  ;;  %v5902_v13 = vpop.f32.mrf.mxu3 }
 0x156   : > { %v5904_v14 = vpop.f32.mrf.mxu0  ;;  %v5906_v15 = vpop.f32.mrf.mxu1 }
 0x159   : > { %4928 = vmatmul.msk.f32.gmra.mxu0 %vm545_vm5, %v1147_v44  ;;  %4932 = vmatmul.msk.f32.gmra.mxu1 %vm545_vm5, %v1147_v44 }
 0x15a   : > { %4938 = vmatmul.msk.f32.vlgmr.msrb.gmra.mxu3 %vm545_vm5, %v5764_v0 }
 0x15d   : > { %v753_v16 = vpop.f32.mrf.mxu2  ;;  %v5912_v17 = vpop.f32.mrf.mxu3 }
 0x15e   : > { %v5914_v18 = vpop.f32.mrf.mxu0  ;;  %v5916_v19 = vpop.f32.mrf.mxu1  ;;  %v754_v5 = vadd.f32 %v753_v16, %v5888_v48 }
 0x161   : > { %4929 = vmatmul.msk.f32.gmra.mxu0 %vm545_vm5, %v1146_v9  ;;  %4933 = vmatmul.msk.f32.gmra.mxu1 %vm545_vm5, %v1146_v9 }
 0x162   : > { %4939 = vmatmul.msk.f32.gmra.mxu3 %vm545_vm5, %v1145_v8 }
 0x165   : > { %v756_v20 = vpop.f32.mrf.mxu2  ;;  %v5921_v21 = vpop.f32.mrf.mxu3 }
 0x166   : > { %v695_v22 = vpop.f32.mrf.mxu0  ;;  %v724_v23 = vpop.f32.mrf.mxu1 }
 0x167   : > { %v696_v48 = vadd.f32 %v695_v22, %v5877_v10  ;;  %v725_v16 = vadd.f32 %v724_v23, %v5879_v62  ;;  %v6004_v62 = vperm.slane %v5982_v6, 0 }
 0x16a   : > { %4940 = vmatmul.msk.f32.gmra.mxu3 %vm545_vm5, %v1147_v44 }
 0x16d   : > { %v759_v0 = vpop.f32.mrf.mxu2  ;;  %v5924_v24 = vpop.f32.mrf.mxu3 }
 0x16e   : > { %6935 = vst [vmem:[#allocation24_spill] sm:$0xff] %v5924_v24  ;;  %v698_v25 = vpop.f32.mrf.mxu0  ;;  %v727_v26 = vpop.f32.mrf.mxu1 }
 0x172   : > { %4941 = vmatmul.msk.f32.gmra.mxu3 %vm545_vm5, %v1146_v9  ;;  %v5985_v9 = vperm.slane %v5982_v6, 2 }
 0x175   : > { %v762_v27 = vpop.f32.mrf.mxu2  ;;  %v5927_v28 = vpop.f32.mrf.mxu3 }
 0x176   : > { %6936 = vst [vmem:[#allocation25_spill] sm:$0xff] %v5927_v28  ;;  %v5929_v29 = vpop.f32.mrf.mxu0  ;;  %v5931_v30 = vpop.f32.mrf.mxu1 }
 0x17d   : > { %v901_v31 = vpop.f32.mrf.mxu2  ;;  %v5933_v32 = vpop.f32.mrf.mxu3 }
 0x17e   : > { %v5935_v33 = vpop.f32.mrf.mxu0  ;;  %v5937_v34 = vpop.f32.mrf.mxu1  ;;  %v944_v7 = vadd.f32 %v901_v31, %v754_v5  ;;  %v760_v5 = vadd.f32 %v759_v0, %v5890_v63  ;;  %v6007_v63 = vperm.slane %v5982_v6, 1 }
 0x185   : > { %v904_v35 = vpop.f32.mrf.mxu2  ;;  %v5939_v36 = vpop.f32.mrf.mxu3 }
 0x186   : > { %v843_v37 = vpop.f32.mrf.mxu0  ;;  %v872_v38 = vpop.f32.mrf.mxu1 }
 0x18d   : > { %v5941_v39 = vpop.f32.mrf.mxu2  ;;  %v5943_v40 = vpop.f32.mrf.mxu3 }
 0x18e   : > { %6937 = vst [vmem:[#allocation26_spill] sm:$0xff] %v5943_v40  ;;  %v5945_v41 = vpop.f32.mrf.mxu0  ;;  %v5947_v42 = vpop.f32.mrf.mxu1  ;;  %v757_v40 = vadd.f32 %v756_v20, %v5900_v12 }
 0x190   : > { %v948_v31 = vadd.f32 %v904_v35, %v757_v40  ;;  %v734_v35 = vadd.f32 %v5937_v34, %v5916_v19 }
 0x195   : > { %v5949_v43 = vpop.f32.mrf.mxu2  ;;  %v5951_v45 = vpop.f32.mrf.mxu3 }
 0x196   : > { %6938 = vst [vmem:[#allocation27_spill] sm:$0xff] %v5951_v45  ;;  %v5953_v46 = vpop.f32.mrf.mxu0  ;;  %v5955_v47 = vpop.f32.mrf.mxu1 }
 0x19d   : > { %v1066_v49 = vpop.f32.mrf.mxu2  ;;  %v5957_v51 = vpop.f32.mrf.mxu3 }
 0x19e   : > { %v5959_v52 = vpop.f32.mrf.mxu0  ;;  %v5961_v53 = vpop.f32.mrf.mxu1  ;;  %v1109_v8 = vadd.f32 %v1066_v49, %v944_v7  ;;  %v699_v7 = vadd.f32 %v698_v25, %v5892_v50  ;;  %v702_v50 = vadd.f32 %v5929_v29, %v5904_v14  ;;  %v705_v25 = vadd.f32 %v5935_v33, %v5914_v18 }
 0x19f   : > { %v952_v29 = vadd.f32 %v5941_v39, %v760_v5 }
 0x1a0   : > { %v946_v18 = vadd.f32 %v5945_v41, %v699_v7  ;;  %v954_v7 = vadd.f32 %v5959_v52, %v705_v25 }
 0x1a5   : > { %v1069_v54 = vpop.f32.mrf.mxu2  ;;  %v5963_v55 = vpop.f32.mrf.mxu3 }
 0x1a6   : > { %v1008_v56 = vpop.f32.mrf.mxu0  ;;  %v1037_v57 = vpop.f32.mrf.mxu1 }
 0x1ad   : > { %v5965_v58 = vpop.f32.mrf.mxu2  ;;  %v5967_v60 = vpop.f32.mrf.mxu3 }
 0x1ae   : > { %6939 = vst [vmem:[#allocation28_spill] sm:$0xff] %v5967_v60  ;;  %v5969_v61 = vpop.f32.mrf.mxu0  ;;  %v5971_v1 = vpop.f32.mrf.mxu1  ;;  %v1117_v39 = vadd.f32 %v5965_v58, %v952_v29 }
 0x1af   : > { %v1111_v41 = vadd.f32 %v5969_v61, %v946_v18 }
 0x1b5   : > { %v5973_v59 = vpop.f32.mrf.mxu2  ;;  %v5975_v2 = vpop.f32.mrf.mxu3 }
 0x1b6   : > { %6940 = vst [vmem:[#allocation29_spill] sm:$0xff] %v5975_v2  ;;  %v5977_v3 = vpop.f32.mrf.mxu0  ;;  %v5979_v4 = vpop.f32.mrf.mxu1 }
 0x1b7   : > { %6941 = vst [vmem:[#allocation30_spill] sm:$0xff] %v5979_v4 }
 0x1bd   : > { %v1231_v44 = vpop.f32.mrf.mxu2  ;;  %v5987_v45 = vpop.f32.mrf.mxu3 }
 0x1be   : > { %6942 = vst [vmem:[#allocation31_spill] sm:$0xff] %v5987_v45  ;;  %v1274_v28 = vadd.f32 %v1231_v44, %v1109_v8  ;;  %v5989_v60 = vpop.f32.mrf.mxu0  ;;  %v5991_v2 = vpop.f32.mrf.mxu1  ;;  %v942_v45 = vadd.f32 %v843_v37, %v696_v48  ;;  %v943_v8 = vadd.f32 %v872_v38, %v725_v16  ;;  %v728_v44 = vadd.f32 %v727_v26, %v5894_v11 }
 0x1bf   : > { %6943 = vst [vmem:[#allocation32_spill] sm:$0xff] %v5989_v60  ;;  %v1113_v60 = vadd.f32 %v1069_v54, %v948_v31  ;;  %v731_v11 = vadd.f32 %v5931_v30, %v5906_v15  ;;  %v786_v15 = vadd.f32 %v5939_v36, %v5921_v21  ;;  %v950_v21 = vadd.f32 %v5953_v46, %v702_v50 }
 0x1c0   : > { %6944 = vst [vmem:[#allocation33_spill] sm:$0xff] %v5991_v2  ;;  %v1300_v24 = vadd.f32 %v5985_v9, %v1274_v28  ;;  %v763_v2 = vadd.f32 %v762_v27, %v5902_v13  ;;  %v1107_v20 = vadd.f32 %v1008_v56, %v942_v45  ;;  %v1108_v28 = vadd.f32 %v1037_v57, %v943_v8 }
 0x1c1   : > { %v951_v36 = vadd.f32 %v5955_v47, %v731_v11  ;;  %v955_v8 = vadd.f32 %v5961_v53, %v734_v35  ;;  %v1115_v25 = vadd.f32 %v5977_v3, %v950_v21 }
 0x1c2   : > { %v1316_v49 = vmax.f32 %v1300_v24, 0.0  ;;  %v783_v24 = vadd.f32 %v5933_v32, %v5912_v17  ;;  %v947_v32 = vadd.f32 %v5947_v42, %v728_v44  ;;  %v956_v19 = vadd.f32 %v5949_v43, %v763_v2 }
 0x1c3   : > { %v6042_v44 = vadd.f32 %v5963_v55, %v786_v15 }
 0x1c4   : > { %v1336_v12 = vrot.slane %v1316_v49, 1  ;;  %v945_v56 = vadd.f32 %v5957_v51, %v783_v24  ;;  %v1112_v42 = vadd.f32 %v5971_v1, %v947_v32 }
 0x1c5   : > { %v1234_v4 = vpop.f32.mrf.mxu2  ;;  %v6001_v10 = vpop.f32.mrf.mxu3  ;;  %v6946_v29 = vld [vmem:[#allocation31_spill] sm:$0xff] }
 0x1c6   : > { %v1344_v13 = vmax.f32 %v1316_v49, %v1336_v12  ;;  %v1278_v22 = vadd.f32 %v1234_v4, %v1113_v60  ;;  %v1173_v23 = vpop.f32.mrf.mxu0  ;;  %v1202_v0 = vpop.f32.mrf.mxu1 }
 0x1c7   : > { %v1272_v26 = vadd.f32 %v1173_v23, %v1107_v20  ;;  %v1273_v27 = vadd.f32 %v1202_v0, %v1108_v28  ;;  %v1121_v20 = vadd.f32 %v5973_v59, %v956_v19 }
 0x1c8   : > { %v1400_v37 = vrot.slane %v1344_v13, 1  ;;  %v1304_v14 = vadd.f32 %v5985_v9, %v1278_v22  ;;  %v1408_v33 = vrot.slane %v1344_v13, 2  ;;  %v1416_v51 = vrot.slane %v1344_v13, 3 }
 0x1c9   : > { %v1298_v30 = vadd.f32 %v6004_v62, %v1272_v26  ;;  %v1299_v17 = vadd.f32 %v6007_v63, %v1273_v27 }
 0x1ca   : > { %v1320_v38 = vmax.f32 %v1304_v14, 0.0  ;;  %v1509_v34 = vsel %vm1506_vm8, %v1344_v13, %v1400_v37  ;;  %v6945_v14 = vld [vmem:[#allocation30_spill] sm:$0xff] }
 0x1cb   : > { %v1314_v40 = vmax.f32 %v1298_v30, 0.0  ;;  %v1315_v45 = vmax.f32 %v1299_v17, 0.0  ;;  %v1513_v46 = vsel %vm489_vm2, %v1509_v34, %v1408_v33  ;;  %v1116_v15 = vadd.f32 %v6945_v14, %v951_v36  ;;  %v6947_v33 = vld [vmem:[#allocation32_spill] sm:$0xff] }
 0x1cc   : > { %v1352_v54 = vrot.slane %v1320_v38, 1  ;;  %v1518_v11 = vsel %vm1515_vm9, %v1513_v46, %v1416_v51  ;;  %v1110_v30 = vadd.f32 %v6946_v29, %v945_v56 }
 0x1cd   : > { %v1335_v57 = vrot.slane %v1315_v45, 1  ;;  %v1237_v60 = vpop.f32.mrf.mxu2  ;;  %v6035_v43 = vpop.f32.mrf.mxu3  ;;  %v1334_v47 = vrot.slane %v1314_v40, 1 }
 0x1ce   : > { %v1360_v2 = vmax.f32 %v1320_v38, %v1352_v54  ;;  %v1282_v4 = vadd.f32 %v1237_v60, %v1117_v39  ;;  %v1176_v48 = vpop.f32.mrf.mxu0  ;;  %v1205_v16 = vpop.f32.mrf.mxu1  ;;  %v1119_v38 = vadd.f32 %v6947_v33, %v954_v7  ;;  %v6948_v39 = vld [vmem:[#allocation33_spill] sm:$0xff]  ;;  %v6074_v60 = vperm.slane %v5982_v6, 3 }
 0x1cf   : > { %v1343_v58 = vmax.f32 %v1315_v45, %v1335_v57  ;;  %v1276_v31 = vadd.f32 %v1176_v48, %v1111_v41  ;;  %v1277_v49 = vadd.f32 %v1205_v16, %v1112_v42  ;;  %v6048_v13 = vmax.f32 %v1314_v40, %v1334_v47 }
 0x1d0   : > { %v1308_v61 = vadd.f32 %v5985_v9, %v1282_v4  ;;  %v1428_v5 = vrot.slane %v1360_v2, 4  ;;  %v1436_v1 = vrot.slane %v1360_v2, 5  ;;  %v1444_v23 = vrot.slane %v1360_v2, 6 }
 0x1d1   : > { %v1399_v12 = vrot.slane %v1343_v58, 1  ;;  %v1302_v28 = vadd.f32 %v6004_v62, %v1276_v31  ;;  %v1303_v50 = vadd.f32 %v6007_v63, %v1277_v49  ;;  %v1407_v22 = vrot.slane %v1343_v58, 2 }
 0x1d2   : > { %v1522_v52 = vsel %vm1140_vm7, %v1518_v11, %v1428_v5  ;;  %v1324_v0 = vmax.f32 %v1308_v61, 0.0  ;;  %v1452_v35 = vrot.slane %v1360_v2, 7  ;;  %v1398_v40 = vrot.slane %v6048_v13, 1 }
 0x1d3   : > { %v1318_v53 = vmax.f32 %v1302_v28, 0.0  ;;  %v1319_v24 = vmax.f32 %v1303_v50, 0.0  ;;  %v1526_v55 = vsel %vm975_vm6, %v1522_v52, %v1436_v1  ;;  %v1508_v59 = vsel %vm1506_vm8, %v1343_v58, %v1399_v12 }
 0x1d4   : > { %v1530_v37 = vsel %vm500_vm3, %v1526_v55, %v1444_v23  ;;  %v1368_v45 = vrot.slane %v1324_v0, 1  ;;  %v1512_v36 = vsel %vm489_vm2, %v1508_v59, %v1407_v22  ;;  %v6068_v54 = vadd.f32 %v6948_v39, %v955_v8 }
 0x1d5   : > { %v1240_v26 = vpop.f32.mrf.mxu2  ;;  %v6054_v27 = vpop.f32.mrf.mxu3  ;;  %v1351_v17 = vrot.slane %v1319_v24, 1  ;;  %v1350_v19 = vrot.slane %v1318_v53, 1  ;;  %v6061_v3 = vsel %vm537_vm4, %v1530_v37, %v1452_v35  ;;  %v1415_v56 = vrot.slane %v1343_v58, 3 }
 0x1d6   : > { %v1286_v18 = vadd.f32 %v1240_v26, %v1121_v20  ;;  %v1179_v32 = vpop.f32.mrf.mxu0  ;;  %1578 = vrot.lane.b32.xlu0 %v6061_v3, %s5536_s22  ;;  %v1406_v57 = vrot.slane %v6048_v13, 2  ;;  %v1208_v47 = vpop.f32.mrf.mxu1  ;;  %v1376_v49 = vmax.f32 %v1324_v0, %v1368_v45  ;;  %v1414_v7 = vrot.slane %v6048_v13, 3 }
 0x1d7   : > { %v1280_v34 = vadd.f32 %v1179_v32, %v1115_v25  ;;  %v1359_v21 = vmax.f32 %v1319_v24, %v1351_v17  ;;  %v1358_v48 = vmax.f32 %v1318_v53, %v1350_v19  ;;  %v1517_v31 = vsel %vm1515_vm9, %v1512_v36, %v1415_v56 }
 0x1d8   : > { %v1312_v41 = vadd.f32 %v5985_v9, %v1286_v18  ;;  %v1507_v9 = vsel %vm1506_vm8, %v6048_v13, %v1398_v40  ;;  %v1281_v8 = vadd.f32 %v1208_v47, %v1116_v15  ;;  %v1464_v0 = vrot.slane %v1376_v49, 1 }
 0x1d9   : > { %v1306_v42 = vadd.f32 %v6004_v62, %v1280_v34  ;;  %v1427_v2 = vrot.slane %v1359_v21, 4  ;;  %v1435_v4 = vrot.slane %v1359_v21, 5  ;;  %v1443_v51 = vrot.slane %v1359_v21, 6 }
 0x1da   : > { %v1328_v16 = vmax.f32 %v1312_v41, 0.0  ;;  %v1451_v28 = vrot.slane %v1359_v21, 7  ;;  %v1426_v23 = vrot.slane %v1358_v48, 4  ;;  %v1511_v52 = vsel %vm489_vm2, %v1507_v9, %v1406_v57  ;;  %v6949_v41 = vld [vmem:[#allocation24_spill] sm:$0xff] }
 0x1db   : > { %v1322_v46 = vmax.f32 %v1306_v42, 0.0  ;;  %v1521_v58 = vsel %vm1140_vm7, %v1517_v31, %v1427_v2  ;;  %v1434_v55 = vrot.slane %v1358_v48, 5  ;;  %v1114_v13 = vadd.f32 %v6001_v10, %v6042_v44  ;;  %v6950_v42 = vld [vmem:[#allocation26_spill] sm:$0xff] }
 0x1dc   : > { %v1384_v61 = vrot.slane %v1328_v16, 1  ;;  %v1525_v6 = vsel %vm975_vm6, %v1521_v58, %v1435_v4  ;;  %v1472_v25 = vrot.slane %v1376_v49, 2  ;;  %v1307_v35 = vadd.f32 %v6007_v63, %v1281_v8 }
 0x1dd   : > { %v1366_v5 = vrot.slane %v1322_v46, 1  ;;  %v1260_v1 = vpop.f32.mrf.mxu3  ;;  %v1529_v50 = vsel %vm500_vm3, %v1525_v6, %v1443_v51  ;;  %v1516_v15 = vsel %vm1515_vm9, %v1511_v52, %v1414_v7  ;;  %v1450_v17 = vrot.slane %v1358_v48, 7 }
 0x1de   : > { %v1275_v12 = vadd.f32 %v1260_v1, %v1110_v30  ;;  %v1182_v20 = vpop.f32.mrf.mxu0  ;;  %v6086_v24 = vsel %vm537_vm4, %v1529_v50, %v1451_v28  ;;  %v1392_v59 = vmax.f32 %v1328_v16, %v1384_v61  ;;  %v1442_v30 = vrot.slane %v1358_v48, 6  ;;  %v1211_v19 = vpop.f32.mrf.mxu1  ;;  %v6951_v61 = vld [vmem:[#allocation28_spill] sm:$0xff] }
 0x1df   : > { %v1374_v11 = vmax.f32 %v1322_v46, %v1366_v5  ;;  %v1284_v22 = vadd.f32 %v1182_v20, %v1119_v38  ;;  %1568 = vrot.lane.b32.xlu1 %v6086_v24, %s5536_s22  ;;  %v1520_v18 = vsel %vm1140_vm7, %v1516_v15, %v1426_v23  ;;  %v1538_v33 = vsel %vm1506_vm8, %v1376_v49, %v1464_v0 }
 0x1e0   : > { %v1301_v53 = vadd.f32 %v6074_v60, %v1275_v12  ;;  %v1524_v44 = vsel %vm975_vm6, %v1520_v18, %v1434_v55  ;;  %v1492_v38 = vrot.slane %v1392_v59, 4  ;;  %v1542_v45 = vsel %vm489_vm2, %v1538_v33, %v1472_v25 }
 0x1e1   : > { %v1462_v26 = vrot.slane %v1374_v11, 1  ;;  %v1310_v14 = vadd.f32 %v6004_v62, %v1284_v22  ;;  %v1470_v29 = vrot.slane %v1374_v11, 2  ;;  %v1528_v34 = vsel %vm500_vm3, %v1524_v44, %v1442_v30 }
 0x1e2   : > { %v1317_v37 = vmax.f32 %v1301_v53, 0.0  ;;  %v6102_v39 = vsel %vm537_vm4, %v1528_v34, %v1450_v17  ;;  %v789_v57 = vadd.f32 %v6950_v42, %v6949_v41  ;;  %v1323_v2 = vmax.f32 %v1307_v35, 0.0 }
 0x1e3   : > { %v1326_v10 = vmax.f32 %v1310_v14, 0.0  ;;  %v1536_v62 = vsel %vm1506_vm8, %v1374_v11, %v1462_v26  ;;  %1558 = vrot.lane.b32.xlu2 %v6102_v39, %s5536_s22  ;;  %v1480_v4 = vrot.slane %v1376_v49, 3  ;;  %v1285_v46 = vadd.f32 %v1211_v19, %v6068_v54  ;;  %v6954_v14 = vld [vmem:[#allocation29_spill] sm:$0xff] }
 0x1e4   : > { %v1337_v32 = vrot.slane %v1317_v37, 1  ;;  %v1540_v47 = vsel %vm489_vm2, %v1536_v62, %v1470_v29  ;;  %v1500_v31 = vrot.slane %v1392_v59, 5  ;;  %v1478_v58 = vrot.slane %v1374_v11, 3 }
 0x1e5   : > { %v1263_v40 = vpop.f32.mrf.mxu3  ;;  %v1382_v36 = vrot.slane %v1326_v10, 1  ;;  %v1546_v9 = vsel %vm1515_vm9, %v1542_v45, %v1480_v4  ;;  %v953_v5 = vadd.f32 %v6951_v61, %v789_v57  ;;  %v1311_v28 = vadd.f32 %v6007_v63, %v1285_v46 }
 0x1e6   : > { %v1345_v21 = vmax.f32 %v1317_v37, %v1337_v32  ;;  %v1279_v56 = vadd.f32 %v1263_v40, %v1114_v13  ;;  %v1550_v7 = vsel %vm1140_vm7, %v1546_v9, %v1492_v38  ;;  %v1544_v12 = vsel %vm1515_vm9, %v1540_v47, %v1478_v58  ;;  %v6953_v13 = vld [vmem:[#allocation27_spill] sm:$0xff] }
 0x1e7   : > { %v1390_v16 = vmax.f32 %v1326_v10, %v1382_v36  ;;  %v1118_v54 = vadd.f32 %v6035_v43, %v953_v5  ;;  %v1367_v11 = vrot.slane %v1323_v2, 1  ;;  %v6123_v0 = vsel %vm975_vm6, %v1550_v7, %v1500_v31  ;;  %v6952_v43 = vld [vmem:[#allocation25_spill] sm:$0xff] }
 0x1e8   : > { %v1401_v48 = vrot.slane %v1345_v21, 1  ;;  %v1305_v51 = vadd.f32 %v6074_v60, %v1279_v56  ;;  %v1409_v8 = vrot.slane %v1345_v21, 2  ;;  %v792_v25 = vadd.f32 %v6953_v13, %v6952_v43 }
 0x1e9   : > { %v1490_v1 = vrot.slane %v1390_v16, 4  ;;  %v1498_v6 = vrot.slane %v1390_v16, 5  ;;  %v1417_v26 = vrot.slane %v1345_v21, 3  ;;  %v1327_v35 = vmax.f32 %v1311_v28, 0.0 }
 0x1ea   : > { %v1321_v49 = vmax.f32 %v1305_v51, 0.0  ;;  %v1510_v20 = vsel %vm1506_vm8, %v1345_v21, %v1401_v48  ;;  %v957_v15 = vadd.f32 %v6954_v14, %v792_v25  ;;  %v1375_v29 = vmax.f32 %v1323_v2, %v1367_v11 }
 0x1eb   : > { %v1548_v50 = vsel %vm1140_vm7, %v1544_v12, %v1490_v1  ;;  %v1514_v63 = vsel %vm489_vm2, %v1510_v20, %v1409_v8  ;;  %v1383_v38 = vrot.slane %v1327_v35, 1 }
 0x1ec   : > { %v1353_v22 = vrot.slane %v1321_v49, 1  ;;  %v6120_v52 = vsel %vm975_vm6, %v1548_v50, %v1498_v6  ;;  %v1519_v32 = vsel %vm1515_vm9, %v1514_v63, %v1417_v26  ;;  %v1122_v10 = vadd.f32 %v6054_v27, %v957_v15 }
 0x1ed   : > { %v1266_v23 = vpop.f32.mrf.mxu3  ;;  %v5139_v55 = vpack.i.bf16 %v6123_v0, %v6120_v52  ;;  %v1463_v62 = vrot.slane %v1375_v29, 1  ;;  %v1471_v27 = vrot.slane %v1375_v29, 2  ;;  %v1391_v42 = vmax.f32 %v1327_v35, %v1383_v38 }
 0x1ee   : > { %v1283_v53 = vadd.f32 %v1266_v23, %v1118_v54  ;;  %v1361_v59 = vmax.f32 %v1321_v49, %v1353_v22  ;;  %v1479_v58 = vrot.slane %v1375_v29, 3 }
 0x1ef   : > { %5140 = vrot.lane.b32.xlu2 %v5139_v55, %s5536_s22  ;;  %v1537_v4 = vsel %vm1506_vm8, %v1375_v29, %v1463_v62  ;;  %v1491_v47 = vrot.slane %v1391_v42, 4  ;;  %v1499_v5 = vrot.slane %v1391_v42, 5  ;;  %v1944_v62 = vld [vmem:[#allocation7 + $0x640] sm:$0xff] }
 0x1f0   : > { %v1309_v37 = vadd.f32 %v6074_v60, %v1283_v53  ;;  %v1429_v30 = vrot.slane %v1361_v59, 4  ;;  %v1437_v17 = vrot.slane %v1361_v59, 5  ;;  %v1445_v44 = vrot.slane %v1361_v59, 6 }
 0x1f1   : > { %v1453_v34 = vrot.slane %v1361_v59, 7  ;;  %v1541_v51 = vsel %vm489_vm2, %v1537_v4, %v1471_v27 }
 0x1f2   : > { %v1325_v18 = vmax.f32 %v1309_v37, 0.0  ;;  %v1523_v33 = vsel %vm1140_vm7, %v1519_v32, %v1429_v30  ;;  %v1545_v6 = vsel %vm1515_vm9, %v1541_v51, %v1479_v58 }
 0x1f3   : > { %v1527_v40 = vsel %vm975_vm6, %v1523_v33, %v1437_v17  ;;  %v1549_v8 = vsel %vm1140_vm7, %v1545_v6, %v1491_v47 }
 0x1f4   : > { %v1369_v19 = vrot.slane %v1325_v18, 1  ;;  %v1531_v21 = vsel %vm500_vm3, %v1527_v40, %v1445_v44  ;;  %v1553_v54 = vsel %vm975_vm6, %v1549_v8, %v1499_v5  ;;  %v1945_v40 = vld [vmem:[#allocation7 + $0x648] sm:$0xff] }
 0x1f5   : > { %v1269_v45 = vpop.f32.mrf.mxu3  ;;  %v6139_v41 = vsel %vm537_vm4, %v1531_v21, %v1453_v34  ;;  %v1948_v34 = vld [vmem:[#allocation7 + $0x660] sm:$0xff] }
 0x1f6   : > { %v1377_v36 = vmax.f32 %v1325_v18, %v1369_v19  ;;  %v1287_v56 = vadd.f32 %v1269_v45, %v1122_v10  ;;  %1588 = vrot.lane.b32.xlu0 %v6139_v41, %s5536_s22  ;;  %v1949_v19 = vld [vmem:[#allocation7 + $0x668] sm:$0xff]  ;;  %2052 = vmatpush.msrb.mxu0 %v1948_v34  ;;  %v1940_v21 = vld [vmem:[#allocation7 + $0x620] sm:$0xff] }
 0x1f7   : > { %2121 = vmatpush.msra.mxu3 %v1949_v19  ;;  %v1941_v45 = vld [vmem:[#allocation7 + $0x628] sm:$0xff]  ;;  %v1916_v19 = vld [vmem:[#allocation7 + $0x560] sm:$0xff] }
 0x1f8   : > { %v1465_v57 = vrot.slane %v1377_v36, 1  ;;  %v1313_v2 = vadd.f32 %v6074_v60, %v1287_v56  ;;  %v1473_v48 = vrot.slane %v1377_v36, 2  ;;  %v1481_v1 = vrot.slane %v1377_v36, 3  ;;  %2053 = vmatpush.msrb.mxu0 %v1944_v62  ;;  %v2016_v34 = vld [vmem:[#allocation7 + $0x880] sm:$0xff] }
 0x1f9   : > { %2122 = vmatpush.msra.mxu3 %v1945_v40  ;;  %v1913_v40 = vld [vmem:[#allocation7 + $0x548] sm:$0xff]  ;;  %v1912_v62 = vld [vmem:[#allocation7 + $0x540] sm:$0xff] }
 0x1fa   : > { %v1329_v16 = vmax.f32 %v1313_v2, 0.0  ;;  %v1539_v46 = vsel %vm1506_vm8, %v1377_v36, %v1465_v57  ;;  %2054 = vmatpush.msrb.mxu0 %v1940_v21  ;;  %v2012_v21 = vld [vmem:[#allocation7 + $0x860] sm:$0xff] }
 0x1fb   : > { %v1543_v61 = vsel %vm489_vm2, %v1539_v46, %v1473_v48  ;;  %2123 = vmatpush.msra.mxu3 %v1941_v45  ;;  %v1950_v45 = vld [vmem:[#allocation7 + $0x670] sm:$0xff]  ;;  %2075 = vmatpush.msrb.mxu1 %v2012_v21 }
 0x1fc   : > { %v1385_v31 = vrot.slane %v1329_v16, 1  ;;  %v1547_v49 = vsel %vm1515_vm9, %v1543_v61, %v1481_v1  ;;  %v1894_v21 = vld [vmem:[#allocation7 + $0x4b0] sm:$0xff] }
 0x1fe   : > { %v1393_v9 = vmax.f32 %v1329_v16, %v1385_v31 }
 0x200   : > { %v1493_v7 = vrot.slane %v1393_v9, 4  ;;  %v1501_v60 = vrot.slane %v1393_v9, 5 }
 0x202   : > { %v1551_v12 = vsel %vm1140_vm7, %v1547_v49, %v1493_v7 }
 0x203   : > { %v1555_v20 = vsel %vm975_vm6, %v1551_v12, %v1501_v60 }
 0x204   : > { %v5144_v28 = vpack.i.bf16 %v1555_v20, %v1553_v54 }
 0x206   : > { %5145 = vrot.lane.b32.xlu2 %v5144_v28, %s5536_s22 }
 0x23d   : > { %v1559_v50 = vpop.permute.xlu2 %1558 }
 0x23e   : > { %v6156_v11 = vmax.f32 %v6102_v39, %v1559_v50 }
 0x240   : > { %1610 = vrot.lane.b32.xlu2 %v6156_v11, %s5537_s16  ;;  %1604 = vrot.lane.b32.xlu0 %v6156_v11, %s5538_s2 }
 0x248   : > { %v1579_v22 = vpop.permute.xlu0 %1578 }
 0x249   : > { %v5141_v23 = vpop.permute.xlu2 %5140  ;;  %v6162_v53 = vmax.f32 %v6061_v3, %v1579_v22 }
 0x24a   : > { %v5143_v55 = vunpack.i.h.bf16 %v5141_v23  ;;  %v5142_v43 = vunpack.i.l.bf16 %v5141_v23 }
 0x24b   : > { %1644 = vrot.lane.b32.xlu1 %v6162_v53, %s5536_s22 }
 0x24c   : > { %v6165_v13 = vmax.f32 %v6123_v0, %v5143_v55  ;;  %v6168_v39 = vmax.f32 %v6120_v52, %v5142_v43 }
 0x24e   : > { %v5159_v25 = vpack.i.bf16 %v6165_v13, %v6168_v39 }
 0x250   : > { %5160 = vrot.lane.b32.xlu0 %v5159_v25, %s5537_s16 }
 0x251   : > { %v1569_v59 = vpop.permute.xlu1 %1568 }
 0x252   : > { %v1574_v63 = vmax.f32 %v6086_v24, %v1569_v59 }
 0x253   : > { %1650 = vrot.lane.b32.xlu1 %v6162_v53, %s5538_s2 }
 0x254   : > { %1618 = vrot.lane.b32.xlu2 %v1574_v63, %s5539_s17 }
 0x25b   : > { %1656 = vrot.lane.b32.xlu1 %v6162_v53, %s5537_s16 }
 0x25c   : > { %1624 = vrot.lane.b32.xlu2 %v1574_v63, %s5540_s26 }
 0x260   : > { %v5146_v3 = vpop.permute.xlu2 %5145 }
 0x261   : > { %v5147_v52 = vunpack.i.l.bf16 %v5146_v3  ;;  %v5148_v0 = vunpack.i.h.bf16 %v5146_v3 }
 0x263   : > { %v1575_v26 = vmax.f32 %v1553_v54, %v5147_v52  ;;  %1598 = vrot.lane.b32.xlu1 %v6156_v11, %s5536_s22  ;;  %v1595_v24 = vmax.f32 %v1555_v20, %v5148_v0 }
 0x264   : > { %1630 = vrot.lane.b32.xlu2 %v1574_v63, %s5541_s29 }
 0x265   : > { %1632 = vrot.lane.b32.xlu0 %v1575_v26, %s5541_s29  ;;  %v5164_v35 = vpack.i.bf16 %v1595_v24, %v1575_v26  ;;  %v1937_v24 = vld [vmem:[#allocation7 + $0x608] sm:$0xff] }
 0x266   : > { %2124 = vmatpush.msra.mxu3 %v1937_v24  ;;  %v1910_v24 = vld [vmem:[#allocation7 + $0x530] sm:$0xff] }
 0x268   : > { %v1589_v37 = vpop.permute.xlu0 %1588 }
 0x269   : > { %v1594_v14 = vmax.f32 %v6139_v41, %v1589_v37  ;;  %v1933_v37 = vld [vmem:[#allocation7 + $0x5e8] sm:$0xff] }
 0x26a   : > { %2125 = vmatpush.msra.mxu3 %v1933_v37  ;;  %v1993_v37 = vld [vmem:[#allocation7 + $0x7c8] sm:$0xff] }
 0x26b   : > { %5155 = vrot.lane.b32.xlu1 %v5159_v25, %s5538_s2 }
 0x26c   : > { %5150 = vrot.lane.b32.xlu2 %v5159_v25, %s5536_s22 }
 0x26d   : > { %5165 = vrot.lane.b32.xlu0 %v5164_v35, %s5539_s17 }
 0x273   : > { %1664 = vrot.lane.b32.xlu1 %v1594_v14, %s5539_s17 }
 0x274   : > { %1636 = vrot.lane.b32.xlu2 %v1574_v63, %s5542_s27 }
 0x275   : > { %5170 = vrot.lane.b32.xlu0 %v5164_v35, %s5540_s26  ;;  %v1936_v35 = vld [vmem:[#allocation7 + $0x600] sm:$0xff] }
 0x276   : > { %2055 = vmatpush.msrb.mxu0 %v1936_v35  ;;  %v1994_v35 = vld [vmem:[#allocation7 + $0x7d0] sm:$0xff] }
 0x27b   : > { %1670 = vrot.lane.b32.xlu1 %v1594_v14, %s5540_s26  ;;  %v1932_v14 = vld [vmem:[#allocation7 + $0x5e0] sm:$0xff] }
 0x27c   : > { %2056 = vmatpush.msrb.mxu0 %v1932_v14 }
 0x27d   : > { %1638 = vrot.lane.b32.xlu0 %v1575_v26, %s5542_s27 }
 0x29a   : > { %v1611_v15 = vpop.permute.xlu2 %1610 }
 0x2ae   : > { %v1619_v29 = vpop.permute.xlu2 %1618 }
 0x2b2   : > { %v1605_v18 = vpop.permute.xlu0 %1604 }
 0x2b6   : > { %v1625_v30 = vpop.permute.xlu2 %1624 }
 0x2bd   : > { %v1645_v17 = vpop.permute.xlu1 %1644 }
 0x2be   : > { %v1631_v10 = vpop.permute.xlu2 %1630 }
 0x2c2   : > { %v5161_v44 = vpop.permute.xlu0 %5160 }
 0x2c3   : > { %v5162_v1 = vunpack.i.l.bf16 %v5161_v44  ;;  %v5163_v20 = vunpack.i.h.bf16 %v5161_v44  ;;  %v1920_v44 = vld [vmem:[#allocation7 + $0x580] sm:$0xff] }
 0x2c5   : > { %v1651_v32 = vpop.permute.xlu1 %1650 }
 0x2c6   : > { %v5151_v38 = vpop.permute.xlu2 %5150 }
 0x2c7   : > { %v5152_v31 = vunpack.i.l.bf16 %v5151_v38  ;;  %v5153_v58 = vunpack.i.h.bf16 %v5151_v38  ;;  %v1917_v38 = vld [vmem:[#allocation7 + $0x568] sm:$0xff] }
 0x2c9   : > { %v1678_v9 = vsel %vm1676_vm10, %v6168_v39, %v5152_v31  ;;  %v1697_v8 = vsel %vm1676_vm10, %v6165_v13, %v5153_v58  ;;  %v1996_v31 = vld [vmem:[#allocation7 + $0x7e0] sm:$0xff] }
 0x2ca   : > { %v1896_v58 = vld [vmem:[#allocation7 + $0x4c0] sm:$0xff] }
 0x2cd   : > { %v1657_v33 = vpop.permute.xlu1 %1656 }
 0x2ce   : > { %v1637_v4 = vpop.permute.xlu2 %1636 }
 0x2d5   : > { %v1599_v36 = vpop.permute.xlu1 %1598 }
 0x2d6   : > { %v1677_v41 = vsel %vm1676_vm10, %v6156_v11, %v1599_v36  ;;  %v1696_v11 = vsel %vm1676_vm10, %v6162_v53, %v1645_v17  ;;  %v1924_v17 = vld [vmem:[#allocation7 + $0x5a0] sm:$0xff]  ;;  %v1909_v36 = vld [vmem:[#allocation7 + $0x528] sm:$0xff] }
 0x2d7   : > { %v1633_v56 = vpop.permute.xlu0 %1632  ;;  %v1679_v27 = vsel %vm545_vm5, %v1677_v41, %v1605_v18  ;;  %v1698_v43 = vsel %vm545_vm5, %v1696_v11, %v1651_v32  ;;  %v2028_v18 = vld [vmem:[#allocation7 + $0x8e0] sm:$0xff]  ;;  %v2010_v11 = vld [vmem:[#allocation7 + $0x850] sm:$0xff] }
 0x2d8   : > { %v1682_v42 = vsel %vm1681_vm12, %v1679_v27, %v1611_v15  ;;  %v1700_v13 = vsel %vm1681_vm12, %v1698_v43, %v1657_v33  ;;  %v1929_v15 = vld [vmem:[#allocation7 + $0x5c8] sm:$0xff]  ;;  %v2024_v32 = vld [vmem:[#allocation7 + $0x8c0] sm:$0xff]  ;;  %2110 = vmatpush.msrb.mxu2 %v2028_v18  ;;  %v1946_v27 = vld [vmem:[#allocation7 + $0x650] sm:$0xff] }
 0x2d9   : > { %v1685_v57 = vsel %vm1684_vm11, %v1682_v42, %v1619_v29  ;;  %v1928_v29 = vld [vmem:[#allocation7 + $0x5c0] sm:$0xff]  ;;  %2126 = vmatpush.msra.mxu3 %v1929_v15  ;;  %v1905_v42 = vld [vmem:[#allocation7 + $0x508] sm:$0xff]  ;;  %v2006_v43 = vld [vmem:[#allocation7 + $0x830] sm:$0xff] }
 0x2da   : > { %v1688_v2 = vsel %vm1687_vm13, %v1685_v57, %v1625_v30  ;;  %v1925_v30 = vld [vmem:[#allocation7 + $0x5a8] sm:$0xff]  ;;  %2057 = vmatpush.msrb.mxu0 %v1928_v29  ;;  %v2020_v33 = vld [vmem:[#allocation7 + $0x8a0] sm:$0xff]  ;;  %2111 = vmatpush.msrb.mxu2 %v2024_v32  ;;  %v1990_v15 = vld [vmem:[#allocation7 + $0x7b0] sm:$0xff] }
 0x2db   : > { %v1691_v48 = vsel %vm1690_vm14, %v1688_v2, %v1631_v10  ;;  %v1921_v10 = vld [vmem:[#allocation7 + $0x588] sm:$0xff]  ;;  %2127 = vmatpush.msra.mxu3 %v1925_v30  ;;  %v2008_v41 = vld [vmem:[#allocation7 + $0x840] sm:$0xff]  ;;  %v1906_v30 = vld [vmem:[#allocation7 + $0x510] sm:$0xff] }
 0x2dc   : > { %v1694_v16 = vsel %vm1693_vm15, %v1691_v48, %v1637_v4  ;;  %2058 = vmatpush.msrb.mxu0 %v1924_v17  ;;  %2112 = vmatpush.msrb.mxu2 %v2020_v33  ;;  %v1904_v57 = vld [vmem:[#allocation7 + $0x500] sm:$0xff]  ;;  %v1942_v4 = vld [vmem:[#allocation7 + $0x630] sm:$0xff]  ;;  %v1989_v29 = vld [vmem:[#allocation7 + $0x7a8] sm:$0xff] }
 0x2dd   : > { %v5156_v46 = vpop.permute.xlu1 %5155  ;;  %1710 = vrot.lane.b32.xlu2 %v1694_v16, %s5541_s29  ;;  %2128 = vmatpush.msra.mxu3 %v1921_v10  ;;  %v2004_v2 = vld [vmem:[#allocation7 + $0x820] sm:$0xff]  ;;  %v1901_v16 = vld [vmem:[#allocation7 + $0x4e8] sm:$0xff]  ;;  %v1986_v17 = vld [vmem:[#allocation7 + $0x790] sm:$0xff] }
 0x2de   : > { %v5157_v51 = vunpack.i.l.bf16 %v5156_v46  ;;  %v5158_v61 = vunpack.i.h.bf16 %v5156_v46  ;;  %2059 = vmatpush.msrb.mxu0 %v1920_v44  ;;  %2113 = vmatpush.msrb.mxu2 %v2016_v34  ;;  %v2000_v48 = vld [vmem:[#allocation7 + $0x800] sm:$0xff]  ;;  %v1985_v18 = vld [vmem:[#allocation7 + $0x788] sm:$0xff]  ;;  %v1982_v32 = vld [vmem:[#allocation7 + $0x770] sm:$0xff] }
 0x2df   : > { %v5166_v47 = vpop.permute.xlu0 %5165  ;;  %2129 = vmatpush.msra.mxu3 %v1917_v38  ;;  %2076 = vmatpush.msrb.mxu1 %v2008_v41  ;;  %v1900_v46 = vld [vmem:[#allocation7 + $0x4e0] sm:$0xff]  ;;  %v1981_v10 = vld [vmem:[#allocation7 + $0x768] sm:$0xff]  ;;  %v1902_v44 = vld [vmem:[#allocation7 + $0x4f0] sm:$0xff] }
 0x2e0   : > { %v1680_v5 = vsel %vm545_vm5, %v1678_v9, %v5157_v51  ;;  %v5167_v6 = vunpack.i.l.bf16 %v5166_v47  ;;  %v1699_v54 = vsel %vm545_vm5, %v1697_v8, %v5158_v61  ;;  %v5168_v28 = vunpack.i.h.bf16 %v5166_v47  ;;  %2060 = vmatpush.msrb.mxu0 %v1916_v19  ;;  %2190 = vmatpush.msra.mxu2 %v1950_v45  ;;  %v1938_v47 = vld [vmem:[#allocation7 + $0x610] sm:$0xff]  ;;  %v1897_v51 = vld [vmem:[#allocation7 + $0x4c8] sm:$0xff]  ;;  %v1992_v61 = vld [vmem:[#allocation7 + $0x7c0] sm:$0xff] }
 0x2e1   : > { %v1683_v49 = vsel %vm1681_vm12, %v1680_v5, %v5162_v1  ;;  %v1701_v55 = vsel %vm1681_vm12, %v1699_v54, %v5163_v20  ;;  %2130 = vmatpush.msra.mxu3 %v1913_v40  ;;  %2077 = vmatpush.msrb.mxu1 %v2004_v2  ;;  %v1934_v9 = vld [vmem:[#allocation7 + $0x5f0] sm:$0xff]  ;;  %v1893_v5 = vld [vmem:[#allocation7 + $0x4a8] sm:$0xff]  ;;  %v1892_v1 = vld [vmem:[#allocation7 + $0x4a0] sm:$0xff]  ;;  %v6919_v54 = vmov 0.0  }
 0x2e2   : > { %v1686_v50 = vsel %vm1684_vm11, %v1683_v49, %v5167_v6  ;;  %v1703_v3 = vsel %vm1684_vm11, %v1701_v55, %v5168_v28  ;;  %2061 = vmatpush.msrb.mxu0 %v1912_v62  ;;  %2191 = vmatpush.msra.mxu2 %v1946_v27  ;;  %v1930_v6 = vld [vmem:[#allocation7 + $0x5d0] sm:$0xff]  ;;  %v1888_v8 = vld [vmem:[#allocation7 + $0x480] sm:$0xff]  ;;  %v6220_v20 = vrot.slane %v6919_v54, 6  ;;  %v1977_v19 = vld [vmem:[#allocation7 + $0x748] sm:$0xff] }
 0x2e3   : > { %2131 = vmatpush.msra.mxu3 %v1909_v36  ;;  %2078 = vmatpush.msrb.mxu1 %v2000_v48  ;;  %v2014_v49 = vld [vmem:[#allocation7 + $0x870] sm:$0xff]  ;;  %v1980_v55 = vld [vmem:[#allocation7 + $0x760] sm:$0xff]  ;;  %v1973_v45 = vld [vmem:[#allocation7 + $0x728] sm:$0xff] }
 0x2e4   : > { %2192 = vmatpush.msra.mxu2 %v1942_v4  ;;  %v1926_v28 = vld [vmem:[#allocation7 + $0x5b0] sm:$0xff]  ;;  %v1976_v33 = vld [vmem:[#allocation7 + $0x740] sm:$0xff]  ;;  %v1969_v41 = vld [vmem:[#allocation7 + $0x708] sm:$0xff] }
 0x2e5   : > { %v1665_v7 = vpop.permute.xlu1 %1664  ;;  %2132 = vmatpush.msra.mxu3 %v1905_v42  ;;  %2079 = vmatpush.msrb.mxu1 %v1996_v31  ;;  %v1978_v38 = vld [vmem:[#allocation7 + $0x750] sm:$0xff]  ;;  %v1972_v40 = vld [vmem:[#allocation7 + $0x720] sm:$0xff]  ;;  %v2031_v2 = vld [vmem:[#allocation7 + $0x8f8] sm:$0xff] }
 0x2e6   : > { %v1702_v39 = vsel %vm1684_vm11, %v1700_v13, %v1665_v7  ;;  %2193 = vmatpush.msra.mxu2 %v1938_v47  ;;  %v1988_v7 = vld [vmem:[#allocation7 + $0x7a0] sm:$0xff]  ;;  %v2005_v13 = vld [vmem:[#allocation7 + $0x828] sm:$0xff]  ;;  %v1898_v34 = vld [vmem:[#allocation7 + $0x4d0] sm:$0xff] }
 0x2e7   : > { %v5171_v60 = vpop.permute.xlu0 %5170  ;;  %2133 = vmatpush.msra.mxu3 %v1901_v16  ;;  %2080 = vmatpush.msrb.mxu1 %v1992_v61  ;;  %v1974_v62 = vld [vmem:[#allocation7 + $0x730] sm:$0xff]  ;;  %v1968_v36 = vld [vmem:[#allocation7 + $0x700] sm:$0xff]  ;;  %v1965_v4 = vld [vmem:[#allocation7 + $0x6e8] sm:$0xff] }
 0x2e8   : > { %v5172_v12 = vunpack.i.l.bf16 %v5171_v60  ;;  %v5173_v22 = vunpack.i.h.bf16 %v5171_v60  ;;  %v1889_v60 = vld [vmem:[#allocation7 + $0x488] sm:$0xff]  ;;  %2194 = vmatpush.msra.mxu2 %v1934_v9  ;;  %v1890_v27 = vld [vmem:[#allocation7 + $0x490] sm:$0xff]  ;;  %v1964_v42 = vld [vmem:[#allocation7 + $0x6e0] sm:$0xff] }
 0x2e9   : > { %2134 = vmatpush.msra.mxu3 %v1897_v51  ;;  %2081 = vmatpush.msrb.mxu1 %v1988_v7  ;;  %v1960_v48 = vld [vmem:[#allocation7 + $0x6c0] sm:$0xff]  ;;  %v1962_v16 = vld [vmem:[#allocation7 + $0x6d0] sm:$0xff]  ;;  %v1961_v47 = vld [vmem:[#allocation7 + $0x6c8] sm:$0xff] }
 0x2ea   : > { %v1689_v23 = vsel %vm1687_vm13, %v1686_v50, %v5172_v12  ;;  %v1705_v0 = vsel %vm1687_vm13, %v1703_v3, %v5173_v22  ;;  %v2013_v12 = vld [vmem:[#allocation7 + $0x868] sm:$0xff]  ;;  %2195 = vmatpush.msra.mxu2 %v1930_v6  ;;  %v1984_v50 = vld [vmem:[#allocation7 + $0x780] sm:$0xff]  ;;  %v1914_v3 = vld [vmem:[#allocation7 + $0x550] sm:$0xff] }
 0x2eb   : > { %v1692_v63 = vsel %vm1690_vm14, %v1689_v23, %v1633_v56  ;;  %v1908_v56 = vld [vmem:[#allocation7 + $0x520] sm:$0xff]  ;;  %2135 = vmatpush.msra.mxu3 %v1893_v5  ;;  %v2009_v22 = vld [vmem:[#allocation7 + $0x848] sm:$0xff]  ;;  %v1922_v23 = vld [vmem:[#allocation7 + $0x590] sm:$0xff]  ;;  %2082 = vmatpush.msrb.mxu1 %v1984_v50 }
 0x2ec   : > { %2062 = vmatpush.msrb.mxu0 %v1908_v56  ;;  %2196 = vmatpush.msra.mxu2 %v1926_v28  ;;  %v1970_v56 = vld [vmem:[#allocation7 + $0x710] sm:$0xff]  ;;  %v1956_v31 = vld [vmem:[#allocation7 + $0x6a0] sm:$0xff]  ;;  %v1957_v9 = vld [vmem:[#allocation7 + $0x6a8] sm:$0xff] }
 0x2ed   : > { %v1671_v25 = vpop.permute.xlu1 %1670  ;;  %2136 = vmatpush.msra.mxu3 %v1889_v60  ;;  %2083 = vmatpush.msrb.mxu1 %v1980_v55  ;;  %v1958_v51 = vld [vmem:[#allocation7 + $0x6b0] sm:$0xff]  ;;  %v1952_v61 = vld [vmem:[#allocation7 + $0x680] sm:$0xff]  ;;  %v1953_v6 = vld [vmem:[#allocation7 + $0x688] sm:$0xff] }
 0x2ee   : > { %v1704_v52 = vsel %vm1687_vm13, %v1702_v39, %v1671_v25  ;;  %2063 = vmatpush.msrb.mxu0 %v1904_v57  ;;  %v6224_v39 = vsel %vm489_vm2, 0.0, %v6220_v20  ;;  %v1918_v25 = vld [vmem:[#allocation7 + $0x570] sm:$0xff]  ;;  %2197 = vmatpush.msra.mxu2 %v1922_v23  ;;  %v2029_v7 = vld [vmem:[#allocation7 + $0x8e8] sm:$0xff] }
 0x2ef   : > { %v1639_v59 = vpop.permute.xlu0 %1638  ;;  %1712 = vrot.lane.b32.xlu0 %v1704_v52, %s5541_s29  ;;  %2213 = vmatpush.msrb.mxu3 %v2014_v49  ;;  %v2041_v52 = vrot.slane %v6224_v39, 1  ;;  %v1966_v57 = vld [vmem:[#allocation7 + $0x6f0] sm:$0xff]  ;;  %v2025_v60 = vld [vmem:[#allocation7 + $0x8c8] sm:$0xff] }
 0x2f0   : > { %v1695_v53 = vsel %vm1693_vm15, %v1692_v63, %v1639_v59  ;;  %2064 = vmatpush.msrb.mxu0 %v1900_v46  ;;  %v2002_v59 = vld [vmem:[#allocation7 + $0x810] sm:$0xff]  ;;  %v2001_v63 = vld [vmem:[#allocation7 + $0x808] sm:$0xff]  ;;  %2198 = vmatpush.msra.mxu2 %v1918_v25  ;;  %v2027_v46 = vld [vmem:[#allocation7 + $0x8d8] sm:$0xff] }
 0x2f1   : > { %v5174_v26 = vpack.i.bf16 %v1705_v0, %v1695_v53  ;;  %2214 = vmatpush.msrb.mxu3 %v2010_v11  ;;  %v6228_v53 = vrot.slane %v6220_v20, 1  ;;  %v1998_v0 = vld [vmem:[#allocation7 + $0x7f0] sm:$0xff]  ;;  %2084 = vmatpush.msrb.mxu1 %v1976_v33  ;;  %v2017_v49 = vld [vmem:[#allocation7 + $0x888] sm:$0xff]  ;;  %v1799_v33 = vld [vmem:[#allocation7 + $0x1c0] sm:$0xff] }
 0x2f2   : > { %2065 = vmatpush.msrb.mxu0 %v1896_v58  ;;  %2199 = vmatpush.msra.mxu2 %v1914_v3  ;;  %v2023_v58 = vld [vmem:[#allocation7 + $0x8b8] sm:$0xff]  ;;  %v1954_v5 = vld [vmem:[#allocation7 + $0x690] sm:$0xff] }
 0x2f3   : > { %5175 = vrot.lane.b32.xlu1 %v5174_v26, %s5541_s29  ;;  %2215 = vmatpush.msrb.mxu3 %v2006_v43  ;;  %v1997_v26 = vld [vmem:[#allocation7 + $0x7e8] sm:$0xff]  ;;  %v6232_v14 = vsel %vm537_vm4, %v2041_v52, %v6228_v53 }
 0x2f4   : > { %2066 = vmatpush.msrb.mxu0 %v1892_v1  ;;  %2200 = vmatpush.msra.mxu2 %v1910_v24  ;;  %v2019_v1 = vld [vmem:[#allocation7 + $0x898] sm:$0xff] }
 0x2f5   : > { %2216 = vmatpush.msrb.mxu3 %v2002_v59  ;;  %4942 = vmatmul.msk.f32.vlgmr.msrb.gmra.mxu2 %vm545_vm5, %v6232_v14 }
 0x2f6   : > { %2067 = vmatpush.msrb.mxu0 %v1888_v8  ;;  %2201 = vmatpush.msra.mxu2 %v1906_v30  ;;  %v2021_v8 = vld [vmem:[#allocation7 + $0x8a8] sm:$0xff] }
 0x2f7   : > { %2217 = vmatpush.msrb.mxu3 %v1998_v0  ;;  %2085 = vmatpush.msrb.mxu1 %v1972_v40  ;;  %v1795_v40 = vld [vmem:[#allocation7 + $0x1a0] sm:$0xff] }
 0x2f8   : > { %2144 = vmatpush.msra.mxu0 %v2013_v12  ;;  %2202 = vmatpush.msra.mxu2 %v1902_v44  ;;  %v2030_v44 = vld [vmem:[#allocation7 + $0x8f0] sm:$0xff] }
 0x2f9   : > { %2218 = vmatpush.msrb.mxu3 %v1994_v35  ;;  %2086 = vmatpush.msrb.mxu1 %v1968_v36  ;;  %v1791_v36 = vld [vmem:[#allocation7 + $0x180] sm:$0xff] }
 0x2fa   : > { %2145 = vmatpush.msra.mxu0 %v2009_v22  ;;  %2203 = vmatpush.msra.mxu2 %v1898_v34  ;;  %v2026_v34 = vld [vmem:[#allocation7 + $0x8d0] sm:$0xff] }
 0x2fb   : > { %2219 = vmatpush.msrb.mxu3 %v1990_v15  ;;  %2087 = vmatpush.msrb.mxu1 %v1964_v42  ;;  %v1851_v42 = vld [vmem:[#allocation7 + $0x360] sm:$0xff] }
 0x2fc   : > { %2146 = vmatpush.msra.mxu0 %v2005_v13  ;;  %2204 = vmatpush.msra.mxu2 %v1894_v21  ;;  %v2022_v21 = vld [vmem:[#allocation7 + $0x8b0] sm:$0xff] }
 0x2fd   : > { %2220 = vmatpush.msrb.mxu3 %v1986_v17  ;;  %4943 = vmatmul.msk.f32.gmra.mxu2 %vm545_vm5, %v6228_v53 }
 0x2fe   : > { %2147 = vmatpush.msra.mxu0 %v2001_v63  ;;  %2205 = vmatpush.msra.mxu2 %v1890_v27  ;;  %v1787_v27 = vld [vmem:[#allocation7 + $0x160] sm:$0xff] }
 0x2ff   : > { %2221 = vmatpush.msrb.mxu3 %v1982_v32  ;;  %2088 = vmatpush.msrb.mxu1 %v1960_v48  ;;  %v1867_v32 = vld [vmem:[#allocation7 + $0x3e0] sm:$0xff] }
 0x300   : > { %2148 = vmatpush.msra.mxu0 %v1997_v26  ;;  %2317 = vmatpush.msrb.mxu2 %v2031_v2  ;;  %v1783_v2 = vld [vmem:[#allocation7 + $0x140] sm:$0xff] }
 0x301   : > { %2222 = vmatpush.msrb.mxu3 %v1978_v38  ;;  %2089 = vmatpush.msrb.mxu1 %v1956_v31  ;;  %v1863_v38 = vld [vmem:[#allocation7 + $0x3c0] sm:$0xff]  ;;  %v1927_v31 = vld [vmem:[#allocation7 + $0x5b8] sm:$0xff] }
 0x302   : > { %2149 = vmatpush.msra.mxu0 %v1993_v37  ;;  %2318 = vmatpush.msrb.mxu2 %v2027_v46  ;;  %v1847_v48 = vld [vmem:[#allocation7 + $0x340] sm:$0xff] }
 0x303   : > { %2223 = vmatpush.msrb.mxu3 %v1974_v62  ;;  %2090 = vmatpush.msrb.mxu1 %v1952_v61  ;;  %v1859_v62 = vld [vmem:[#allocation7 + $0x3a0] sm:$0xff]  ;;  %v2015_v61 = vld [vmem:[#allocation7 + $0x878] sm:$0xff] }
 0x304   : > { %2150 = vmatpush.msra.mxu0 %v1989_v29  ;;  %2319 = vmatpush.msrb.mxu2 %v2023_v58  ;;  %v1779_v46 = vld [vmem:[#allocation7 + $0x120] sm:$0xff] }
 0x305   : > { %2224 = vmatpush.msrb.mxu3 %v1970_v56  ;;  %2179 = vmatpush.msra.mxu1 %v2029_v7  ;;  %v1855_v56 = vld [vmem:[#allocation7 + $0x380] sm:$0xff]  ;;  %v2011_v7 = vld [vmem:[#allocation7 + $0x858] sm:$0xff] }
 0x306   : > { %2151 = vmatpush.msra.mxu0 %v1985_v18  ;;  %2320 = vmatpush.msrb.mxu2 %v2019_v1  ;;  %v1803_v18 = vld [vmem:[#allocation7 + $0x1e0] sm:$0xff] }
 0x307   : > { %2225 = vmatpush.msrb.mxu3 %v1966_v57  ;;  %2180 = vmatpush.msra.mxu1 %v2025_v60  ;;  %v1935_v57 = vld [vmem:[#allocation7 + $0x5f8] sm:$0xff]  ;;  %v1839_v58 = vld [vmem:[#allocation7 + $0x300] sm:$0xff] }
 0x308   : > { %2152 = vmatpush.msra.mxu0 %v1981_v10  ;;  %v1951_v10 = vld [vmem:[#allocation7 + $0x678] sm:$0xff]  ;;  %v1835_v1 = vld [vmem:[#allocation7 + $0x2e0] sm:$0xff] }
 0x309   : > { %2226 = vmatpush.msrb.mxu3 %v1962_v16  ;;  %2181 = vmatpush.msra.mxu1 %v2021_v8  ;;  %v1931_v16 = vld [vmem:[#allocation7 + $0x5d8] sm:$0xff]  ;;  %v1767_v60 = vld [vmem:[#allocation7 + $0xc0] sm:$0xff] }
 0x30a   : > { %2153 = vmatpush.msra.mxu0 %v1977_v19  ;;  %v1947_v19 = vld [vmem:[#allocation7 + $0x658] sm:$0xff]  ;;  %v1831_v8 = vld [vmem:[#allocation7 + $0x2c0] sm:$0xff] }
 0x30b   : > { %2227 = vmatpush.msrb.mxu3 %v1958_v51  ;;  %2182 = vmatpush.msra.mxu1 %v2017_v49  ;;  %v1775_v51 = vld [vmem:[#allocation7 + $0x100] sm:$0xff]  ;;  %v1915_v49 = vld [vmem:[#allocation7 + $0x558] sm:$0xff] }
 0x30c   : > { %2154 = vmatpush.msra.mxu0 %v1973_v45  ;;  %v1943_v45 = vld [vmem:[#allocation7 + $0x638] sm:$0xff] }
 0x30d   : > { %2228 = vmatpush.msrb.mxu3 %v1954_v5  ;;  %v1771_v5 = vld [vmem:[#allocation7 + $0xe0] sm:$0xff] }
 0x30e   : > { %2155 = vmatpush.msra.mxu0 %v1969_v41  ;;  %v1939_v41 = vld [vmem:[#allocation7 + $0x618] sm:$0xff] }
 0x310   : > { %2156 = vmatpush.msra.mxu0 %v1965_v4  ;;  %v2018_v4 = vld [vmem:[#allocation7 + $0x890] sm:$0xff] }
 0x312   : > { %2157 = vmatpush.msra.mxu0 %v1961_v47  ;;  %v1843_v47 = vld [vmem:[#allocation7 + $0x320] sm:$0xff] }
 0x314   : > { %2158 = vmatpush.msra.mxu0 %v1957_v9  ;;  %v1923_v9 = vld [vmem:[#allocation7 + $0x598] sm:$0xff] }
 0x316   : > { %2159 = vmatpush.msra.mxu0 %v1953_v6  ;;  %v1919_v6 = vld [vmem:[#allocation7 + $0x578] sm:$0xff] }
 0x337   : > { %v1711_v12 = vpop.permute.xlu2 %1710 }
 0x338   : > { %v1722_v28 = vsel %vm545_vm5, 0.0, %v1711_v12 }
 0x339   : > { %v6240_v22 = vrot.slane %v1722_v28, 6  ;;  %v1763_v28 = vld [vmem:[#allocation7 + $0xa0] sm:$0xff] }
 0x33b   : > { %v6248_v52 = vsel %vm489_vm2, 0.0, %v6240_v22 }
 0x33c   : > { %v2035_v35 = vrot.slane %v6248_v52, 1 }
 0x361   : > { %v1713_v50 = vpop.permute.xlu0 %1712 }
 0x362   : > { %v1718_v11 = vsel %vm545_vm5, %v1711_v12, %v1713_v50  ;;  %v2007_v12 = vld [vmem:[#allocation7 + $0x838] sm:$0xff]  ;;  %v1827_v50 = vld [vmem:[#allocation7 + $0x2a0] sm:$0xff] }
 0x363   : > { %v6242_v23 = vrot.slane %v1718_v11, 6  ;;  %v1911_v11 = vld [vmem:[#allocation7 + $0x538] sm:$0xff] }
 0x365   : > { %v5176_v55 = vpop.permute.xlu1 %5175  ;;  %v6252_v0 = vsel %vm489_vm2, 0.0, %v6242_v23 }
 0x366   : > { %v5178_v43 = vunpack.i.h.bf16 %v5176_v55  ;;  %v5177_v13 = vunpack.i.l.bf16 %v5176_v55  ;;  %v2038_v15 = vrot.slane %v6252_v0, 1  ;;  %v2003_v55 = vld [vmem:[#allocation7 + $0x818] sm:$0xff] }
 0x368   : > { %v1719_v25 = vsel %vm545_vm5, %v5177_v13, %v5178_v43  ;;  %v1723_v59 = vsel %vm545_vm5, 0.0, %v5177_v13  ;;  %v1759_v43 = vld [vmem:[#allocation7 + $0x80] sm:$0xff] }
 0x369   : > { %v1730_v63 = vrot.slane %v1723_v59, 6  ;;  %v1732_v3 = vrot.slane %v1719_v25, 6  ;;  %v1823_v13 = vld [vmem:[#allocation7 + $0x280] sm:$0xff]  ;;  %v1907_v25 = vld [vmem:[#allocation7 + $0x518] sm:$0xff] }
 0x36a   : > { %v1999_v59 = vld [vmem:[#allocation7 + $0x7f8] sm:$0xff] }
 0x36b   : > { %v6256_v26 = vsel %vm489_vm2, %v6240_v22, %v1730_v63  ;;  %v6260_v24 = vsel %vm489_vm2, %v6242_v23, %v1732_v3  ;;  %v1755_v63 = vld [vmem:[#allocation7 + $0x60] sm:$0xff] }
 0x36c   : > { %v6264_v37 = vrot.slane %v6256_v26, 1  ;;  %v6268_v29 = vrot.slane %v6260_v24, 1  ;;  %v1819_v3 = vld [vmem:[#allocation7 + $0x260] sm:$0xff] }
 0x36e   : > { %v6272_v30 = vsel %vm537_vm4, %v2035_v35, %v6264_v37  ;;  %v6276_v17 = vsel %vm537_vm4, %v2038_v15, %v6268_v29  ;;  %v1903_v35 = vld [vmem:[#allocation7 + $0x4f8] sm:$0xff] }
 0x36f   : > { %2068 = vmatmul.f32.vlgmr.msrb.gmra.mxu0 %v6272_v30  ;;  %2091 = vmatmul.f32.vlgmr.msrb.gmra.mxu1 %v6276_v17  ;;  %v1995_v15 = vld [vmem:[#allocation7 + $0x7d8] sm:$0xff] }
 0x370   : > { %2137 = vmatmul.f32.vlgmr.msra.gmra.mxu3 %v6272_v30  ;;  %2206 = vmatmul.f32.vlgmr.msra.gmra.mxu2 %v6272_v30 }
 0x371   : > { %2332 = vmatpush.msra.mxu3 %v1803_v18  ;;  %2355 = vmatpush.msra.mxu2 %v1867_v32  ;;  %v1751_v18 = vld [vmem:[#allocation7 + $0x40] sm:$0xff] }
 0x372   : > { %2259 = vmatpush.msrb.mxu0 %v1951_v10  ;;  %2248 = vmatpush.msrb.mxu1 %v2030_v44  ;;  %v1815_v32 = vld [vmem:[#allocation7 + $0x240] sm:$0xff]  ;;  %v1899_v10 = vld [vmem:[#allocation7 + $0x4d8] sm:$0xff] }
 0x373   : > { %2333 = vmatpush.msra.mxu3 %v1799_v33  ;;  %2356 = vmatpush.msra.mxu2 %v1863_v38  ;;  %v1991_v44 = vld [vmem:[#allocation7 + $0x7b8] sm:$0xff]  ;;  %v1747_v33 = vld [vmem:[#allocation7 + $0x20] sm:$0xff] }
 0x374   : > { %2260 = vmatpush.msrb.mxu0 %v1947_v19  ;;  %2249 = vmatpush.msrb.mxu1 %v2026_v34  ;;  %v1811_v38 = vld [vmem:[#allocation7 + $0x220] sm:$0xff]  ;;  %v1895_v19 = vld [vmem:[#allocation7 + $0x4b8] sm:$0xff] }
 0x375   : > { %2334 = vmatpush.msra.mxu3 %v1795_v40  ;;  %2357 = vmatpush.msra.mxu2 %v1859_v62  ;;  %v1987_v34 = vld [vmem:[#allocation7 + $0x798] sm:$0xff]  ;;  %v1743_v40 = vld [vmem:[#allocation7] sm:$0xff] }
 0x376   : > { %2261 = vmatpush.msrb.mxu0 %v1943_v45  ;;  %2250 = vmatpush.msrb.mxu1 %v2022_v21  ;;  %v1807_v62 = vld [vmem:[#allocation7 + $0x200] sm:$0xff]  ;;  %v1891_v45 = vld [vmem:[#allocation7 + $0x498] sm:$0xff]  ;;  %v1868_v21 = vld [vmem:[#allocation7 + $0x3e8] sm:$0xff] }
 0x377   : > { %2335 = vmatpush.msra.mxu3 %v1791_v36  ;;  %2358 = vmatpush.msra.mxu2 %v1855_v56  ;;  %v1805_v36 = vld [vmem:[#allocation7 + $0x1f0] sm:$0xff]  ;;  %v1983_v56 = vld [vmem:[#allocation7 + $0x778] sm:$0xff] }
 0x378   : > { %2262 = vmatpush.msrb.mxu0 %v1939_v41  ;;  %2094 = vmatmul.f32.gmra.mxu1 %v6268_v29  ;;  %v2662_v41 = vld [vmem:[#allocation7 + $0xaa8] sm:$0xff] }
 0x379   : > { %2071 = vmatmul.f32.gmra.mxu0 %v6264_v37  ;;  %2140 = vmatmul.f32.gmra.mxu3 %v6264_v37 }
 0x37a   : > { %2209 = vmatmul.f32.gmra.mxu2 %v6264_v37  ;;  %2336 = vmatpush.msra.mxu3 %v1787_v27  ;;  %v1864_v27 = vld [vmem:[#allocation7 + $0x3c8] sm:$0xff] }
 0x37b   : > { %2359 = vmatpush.msra.mxu2 %v1851_v42  ;;  %2263 = vmatpush.msrb.mxu0 %v1935_v57  ;;  %v1801_v42 = vld [vmem:[#allocation7 + $0x1d0] sm:$0xff]  ;;  %v1979_v57 = vld [vmem:[#allocation7 + $0x758] sm:$0xff] }
 0x37c   : > { %2337 = vmatpush.msra.mxu3 %v1783_v2  ;;  %2251 = vmatpush.msrb.mxu1 %v2018_v4  ;;  %v1883_v2 = vld [vmem:[#allocation7 + $0x460] sm:$0xff]  ;;  %v1860_v4 = vld [vmem:[#allocation7 + $0x3a8] sm:$0xff] }
 0x37d   : > { %2360 = vmatpush.msra.mxu2 %v1847_v48  ;;  %2264 = vmatpush.msrb.mxu0 %v1931_v16  ;;  %v1797_v48 = vld [vmem:[#allocation7 + $0x1b0] sm:$0xff]  ;;  %v1879_v16 = vld [vmem:[#allocation7 + $0x440] sm:$0xff] }
 0x37e   : > { %2338 = vmatpush.msra.mxu3 %v1779_v46  ;;  %v1793_v46 = vld [vmem:[#allocation7 + $0x190] sm:$0xff] }
 0x37f   : > { %2361 = vmatpush.msra.mxu2 %v1843_v47  ;;  %2265 = vmatpush.msrb.mxu0 %v1927_v31  ;;  %v1971_v47 = vld [vmem:[#allocation7 + $0x718] sm:$0xff]  ;;  %v1875_v31 = vld [vmem:[#allocation7 + $0x420] sm:$0xff] }
 0x380   : > { %2339 = vmatpush.msra.mxu3 %v1775_v51  ;;  %4944 = vmatmul.msk.f32.vlgmr.msra.gmra.mxu1 %vm545_vm5, %v6232_v14  ;;  %v1852_v51 = vld [vmem:[#allocation7 + $0x368] sm:$0xff] }
 0x381   : > { %2362 = vmatpush.msra.mxu2 %v1839_v58  ;;  %2266 = vmatpush.msrb.mxu0 %v1923_v9  ;;  %v1789_v58 = vld [vmem:[#allocation7 + $0x170] sm:$0xff]  ;;  %v1967_v9 = vld [vmem:[#allocation7 + $0x6f8] sm:$0xff] }
 0x382   : > { %2160 = vmatmul.f32.vlgmr.msra.gmra.mxu0 %v6276_v17  ;;  %2229 = vmatmul.f32.vlgmr.msrb.gmra.mxu3 %v6276_v17 }
 0x383   : > { %2282 = vmatpush.msra.mxu1 %v2015_v61  ;;  %4948 = vmatmul.msk.f32.vlgmr.msrb.gmra.mxu2 %vm545_vm5, %v6232_v14  ;;  %v1871_v61 = vld [vmem:[#allocation7 + $0x400] sm:$0xff] }
 0x384   : > { %2340 = vmatpush.msra.mxu3 %v1771_v5  ;;  %2363 = vmatpush.msra.mxu2 %v1835_v1  ;;  %v1848_v5 = vld [vmem:[#allocation7 + $0x348] sm:$0xff] }
 0x385   : > { %2267 = vmatpush.msrb.mxu0 %v1919_v6  ;;  %2283 = vmatpush.msra.mxu1 %v2011_v7  ;;  %v1884_v1 = vld [vmem:[#allocation7 + $0x468] sm:$0xff]  ;;  %v1785_v6 = vld [vmem:[#allocation7 + $0x150] sm:$0xff]  ;;  %v1963_v7 = vld [vmem:[#allocation7 + $0x6d8] sm:$0xff] }
 0x386   : > { %2341 = vmatpush.msra.mxu3 %v1767_v60  ;;  %2364 = vmatpush.msra.mxu2 %v1831_v8  ;;  %v1844_v60 = vld [vmem:[#allocation7 + $0x328] sm:$0xff] }
 0x387   : > { %2268 = vmatpush.msrb.mxu0 %v1915_v49  ;;  %2284 = vmatpush.msra.mxu1 %v2007_v12  ;;  %v1880_v8 = vld [vmem:[#allocation7 + $0x448] sm:$0xff]  ;;  %v1781_v49 = vld [vmem:[#allocation7 + $0x130] sm:$0xff]  ;;  %v1959_v12 = vld [vmem:[#allocation7 + $0x6b8] sm:$0xff] }
 0x388   : > { %2342 = vmatpush.msra.mxu3 %v1763_v28  ;;  %2365 = vmatpush.msra.mxu2 %v1827_v50  ;;  %v1777_v28 = vld [vmem:[#allocation7 + $0x110] sm:$0xff]  ;;  %v1955_v50 = vld [vmem:[#allocation7 + $0x698] sm:$0xff] }
 0x389   : > { %2269 = vmatpush.msrb.mxu0 %v1911_v11  ;;  %2285 = vmatpush.msra.mxu1 %v2003_v55  ;;  %v1804_v11 = vld [vmem:[#allocation7 + $0x1e8] sm:$0xff] }
 0x38a   : > { %2343 = vmatpush.msra.mxu3 %v1759_v43  ;;  %2366 = vmatpush.msra.mxu2 %v1823_v13  ;;  %v1836_v55 = vld [vmem:[#allocation7 + $0x2e8] sm:$0xff]  ;;  %v1773_v13 = vld [vmem:[#allocation7 + $0xf0] sm:$0xff] }
 0x38b   : > { %2270 = vmatpush.msrb.mxu0 %v1907_v25  ;;  %4945 = vmatmul.msk.f32.gmra.mxu1 %vm545_vm5, %v6228_v53  ;;  %v1872_v43 = vld [vmem:[#allocation7 + $0x408] sm:$0xff]  ;;  %v1869_v25 = vld [vmem:[#allocation7 + $0x3f0] sm:$0xff] }
 0x38c   : > { %2163 = vmatmul.f32.gmra.mxu0 %v6268_v29  ;;  %2232 = vmatmul.f32.gmra.mxu3 %v6268_v29 }
 0x38d   : > { %2286 = vmatpush.msra.mxu1 %v1999_v59  ;;  %4949 = vmatmul.msk.f32.gmra.mxu2 %vm545_vm5, %v6228_v53  ;;  %v1800_v59 = vld [vmem:[#allocation7 + $0x1c8] sm:$0xff] }
 0x38e   : > { %2344 = vmatpush.msra.mxu3 %v1755_v63  ;;  %2367 = vmatpush.msra.mxu2 %v1819_v3  ;;  %v1832_v63 = vld [vmem:[#allocation7 + $0x2c8] sm:$0xff]  ;;  %v1769_v3 = vld [vmem:[#allocation7 + $0xd0] sm:$0xff] }
 0x38f   : > { %2271 = vmatpush.msrb.mxu0 %v1903_v35  ;;  %2287 = vmatpush.msra.mxu1 %v1995_v15  ;;  %v1865_v35 = vld [vmem:[#allocation7 + $0x3d0] sm:$0xff]  ;;  %v1796_v15 = vld [vmem:[#allocation7 + $0x1a8] sm:$0xff] }
 0x390   : > { %2345 = vmatpush.msra.mxu3 %v1751_v18  ;;  %2368 = vmatpush.msra.mxu2 %v1815_v32  ;;  %v1828_v18 = vld [vmem:[#allocation7 + $0x2a8] sm:$0xff]  ;;  %v1765_v32 = vld [vmem:[#allocation7 + $0xb0] sm:$0xff] }
 0x391   : > { %2272 = vmatpush.msrb.mxu0 %v1899_v10  ;;  %2288 = vmatpush.msra.mxu1 %v1991_v44  ;;  %v1861_v10 = vld [vmem:[#allocation7 + $0x3b0] sm:$0xff]  ;;  %v1792_v44 = vld [vmem:[#allocation7 + $0x188] sm:$0xff] }
 0x392   : > { %2346 = vmatpush.msra.mxu3 %v1747_v33  ;;  %2369 = vmatpush.msra.mxu2 %v1811_v38  ;;  %v1824_v33 = vld [vmem:[#allocation7 + $0x288] sm:$0xff]  ;;  %v1761_v38 = vld [vmem:[#allocation7 + $0x90] sm:$0xff] }
 0x393   : > { %2273 = vmatpush.msrb.mxu0 %v1895_v19  ;;  %2289 = vmatpush.msra.mxu1 %v1987_v34  ;;  %v1788_v19 = vld [vmem:[#allocation7 + $0x168] sm:$0xff] }
 0x394   : > { %2347 = vmatpush.msra.mxu3 %v1743_v40  ;;  %2370 = vmatpush.msra.mxu2 %v1807_v62  ;;  %v1820_v34 = vld [vmem:[#allocation7 + $0x268] sm:$0xff]  ;;  %v1757_v40 = vld [vmem:[#allocation7 + $0x70] sm:$0xff] }
 0x395   : > { %2274 = vmatpush.msrb.mxu0 %v1891_v45  ;;  %4946 = vmatmul.msk.f32.vlgmr.msrb.gmra.mxu1 %vm545_vm5, %v6232_v14  ;;  %v1975_v14 = vld [vmem:[#allocation7 + $0x738] sm:$0xff]  ;;  %v1853_v62 = vld [vmem:[#allocation7 + $0x370] sm:$0xff]  ;;  %v1784_v45 = vld [vmem:[#allocation7 + $0x148] sm:$0xff] }
 0x396   : > { %2424 = vmatpush.msrb.mxu3 %v1868_v21  ;;  %2470 = vmatpush.msrb.mxu2 %v1805_v36  ;;  %v1816_v21 = vld [vmem:[#allocation7 + $0x248] sm:$0xff]  ;;  %v1753_v36 = vld [vmem:[#allocation7 + $0x50] sm:$0xff] }
 0x397   : > { %2275 = vmatmul.f32.vlgmr.msrb.gmra.mxu0 %v6272_v30  ;;  %2290 = vmatpush.msra.mxu1 %v1983_v56  ;;  %v1856_v30 = vld [vmem:[#allocation7 + $0x388] sm:$0xff]  ;;  %v1849_v56 = vld [vmem:[#allocation7 + $0x350] sm:$0xff] }
 0x398   : > { %4951 = vmatmul.msk.f32.vlgmr.msra.gmra.mxu3 %vm6299_vm0, %v6240_v22  ;;  %4953 = vmatmul.msk.f32.vlgmr.msra.gmra.mxu2 %vm6299_vm0, %v6242_v23 }
 0x399   : > { %2425 = vmatpush.msrb.mxu3 %v1864_v27  ;;  %2471 = vmatpush.msrb.mxu2 %v1801_v42  ;;  %v1780_v27 = vld [vmem:[#allocation7 + $0x128] sm:$0xff] }
 0x39a   : > { %2291 = vmatpush.msra.mxu1 %v1979_v57  ;;  %2390 = vmatpush.msra.mxu0 %v1883_v2  ;;  %v1812_v42 = vld [vmem:[#allocation7 + $0x228] sm:$0xff]  ;;  %v1749_v57 = vld [vmem:[#allocation7 + $0x30] sm:$0xff] }
 0x39b   : > { %2426 = vmatpush.msrb.mxu3 %v1860_v4  ;;  %2472 = vmatpush.msrb.mxu2 %v1797_v48  ;;  %v1845_v2 = vld [vmem:[#allocation7 + $0x330] sm:$0xff]  ;;  %v1776_v4 = vld [vmem:[#allocation7 + $0x108] sm:$0xff] }
 0x39c   : > { %2292 = vmatpush.msra.mxu1 %v1975_v14  ;;  %2391 = vmatpush.msra.mxu0 %v1879_v16  ;;  %v1808_v48 = vld [vmem:[#allocation7 + $0x208] sm:$0xff]  ;;  %v1745_v14 = vld [vmem:[#allocation7 + $0x10] sm:$0xff]  ;;  %v1806_v16 = vld [vmem:[#allocation7 + $0x1f8] sm:$0xff] }
 0x39d   : > { %2427 = vmatpush.msrb.mxu3 %v1856_v30  ;;  %2473 = vmatpush.msrb.mxu2 %v1793_v46  ;;  %v1886_v30 = vld [vmem:[#allocation7 + $0x478] sm:$0xff]  ;;  %v1772_v46 = vld [vmem:[#allocation7 + $0xe8] sm:$0xff] }
 0x39e   : > { %2293 = vmatpush.msra.mxu1 %v1971_v47  ;;  %2392 = vmatpush.msra.mxu0 %v1875_v31  ;;  %v1802_v47 = vld [vmem:[#allocation7 + $0x1d8] sm:$0xff]  ;;  %v1837_v31 = vld [vmem:[#allocation7 + $0x2f0] sm:$0xff] }
 0x39f   : > { %2428 = vmatpush.msrb.mxu3 %v1852_v51  ;;  %2474 = vmatpush.msrb.mxu2 %v1789_v58  ;;  %v1882_v51 = vld [vmem:[#allocation7 + $0x458] sm:$0xff]  ;;  %v1768_v58 = vld [vmem:[#allocation7 + $0xc8] sm:$0xff] }
 0x3a0   : > { %4947 = vmatmul.msk.f32.gmra.mxu1 %vm545_vm5, %v6228_v53  ;;  %2278 = vmatmul.f32.gmra.mxu0 %v6264_v37  ;;  %v1840_v53 = vld [vmem:[#allocation7 + $0x308] sm:$0xff] }
 0x3a1   : > { %2294 = vmatpush.msra.mxu1 %v1967_v9  ;;  %2351 = vmatmul.f32.gmra.mxu3 %v6256_v26  ;;  %v1876_v37 = vld [vmem:[#allocation7 + $0x428] sm:$0xff]  ;;  %v1798_v9 = vld [vmem:[#allocation7 + $0x1b8] sm:$0xff] }
 0x3a2   : > { %2374 = vmatmul.f32.gmra.mxu2 %v6260_v24  ;;  %2393 = vmatpush.msra.mxu0 %v1871_v61  ;;  %v1833_v61 = vld [vmem:[#allocation7 + $0x2d0] sm:$0xff] }
 0x3a3   : > { %2429 = vmatpush.msrb.mxu3 %v1848_v5  ;;  %2475 = vmatpush.msrb.mxu2 %v1785_v6  ;;  %v1878_v5 = vld [vmem:[#allocation7 + $0x438] sm:$0xff] }
 0x3a4   : > { %2459 = vmatpush.msrb.mxu0 %v1884_v1  ;;  %2295 = vmatpush.msra.mxu1 %v1963_v7  ;;  %v1764_v1 = vld [vmem:[#allocation7 + $0xa8] sm:$0xff]  ;;  %v1794_v6 = vld [vmem:[#allocation7 + $0x198] sm:$0xff]  ;;  %v1829_v7 = vld [vmem:[#allocation7 + $0x2b0] sm:$0xff] }
 0x3a5   : > { %2430 = vmatpush.msrb.mxu3 %v1844_v60  ;;  %2476 = vmatpush.msrb.mxu2 %v1781_v49  ;;  %v1874_v60 = vld [vmem:[#allocation7 + $0x418] sm:$0xff]  ;;  %v2733_v49 = vld [vmem:[#allocation7 + $0xce0] sm:$0xff] }
 0x3a6   : > { %2460 = vmatpush.msrb.mxu0 %v1880_v8  ;;  %2296 = vmatpush.msra.mxu1 %v1959_v12  ;;  %v1760_v8 = vld [vmem:[#allocation7 + $0x88] sm:$0xff]  ;;  %v1825_v12 = vld [vmem:[#allocation7 + $0x290] sm:$0xff] }
 0x3a7   : > { %2431 = vmatpush.msrb.mxu3 %v1840_v53  ;;  %2477 = vmatpush.msrb.mxu2 %v1777_v28  ;;  %v1790_v53 = vld [vmem:[#allocation7 + $0x178] sm:$0xff]  ;;  %v2729_v28 = vld [vmem:[#allocation7 + $0xcc0] sm:$0xff] }
 0x3a8   : > { %2461 = vmatpush.msrb.mxu0 %v1876_v37  ;;  %2297 = vmatpush.msra.mxu1 %v1955_v50  ;;  %v1756_v37 = vld [vmem:[#allocation7 + $0x68] sm:$0xff]  ;;  %v1786_v50 = vld [vmem:[#allocation7 + $0x158] sm:$0xff] }
 0x3a9   : > { %2432 = vmatpush.msrb.mxu3 %v1836_v55  ;;  %2478 = vmatpush.msrb.mxu2 %v1773_v13  ;;  %v1752_v55 = vld [vmem:[#allocation7 + $0x48] sm:$0xff]  ;;  %v1782_v13 = vld [vmem:[#allocation7 + $0x138] sm:$0xff] }
 0x3aa   : > { %2401 = vmatpush.msrb.mxu1 %v1804_v11  ;;  %2462 = vmatpush.msrb.mxu0 %v1872_v43  ;;  %v1821_v11 = vld [vmem:[#allocation7 + $0x270] sm:$0xff]  ;;  %v2725_v43 = vld [vmem:[#allocation7 + $0xca0] sm:$0xff] }
 0x3ab   : > { %2298 = vmatmul.f32.vlgmr.msra.gmra.mxu1 %v6276_v17  ;;  %4954 = vmatmul.msk.f32.vlgmr.msra.gmra.mxu0 %vm545_vm5, %v6224_v39  ;;  %v1857_v17 = vld [vmem:[#allocation7 + $0x390] sm:$0xff] }
 0x3ac   : > { %2493 = vmatpush.msra.mxu0 %v1869_v25  ;;  %2402 = vmatpush.msrb.mxu1 %v1800_v59  ;;  %v1817_v25 = vld [vmem:[#allocation7 + $0x250] sm:$0xff]  ;;  %v1748_v59 = vld [vmem:[#allocation7 + $0x28] sm:$0xff] }
 0x3ad   : > { %2433 = vmatpush.msrb.mxu3 %v1832_v63  ;;  %2479 = vmatpush.msrb.mxu2 %v1769_v3  ;;  %v2721_v63 = vld [vmem:[#allocation7 + $0xc80] sm:$0xff]  ;;  %v1778_v3 = vld [vmem:[#allocation7 + $0x118] sm:$0xff] }
 0x3ae   : > { %2494 = vmatpush.msra.mxu0 %v1865_v35  ;;  %2403 = vmatpush.msrb.mxu1 %v1796_v15  ;;  %v1813_v35 = vld [vmem:[#allocation7 + $0x230] sm:$0xff]  ;;  %v1744_v15 = vld [vmem:[#allocation7 + $0x8] sm:$0xff] }
 0x3af   : > { %2434 = vmatpush.msrb.mxu3 %v1828_v18  ;;  %2480 = vmatpush.msrb.mxu2 %v1765_v32  ;;  %v2717_v18 = vld [vmem:[#allocation7 + $0xc60] sm:$0xff]  ;;  %v1809_v32 = vld [vmem:[#allocation7 + $0x210] sm:$0xff] }
 0x3b0   : > { %2495 = vmatpush.msra.mxu0 %v1861_v10  ;;  %2404 = vmatpush.msrb.mxu1 %v1792_v44  ;;  %v1885_v10 = vld [vmem:[#allocation7 + $0x470] sm:$0xff]  ;;  %v1774_v44 = vld [vmem:[#allocation7 + $0xf8] sm:$0xff] }
 0x3b1   : > { %2435 = vmatpush.msrb.mxu3 %v1824_v33  ;;  %2481 = vmatpush.msrb.mxu2 %v1761_v38  ;;  %v2669_v33 = vld [vmem:[#allocation7 + $0xae0] sm:$0xff] }
 0x3b2   : > { %2496 = vmatpush.msra.mxu0 %v1857_v17  ;;  %2405 = vmatpush.msrb.mxu1 %v1788_v19  ;;  %v2713_v38 = vld [vmem:[#allocation7 + $0xc40] sm:$0xff]  ;;  %v1881_v17 = vld [vmem:[#allocation7 + $0x450] sm:$0xff]  ;;  %v1770_v19 = vld [vmem:[#allocation7 + $0xd8] sm:$0xff] }
 0x3b3   : > { %2436 = vmatpush.msrb.mxu3 %v1820_v34  ;;  %2482 = vmatpush.msrb.mxu2 %v1757_v40  ;;  %v2665_v34 = vld [vmem:[#allocation7 + $0xac0] sm:$0xff] }
 0x3b4   : > { %2301 = vmatmul.f32.gmra.mxu1 %v6268_v29  ;;  %4955 = vmatmul.msk.f32.gmra.mxu0 %vm545_vm5, %v6220_v20  ;;  %v1841_v29 = vld [vmem:[#allocation7 + $0x310] sm:$0xff]  ;;  %v2709_v40 = vld [vmem:[#allocation7 + $0xc20] sm:$0xff] }
 0x3b5   : > { %2497 = vmatpush.msra.mxu0 %v1853_v62  ;;  %2406 = vmatpush.msrb.mxu1 %v1784_v45  ;;  %v1877_v62 = vld [vmem:[#allocation7 + $0x430] sm:$0xff]  ;;  %v1766_v45 = vld [vmem:[#allocation7 + $0xb8] sm:$0xff] }
 0x3b6   : > { %2437 = vmatpush.msrb.mxu3 %v1816_v21  ;;  %2483 = vmatpush.msrb.mxu2 %v1753_v36  ;;  %v2661_v21 = vld [vmem:[#allocation7 + $0xaa0] sm:$0xff] }
 0x3b7   : > { %2498 = vmatpush.msra.mxu0 %v1849_v56  ;;  %2407 = vmatpush.msrb.mxu1 %v1780_v27  ;;  %v2705_v36 = vld [vmem:[#allocation7 + $0xc00] sm:$0xff]  ;;  %v1873_v56 = vld [vmem:[#allocation7 + $0x410] sm:$0xff]  ;;  %v1762_v27 = vld [vmem:[#allocation7 + $0x98] sm:$0xff] }
 0x3b8   : > { %2438 = vmatpush.msrb.mxu3 %v1812_v42  ;;  %2484 = vmatpush.msrb.mxu2 %v1749_v57  ;;  %v1870_v42 = vld [vmem:[#allocation7 + $0x3f8] sm:$0xff]  ;;  %v2657_v57 = vld [vmem:[#allocation7 + $0xa80] sm:$0xff] }
 0x3b9   : > { %2499 = vmatpush.msra.mxu0 %v1845_v2  ;;  %2408 = vmatpush.msrb.mxu1 %v1776_v4  ;;  %v2701_v2 = vld [vmem:[#allocation7 + $0xbe0] sm:$0xff]  ;;  %v1758_v4 = vld [vmem:[#allocation7 + $0x78] sm:$0xff] }
 0x3ba   : > { %2439 = vmatpush.msrb.mxu3 %v1808_v48  ;;  %2485 = vmatpush.msrb.mxu2 %v1745_v14  ;;  %v1866_v48 = vld [vmem:[#allocation7 + $0x3d8] sm:$0xff]  ;;  %v2653_v14 = vld [vmem:[#allocation7 + $0xa60] sm:$0xff] }
 0x3bb   : > { %4959 = vmatmul.msk.f32.vlgmr.msrb.gmra.mxu3 %vm6299_vm0, %v6242_v23  ;;  %4963 = vmatmul.msk.f32.vlgmr.msrb.gmra.mxu2 %vm6299_vm0, %v6240_v22 }
 0x3bc   : > { %2500 = vmatpush.msra.mxu0 %v1841_v29  ;;  %2539 = vmatpush.msra.mxu3 %v1806_v16  ;;  %v2697_v29 = vld [vmem:[#allocation7 + $0xbc0] sm:$0xff]  ;;  %v1754_v16 = vld [vmem:[#allocation7 + $0x58] sm:$0xff] }
 0x3bd   : > { %2597 = vmatpush.msra.mxu2 %v1886_v30  ;;  %2409 = vmatpush.msrb.mxu1 %v1772_v46  ;;  %v1862_v30 = vld [vmem:[#allocation7 + $0x3b8] sm:$0xff]  ;;  %v2649_v46 = vld [vmem:[#allocation7 + $0xa40] sm:$0xff] }
 0x3be   : > { %4960 = vmatmul.msk.f32.vlgmr.msrb.gmra.mxu0 %vm545_vm5, %v6224_v39  ;;  %2540 = vmatpush.msra.mxu3 %v1802_v47  ;;  %v2693_v47 = vld [vmem:[#allocation7 + $0xba0] sm:$0xff] }
 0x3bf   : > { %2501 = vmatpush.msra.mxu0 %v1837_v31  ;;  %2598 = vmatpush.msra.mxu2 %v1882_v51  ;;  %v1750_v31 = vld [vmem:[#allocation7 + $0x38] sm:$0xff] }
 0x3c0   : > { %2410 = vmatpush.msrb.mxu1 %v1768_v58  ;;  %2541 = vmatpush.msra.mxu3 %v1798_v9  ;;  %v1858_v51 = vld [vmem:[#allocation7 + $0x398] sm:$0xff]  ;;  %v2645_v58 = vld [vmem:[#allocation7 + $0xa20] sm:$0xff] }
 0x3c1   : > { %2502 = vmatpush.msra.mxu0 %v1833_v61  ;;  %2599 = vmatpush.msra.mxu2 %v1878_v5  ;;  %v2689_v9 = vld [vmem:[#allocation7 + $0xb80] sm:$0xff]  ;;  %v1746_v61 = vld [vmem:[#allocation7 + $0x18] sm:$0xff] }
 0x3c2   : > { %2411 = vmatpush.msrb.mxu1 %v1764_v1  ;;  %2542 = vmatpush.msra.mxu3 %v1794_v6  ;;  %v1854_v5 = vld [vmem:[#allocation7 + $0x378] sm:$0xff]  ;;  %v2641_v1 = vld [vmem:[#allocation7 + $0xa00] sm:$0xff] }
 0x3c3   : > { %2503 = vmatpush.msra.mxu0 %v1829_v7  ;;  %2600 = vmatpush.msra.mxu2 %v1874_v60  ;;  %v2685_v6 = vld [vmem:[#allocation7 + $0xb60] sm:$0xff]  ;;  %v1850_v60 = vld [vmem:[#allocation7 + $0x358] sm:$0xff] }
 0x3c4   : > { %2412 = vmatpush.msrb.mxu1 %v1760_v8  ;;  %2443 = vmatmul.f32.gmra.mxu3 %v6260_v24  ;;  %v2749_v7 = vld [vmem:[#allocation7 + $0xd60] sm:$0xff] }
 0x3c5   : > { %2793 = vmatpush.msrb.mxu2 %v2733_v49  ;;  %2504 = vmatpush.msra.mxu0 %v1825_v12  ;;  %v2637_v8 = vld [vmem:[#allocation7 + $0x9e0] sm:$0xff] }
 0x3c6   : > { %2489 = vmatmul.f32.gmra.mxu2 %v6256_v26  ;;  %2543 = vmatpush.msra.mxu3 %v1790_v53  ;;  %v2681_v49 = vld [vmem:[#allocation7 + $0xb40] sm:$0xff]  ;;  %v1846_v53 = vld [vmem:[#allocation7 + $0x338] sm:$0xff] }
 0x3c7   : > { %2413 = vmatpush.msrb.mxu1 %v1756_v37  ;;  %2794 = vmatpush.msrb.mxu2 %v2729_v28  ;;  %v2745_v12 = vld [vmem:[#allocation7 + $0xd40] sm:$0xff] }
 0x3c8   : > { %4961 = vmatmul.msk.f32.gmra.mxu0 %vm545_vm5, %v6220_v20  ;;  %2544 = vmatpush.msra.mxu3 %v1786_v50  ;;  %v2633_v37 = vld [vmem:[#allocation7 + $0x9c0] sm:$0xff] }
 0x3c9   : > { %2505 = vmatpush.msra.mxu0 %v1821_v11  ;;  %2414 = vmatpush.msrb.mxu1 %v1752_v55  ;;  %v2677_v28 = vld [vmem:[#allocation7 + $0xb20] sm:$0xff]  ;;  %v6353_v55 = vrot.slane %v6260_v24, 2 }
 0x3ca   : > { %2795 = vmatpush.msrb.mxu2 %v2725_v43  ;;  %2545 = vmatpush.msra.mxu3 %v1782_v13  ;;  %v2741_v50 = vld [vmem:[#allocation7 + $0xd20] sm:$0xff] }
 0x3cb   : > { %2506 = vmatpush.msra.mxu0 %v1817_v25  ;;  %2415 = vmatpush.msrb.mxu1 %v1748_v59  ;;  %v2629_v11 = vld [vmem:[#allocation7 + $0x9a0] sm:$0xff]  ;;  %v2756_v25 = vrot.slane %v6252_v0, 2  ;;  %v2734_v59 = vld [vmem:[#allocation7 + $0xce8] sm:$0xff] }
 0x3cc   : > { %2796 = vmatpush.msrb.mxu2 %v2721_v63  ;;  %2546 = vmatpush.msra.mxu3 %v1778_v3  ;;  %v2673_v43 = vld [vmem:[#allocation7 + $0xb00] sm:$0xff]  ;;  %v2671_v63 = vld [vmem:[#allocation7 + $0xaf0] sm:$0xff] }
 0x3cd   : > { %2507 = vmatpush.msra.mxu0 %v1813_v35  ;;  %2416 = vmatpush.msrb.mxu1 %v1744_v15  ;;  %v2737_v13 = vld [vmem:[#allocation7 + $0xd00] sm:$0xff]  ;;  %v6358_v3 = vsel %vm500_vm3, %v2756_v25, %v6353_v55  ;;  %v1838_v35 = vld [vmem:[#allocation7 + $0x2f8] sm:$0xff]  ;;  %v2658_v25 = vld [vmem:[#allocation7 + $0xa88] sm:$0xff] }
 0x3ce   : > { %2797 = vmatpush.msrb.mxu2 %v2717_v18  ;;  %4957 = vmatmul.msk.f32.vlgmr.msrb.gmra.mxu1 %vm6299_vm0, %v6240_v22  ;;  %v2625_v15 = vld [vmem:[#allocation7 + $0x980] sm:$0xff]  ;;  %v2730_v18 = vld [vmem:[#allocation7 + $0xcc8] sm:$0xff] }
 0x3cf   : > { %2508 = vmatpush.msra.mxu0 %v1809_v32  ;;  %2528 = vmatpush.msra.mxu1 %v1885_v10  ;;  %v2667_v32 = vld [vmem:[#allocation7 + $0xad0] sm:$0xff]  ;;  %v1834_v10 = vld [vmem:[#allocation7 + $0x2d8] sm:$0xff] }
 0x3d0   : > { %2547 = vmatpush.msra.mxu3 %v1774_v44  ;;  %2798 = vmatpush.msrb.mxu2 %v2713_v38  ;;  %v2621_v44 = vld [vmem:[#allocation7 + $0x960] sm:$0xff]  ;;  %v2663_v38 = vld [vmem:[#allocation7 + $0xab0] sm:$0xff] }
 0x3d1   : > { %2770 = vmatpush.msrb.mxu0 %v2669_v33  ;;  %2529 = vmatpush.msra.mxu1 %v1881_v17  ;;  %v2726_v33 = vld [vmem:[#allocation7 + $0xca8] sm:$0xff]  ;;  %v1830_v17 = vld [vmem:[#allocation7 + $0x2b8] sm:$0xff] }
 0x3d2   : > { %4965 = vmatmul.msk.f32.vlgmr.msra.gmra.mxu0 %vm6299_vm0, %v6242_v23  ;;  %2548 = vmatpush.msra.mxu3 %v1770_v19  ;;  %v2617_v19 = vld [vmem:[#allocation7 + $0x940] sm:$0xff] }
 0x3d3   : > { %2771 = vmatpush.msrb.mxu0 %v2665_v34  ;;  %2799 = vmatpush.msrb.mxu2 %v2709_v40  ;;  %v2722_v34 = vld [vmem:[#allocation7 + $0xc88] sm:$0xff]  ;;  %v2659_v40 = vld [vmem:[#allocation7 + $0xa90] sm:$0xff] }
 0x3d4   : > { %2530 = vmatpush.msra.mxu1 %v1877_v62  ;;  %2549 = vmatpush.msra.mxu3 %v1766_v45  ;;  %v1826_v62 = vld [vmem:[#allocation7 + $0x298] sm:$0xff]  ;;  %v2759_v45 = vrot.slane %v6224_v39, 2 }
 0x3d5   : > { %2772 = vmatpush.msrb.mxu0 %v2661_v21  ;;  %2800 = vmatpush.msrb.mxu2 %v2705_v36  ;;  %v6366_v21 = vrot.slane %v6220_v20, 2  ;;  %v2613_v36 = vld [vmem:[#allocation7 + $0x920] sm:$0xff] }
 0x3d6   : > { %2531 = vmatpush.msra.mxu1 %v1873_v56  ;;  %2550 = vmatpush.msra.mxu3 %v1762_v27  ;;  %v2718_v56 = vld [vmem:[#allocation7 + $0xc68] sm:$0xff]  ;;  %v2655_v27 = vld [vmem:[#allocation7 + $0xa70] sm:$0xff] }
 0x3d7   : > { %4972 = vmatmul.msk.f32.vlgmr.msra.gmra.mxu2 %vm545_vm5, %v6224_v39  ;;  %2773 = vmatpush.msrb.mxu0 %v2657_v57  ;;  %v1822_v57 = vld [vmem:[#allocation7 + $0x278] sm:$0xff] }
 0x3d8   : > { %2562 = vmatpush.msrb.mxu1 %v1870_v42  ;;  %2801 = vmatpush.msrb.mxu2 %v2701_v2  ;;  %v6369_v42 = vrot.slane %v6256_v26, 2  ;;  %v2609_v2 = vld [vmem:[#allocation7 + $0x900] sm:$0xff] }
 0x3d9   : > { %2420 = vmatmul.f32.gmra.mxu1 %v6256_v26  ;;  %2551 = vmatpush.msra.mxu3 %v1758_v4  ;;  %v6374_v4 = vsel %vm500_vm3, %v2759_v45, %v6366_v21  ;;  %v2646_v45 = vld [vmem:[#allocation7 + $0xa28] sm:$0xff] }
 0x3da   : > { %2563 = vmatpush.msrb.mxu1 %v1866_v48  ;;  %2774 = vmatpush.msrb.mxu0 %v2653_v14  ;;  %v2753_v48 = vrot.slane %v6248_v52, 2  ;;  %v2714_v14 = vld [vmem:[#allocation7 + $0xc48] sm:$0xff] }
 0x3db   : > { %2802 = vmatpush.msrb.mxu2 %v2697_v29  ;;  %2512 = vmatmul.f32.gmra.mxu0 %v6260_v24  ;;  %v2750_v29 = vld [vmem:[#allocation7 + $0xd68] sm:$0xff] }
 0x3dc   : > { %2552 = vmatpush.msra.mxu3 %v1754_v16  ;;  %2564 = vmatpush.msrb.mxu1 %v1862_v30  ;;  %v6379_v16 = vsel %vm500_vm3, %v2753_v48, %v6369_v42  ;;  %v2651_v30 = vld [vmem:[#allocation7 + $0xa50] sm:$0xff] }
 0x3dd   : > { %2775 = vmatpush.msrb.mxu0 %v2649_v46  ;;  %2803 = vmatpush.msrb.mxu2 %v2693_v47  ;;  %v1818_v46 = vld [vmem:[#allocation7 + $0x258] sm:$0xff]  ;;  %v2710_v47 = vld [vmem:[#allocation7 + $0xc28] sm:$0xff] }
 0x3de   : > { %2553 = vmatpush.msra.mxu3 %v1750_v31  ;;  %2565 = vmatpush.msrb.mxu1 %v1858_v51  ;;  %v2746_v31 = vld [vmem:[#allocation7 + $0xd48] sm:$0xff]  ;;  %v2647_v51 = vld [vmem:[#allocation7 + $0xa30] sm:$0xff] }
 0x3df   : > { %2776 = vmatpush.msrb.mxu0 %v2645_v58  ;;  %2804 = vmatpush.msrb.mxu2 %v2689_v9  ;;  %v1814_v58 = vld [vmem:[#allocation7 + $0x238] sm:$0xff]  ;;  %v2706_v9 = vld [vmem:[#allocation7 + $0xc08] sm:$0xff] }
 0x3e0   : > { %2554 = vmatpush.msra.mxu3 %v1746_v61  ;;  %4973 = vmatmul.msk.f32.gmra.mxu2 %vm545_vm5, %v6220_v20  ;;  %v2742_v61 = vld [vmem:[#allocation7 + $0xd28] sm:$0xff] }
 0x3e1   : > { %4969 = vmatmul.msk.f32.vlgmr.msra.gmra.mxu3 %vm6299_vm0, %v6240_v22  ;;  %2566 = vmatpush.msrb.mxu1 %v1854_v5  ;;  %v1842_v22 = vld [vmem:[#allocation7 + $0x318] sm:$0xff] }
 0x3e2   : > { %2777 = vmatpush.msrb.mxu0 %v2641_v1  ;;  %2805 = vmatpush.msrb.mxu2 %v2685_v6  ;;  %v2643_v1 = vld [vmem:[#allocation7 + $0xa10] sm:$0xff]  ;;  %v1810_v6 = vld [vmem:[#allocation7 + $0x218] sm:$0xff] }
 0x3e3   : > { %2828 = vmatpush.msrb.mxu3 %v2749_v7  ;;  %4966 = vmatmul.msk.f32.vlgmr.msra.gmra.mxu1 %vm545_vm5, %v6224_v39  ;;  %v2702_v7 = vld [vmem:[#allocation7 + $0xbe8] sm:$0xff] }
 0x3e4   : > { %2567 = vmatpush.msrb.mxu1 %v1850_v60  ;;  %2778 = vmatpush.msrb.mxu0 %v2637_v8  ;;  %v2670_v60 = vld [vmem:[#allocation7 + $0xae8] sm:$0xff] }
 0x3e5   : > { %2806 = vmatpush.msrb.mxu2 %v2681_v49  ;;  %2829 = vmatpush.msrb.mxu3 %v2745_v12  ;;  %v2738_v8 = vld [vmem:[#allocation7 + $0xd08] sm:$0xff]  ;;  %v2639_v49 = vld [vmem:[#allocation7 + $0x9f0] sm:$0xff] }
 0x3e6   : > { %2568 = vmatpush.msrb.mxu1 %v1846_v53  ;;  %2779 = vmatpush.msrb.mxu0 %v2633_v37  ;;  %v2735_v12 = vld [vmem:[#allocation7 + $0xcf0] sm:$0xff]  ;;  %v2666_v53 = vld [vmem:[#allocation7 + $0xac8] sm:$0xff] }
 0x3e7   : > { %2807 = vmatpush.msrb.mxu2 %v2677_v28  ;;  %2830 = vmatpush.msrb.mxu3 %v2741_v50  ;;  %v2698_v37 = vld [vmem:[#allocation7 + $0xbc8] sm:$0xff]  ;;  %v6391_v50 = vpop.f32.mrf.mxu2 }
 0x3e8   : > { %2569 = vmatpush.msrb.mxu1 %v1842_v22  ;;  %2780 = vmatpush.msrb.mxu0 %v2629_v11  ;;  %v2635_v22 = vld [vmem:[#allocation7 + $0x9d0] sm:$0xff] }
 0x3e9   : > { %2808 = vmatpush.msrb.mxu2 %v2673_v43  ;;  %2831 = vmatpush.msrb.mxu3 %v2737_v13  ;;  %v2731_v11 = vld [vmem:[#allocation7 + $0xcd0] sm:$0xff] }
 0x3ea   : > { %2809 = vmatmul.f32.vlgmr.msrb.gmra.mxu2 %v6358_v3  ;;  %2558 = vmatmul.f32.gmra.mxu3 %v6256_v26  ;;  %v2631_v43 = vld [vmem:[#allocation7 + $0x9b0] sm:$0xff] }
 0x3eb   : > { %2862 = vmatpush.msra.mxu3 %v2734_v59  ;;  %2908 = vmatpush.msra.mxu2 %v2671_v63  ;;  %v2727_v13 = vld [vmem:[#allocation7 + $0xcb0] sm:$0xff]  ;;  %v2690_v59 = vld [vmem:[#allocation7 + $0xb88] sm:$0xff] }
 0x3ec   : > { %2570 = vmatpush.msrb.mxu1 %v1838_v35  ;;  %2781 = vmatpush.msrb.mxu0 %v2625_v15  ;;  %v6384_v5 = vpop.f32.mrf.mxu0  ;;  %v6389_v28 = vpop.f32.mrf.mxu1  ;;  %v2627_v35 = vld [vmem:[#allocation7 + $0x990] sm:$0xff] }
 0x3ed   : > { %4967 = vmatmul.msk.f32.gmra.mxu1 %vm545_vm5, %v6220_v20  ;;  %2863 = vmatpush.msra.mxu3 %v2730_v18  ;;  %v2723_v15 = vld [vmem:[#allocation7 + $0xc90] sm:$0xff]  ;;  %v2686_v18 = vld [vmem:[#allocation7 + $0xb68] sm:$0xff] }
 0x3ee   : > { %2909 = vmatpush.msra.mxu2 %v2667_v32  ;;  %2571 = vmatpush.msrb.mxu1 %v1834_v10  ;;  %v2654_v32 = vld [vmem:[#allocation7 + $0xa68] sm:$0xff]  ;;  %v2623_v10 = vld [vmem:[#allocation7 + $0x970] sm:$0xff] }
 0x3ef   : > { %2782 = vmatpush.msrb.mxu0 %v2621_v44  ;;  %2864 = vmatpush.msra.mxu3 %v2726_v33  ;;  %v2719_v44 = vld [vmem:[#allocation7 + $0xc70] sm:$0xff]  ;;  %v2682_v33 = vld [vmem:[#allocation7 + $0xb48] sm:$0xff] }
 0x3f0   : > { %2910 = vmatpush.msra.mxu2 %v2663_v38  ;;  %2572 = vmatpush.msrb.mxu1 %v1830_v17  ;;  %v2650_v38 = vld [vmem:[#allocation7 + $0xa48] sm:$0xff]  ;;  %v2619_v17 = vld [vmem:[#allocation7 + $0x950] sm:$0xff] }
 0x3f1   : > { %2783 = vmatpush.msrb.mxu0 %v2617_v19  ;;  %2865 = vmatpush.msra.mxu3 %v2722_v34  ;;  %v2715_v19 = vld [vmem:[#allocation7 + $0xc50] sm:$0xff]  ;;  %v2678_v34 = vld [vmem:[#allocation7 + $0xb28] sm:$0xff] }
 0x3f2   : > { %2911 = vmatpush.msra.mxu2 %v2659_v40  ;;  %2573 = vmatpush.msrb.mxu1 %v1826_v62  ;;  %v6401_v62 = vpop.f32.mrf.mxu2 }
 0x3f3   : > { %2784 = vmatpush.msrb.mxu0 %v2613_v36  ;;  %2812 = vmatmul.f32.gmra.mxu2 %v6353_v55  ;;  %v2615_v36 = vld [vmem:[#allocation7 + $0x930] sm:$0xff] }
 0x3f4   : > { %2866 = vmatpush.msra.mxu3 %v2718_v56  ;;  %2912 = vmatpush.msra.mxu2 %v2655_v27  ;;  %v2711_v56 = vld [vmem:[#allocation7 + $0xc30] sm:$0xff]  ;;  %v2674_v27 = vld [vmem:[#allocation7 + $0xb08] sm:$0xff] }
 0x3f5   : > { %2574 = vmatpush.msrb.mxu1 %v1822_v57  ;;  %2785 = vmatpush.msrb.mxu0 %v2609_v2  ;;  %v6399_v40 = vpop.f32.mrf.mxu1  ;;  %v2642_v57 = vld [vmem:[#allocation7 + $0xa08] sm:$0xff]  ;;  %v2611_v2 = vld [vmem:[#allocation7 + $0x910] sm:$0xff] }
 0x3f6   : > { %4974 = vmatmul.msk.f32.vlgmr.msrb.gmra.mxu3 %vm545_vm5, %v6374_v4  ;;  %2786 = vmatmul.f32.vlgmr.msrb.gmra.mxu0 %v6379_v16  ;;  %v6396_v63 = vpop.f32.mrf.mxu0 }
 0x3f7   : > { %2867 = vmatpush.msra.mxu3 %v2714_v14  ;;  %2897 = vmatpush.msra.mxu0 %v2750_v29  ;;  %v2707_v14 = vld [vmem:[#allocation7 + $0xc10] sm:$0xff]  ;;  %v2672_v29 = vld [vmem:[#allocation7 + $0xaf8] sm:$0xff] }
 0x3f8   : > { %2913 = vmatpush.msra.mxu2 %v2651_v30  ;;  %2575 = vmatpush.msrb.mxu1 %v1818_v46  ;;  %v2752_v30 = vld [vmem:[#allocation7 + $0xd78] sm:$0xff]  ;;  %v2638_v46 = vld [vmem:[#allocation7 + $0x9e8] sm:$0xff] }
 0x3f9   : > { %2868 = vmatpush.msra.mxu3 %v2710_v47  ;;  %2898 = vmatpush.msra.mxu0 %v2746_v31  ;;  %v2668_v47 = vld [vmem:[#allocation7 + $0xad8] sm:$0xff]  ;;  %v2703_v31 = vld [vmem:[#allocation7 + $0xbf0] sm:$0xff] }
 0x3fa   : > { %2914 = vmatpush.msra.mxu2 %v2647_v51  ;;  %2576 = vmatpush.msrb.mxu1 %v1814_v58  ;;  %v2748_v51 = vld [vmem:[#allocation7 + $0xd58] sm:$0xff]  ;;  %v2634_v58 = vld [vmem:[#allocation7 + $0x9c8] sm:$0xff] }
 0x3fb   : > { %2869 = vmatpush.msra.mxu3 %v2706_v9  ;;  %2899 = vmatpush.msra.mxu0 %v2742_v61  ;;  %v2664_v9 = vld [vmem:[#allocation7 + $0xab8] sm:$0xff]  ;;  %v2699_v61 = vld [vmem:[#allocation7 + $0xbd0] sm:$0xff] }
 0x3fc   : > { %2915 = vmatpush.msra.mxu2 %v2643_v1  ;;  %2577 = vmatpush.msrb.mxu1 %v1810_v6  ;;  %v2744_v1 = vld [vmem:[#allocation7 + $0xd38] sm:$0xff] }
 0x3fd   : > { %4971 = vmatmul.msk.f32.vlgmr.msrb.gmra.mxu1 %vm6299_vm0, %v6242_v23  ;;  %2870 = vmatpush.msra.mxu3 %v2702_v7  ;;  %v2694_v23 = vld [vmem:[#allocation7 + $0xba8] sm:$0xff]  ;;  %v6409_v6 = vpop.f32.mrf.mxu1  ;;  %v6411_v7 = vpop.f32.mrf.mxu2 }
 0x3fe   : > { %2839 = vmatpush.msra.mxu1 %v2670_v60  ;;  %2900 = vmatpush.msra.mxu0 %v2738_v8  ;;  %6958 = vst [vmem:[#allocation31_spill] sm:$0xff] %v6409_v6  ;;  %v2630_v60 = vld [vmem:[#allocation7 + $0x9a8] sm:$0xff]  ;;  %v2660_v8 = vld [vmem:[#allocation7 + $0xa98] sm:$0xff] }
 0x3ff   : > { %2916 = vmatpush.msra.mxu2 %v2639_v49  ;;  %4975 = vmatmul.msk.f32.gmra.mxu3 %vm545_vm5, %v6366_v21  ;;  %v6403_v48 = vpop.f32.mrf.mxu0  ;;  %v2695_v49 = vld [vmem:[#allocation7 + $0xbb0] sm:$0xff] }
 0x400   : > { %2931 = vmatpush.msrb.mxu0 %v2735_v12  ;;  %2840 = vmatpush.msra.mxu1 %v2666_v53  ;;  %6957 = vst [vmem:[#allocation30_spill] sm:$0xff] %v6403_v48  ;;  %v2740_v12 = vld [vmem:[#allocation7 + $0xd18] sm:$0xff]  ;;  %v2626_v53 = vld [vmem:[#allocation7 + $0x988] sm:$0xff] }
 0x401   : > { %2789 = vmatmul.f32.gmra.mxu0 %v6369_v42  ;;  %2871 = vmatpush.msra.mxu3 %v2698_v37  ;;  %v3179_v37 = vld [vmem:[#allocation7 + $0x1160] sm:$0xff] }
 0x402   : > { %2917 = vmatpush.msra.mxu2 %v2635_v22  ;;  %2932 = vmatpush.msrb.mxu0 %v2731_v11  ;;  %v2691_v11 = vld [vmem:[#allocation7 + $0xb90] sm:$0xff] }
 0x403   : > { %2841 = vmatpush.msra.mxu1 %v2662_v41  ;;  %2872 = vmatpush.msra.mxu3 %v2694_v23  ;;  %v2656_v41 = vld [vmem:[#allocation7 + $0xa78] sm:$0xff]  ;;  %v2622_v23 = vld [vmem:[#allocation7 + $0x968] sm:$0xff] }
 0x404   : > { %2918 = vmatpush.msra.mxu2 %v2631_v43  ;;  %2933 = vmatpush.msrb.mxu0 %v2727_v13  ;;  %v6415_v43 = vpop.f32.mrf.mxu3  ;;  %v3175_v13 = vld [vmem:[#allocation7 + $0x1140] sm:$0xff] }
 0x405   : > { %2842 = vmatpush.msra.mxu1 %v2658_v25  ;;  %2873 = vmatpush.msra.mxu3 %v2690_v59  ;;  %v2687_v25 = vld [vmem:[#allocation7 + $0xb70] sm:$0xff]  ;;  %v2652_v59 = vld [vmem:[#allocation7 + $0xa58] sm:$0xff] }
 0x406   : > { %2919 = vmatpush.msra.mxu2 %v2627_v35  ;;  %2934 = vmatpush.msrb.mxu0 %v2723_v15  ;;  %v2618_v35 = vld [vmem:[#allocation7 + $0x948] sm:$0xff]  ;;  %v3171_v15 = vld [vmem:[#allocation7 + $0x1120] sm:$0xff] }
 0x407   : > { %2581 = vmatmul.f32.gmra.mxu1 %v6260_v24  ;;  %2874 = vmatpush.msra.mxu3 %v2686_v18  ;;  %v2683_v18 = vld [vmem:[#allocation7 + $0xb50] sm:$0xff] }
 0x408   : > { %2843 = vmatpush.msra.mxu1 %v2654_v32  ;;  %2920 = vmatpush.msra.mxu2 %v2623_v10  ;;  %v2648_v32 = vld [vmem:[#allocation7 + $0xa38] sm:$0xff]  ;;  %v2614_v10 = vld [vmem:[#allocation7 + $0x928] sm:$0xff] }
 0x409   : > { %2935 = vmatpush.msrb.mxu0 %v2719_v44  ;;  %2875 = vmatpush.msra.mxu3 %v2682_v33  ;;  %v6413_v22 = vpop.f32.mrf.mxu0  ;;  %v6421_v44 = vpop.f32.mrf.mxu1 }
 0x40a   : > { %2844 = vmatpush.msra.mxu1 %v2650_v38  ;;  %2921 = vmatpush.msra.mxu2 %v2619_v17  ;;  %v6423_v33 = vpop.f32.mrf.mxu2  ;;  %v3167_v38 = vld [vmem:[#allocation7 + $0x1100] sm:$0xff]  ;;  %v2679_v17 = vld [vmem:[#allocation7 + $0xb30] sm:$0xff] }
 0x40b   : > { %2936 = vmatpush.msrb.mxu0 %v2715_v19  ;;  %2876 = vmatpush.msra.mxu3 %v2678_v34  ;;  %v2644_v19 = vld [vmem:[#allocation7 + $0xa18] sm:$0xff]  ;;  %v2610_v34 = vld [vmem:[#allocation7 + $0x908] sm:$0xff] }
 0x40c   : > { %2845 = vmatpush.msra.mxu1 %v2646_v45  ;;  %2922 = vmatpush.msra.mxu2 %v2615_v36  ;;  %v3163_v45 = vld [vmem:[#allocation7 + $0x10e0] sm:$0xff]  ;;  %v2675_v36 = vld [vmem:[#allocation7 + $0xb10] sm:$0xff] }
 0x40d   : > { %2937 = vmatpush.msrb.mxu0 %v2711_v56  ;;  %2877 = vmatpush.msra.mxu3 %v2674_v27  ;;  %v2751_v56 = vld [vmem:[#allocation7 + $0xd70] sm:$0xff] }
 0x40e   : > { %2846 = vmatpush.msra.mxu1 %v2642_v57  ;;  %2923 = vmatpush.msra.mxu2 %v2611_v2  ;;  %v2640_v57 = vld [vmem:[#allocation7 + $0x9f8] sm:$0xff]  ;;  %v3115_v2 = vld [vmem:[#allocation7 + $0xf60] sm:$0xff] }
 0x40f   : > { %2878 = vmatmul.f32.vlgmr.msra.gmra.mxu3 %v6358_v3  ;;  %2924 = vmatmul.f32.vlgmr.msra.gmra.mxu2 %v6379_v16 }
 0x410   : > { %2938 = vmatpush.msrb.mxu0 %v2707_v14  ;;  %2977 = vmatpush.msrb.mxu3 %v2672_v29  ;;  %v3159_v14 = vld [vmem:[#allocation7 + $0x10c0] sm:$0xff]  ;;  %v6428_v29 = vpop.f32.mrf.mxu3 }
 0x411   : > { %3035 = vmatpush.msrb.mxu2 %v2752_v30  ;;  %2847 = vmatpush.msra.mxu1 %v2638_v46  ;;  %v2747_v30 = vld [vmem:[#allocation7 + $0xd50] sm:$0xff]  ;;  %v2636_v46 = vld [vmem:[#allocation7 + $0x9d8] sm:$0xff] }
 0x412   : > { %4976 = vmatmul.msk.f32.vlgmr.msra.gmra.mxu0 %vm545_vm5, %v6374_v4  ;;  %2978 = vmatpush.msrb.mxu3 %v2668_v47  ;;  %v3111_v47 = vld [vmem:[#allocation7 + $0xf40] sm:$0xff] }
 0x413   : > { %2939 = vmatpush.msrb.mxu0 %v2703_v31  ;;  %3036 = vmatpush.msrb.mxu2 %v2748_v51  ;;  %v3155_v31 = vld [vmem:[#allocation7 + $0x10a0] sm:$0xff]  ;;  %v2743_v51 = vld [vmem:[#allocation7 + $0xd30] sm:$0xff] }
 0x414   : > { %2848 = vmatpush.msra.mxu1 %v2634_v58  ;;  %2979 = vmatpush.msrb.mxu3 %v2664_v9  ;;  %v6425_v27 = vpop.f32.mrf.mxu0  ;;  %v2632_v58 = vld [vmem:[#allocation7 + $0x9b8] sm:$0xff]  ;;  %v3107_v9 = vld [vmem:[#allocation7 + $0xf20] sm:$0xff] }
 0x415   : > { %2940 = vmatpush.msrb.mxu0 %v2699_v61  ;;  %3037 = vmatpush.msrb.mxu2 %v2744_v1  ;;  %v3151_v61 = vld [vmem:[#allocation7 + $0x1080] sm:$0xff]  ;;  %v6431_v1 = vpop.f32.mrf.mxu1 }
 0x416   : > { %2849 = vmatpush.msra.mxu1 %v2630_v60  ;;  %2980 = vmatpush.msrb.mxu3 %v2660_v8  ;;  %v6433_v60 = vpop.f32.mrf.mxu2  ;;  %v2739_v8 = vld [vmem:[#allocation7 + $0xd10] sm:$0xff] }
 0x417   : > { %2941 = vmatpush.msrb.mxu0 %v2695_v49  ;;  %3038 = vmatpush.msrb.mxu2 %v2740_v12  ;;  %v2628_v49 = vld [vmem:[#allocation7 + $0x998] sm:$0xff] }
 0x418   : > { %2850 = vmatpush.msra.mxu1 %v2626_v53  ;;  %2881 = vmatmul.f32.gmra.mxu3 %v6353_v55  ;;  %v2736_v12 = vld [vmem:[#allocation7 + $0xcf8] sm:$0xff]  ;;  %v3103_v53 = vld [vmem:[#allocation7 + $0xf00] sm:$0xff] }
 0x419   : > { %3243 = vmatpush.msra.mxu2 %v3179_v37  ;;  %2942 = vmatpush.msrb.mxu0 %v2691_v11  ;;  %v3147_v37 = vld [vmem:[#allocation7 + $0x1060] sm:$0xff]  ;;  %v2624_v11 = vld [vmem:[#allocation7 + $0x978] sm:$0xff] }
 0x41a   : > { %2927 = vmatmul.f32.gmra.mxu2 %v6369_v42  ;;  %2981 = vmatpush.msrb.mxu3 %v2656_v41 }
 0x41b   : > { %2851 = vmatpush.msra.mxu1 %v2622_v23  ;;  %4977 = vmatmul.msk.f32.gmra.mxu0 %vm545_vm5, %v6366_v21  ;;  %v2732_v23 = vld [vmem:[#allocation7 + $0xcd8] sm:$0xff] }
 0x41c   : > { %3244 = vmatpush.msra.mxu2 %v3175_v13  ;;  %2943 = vmatpush.msrb.mxu0 %v2687_v25  ;;  %v3099_v13 = vld [vmem:[#allocation7 + $0xee0] sm:$0xff] }
 0x41d   : > { %2982 = vmatpush.msrb.mxu3 %v2652_v59  ;;  %2852 = vmatpush.msra.mxu1 %v2618_v35  ;;  %v6435_v41 = vpop.f32.mrf.mxu0  ;;  %v3143_v25 = vld [vmem:[#allocation7 + $0x1040] sm:$0xff]  ;;  %v6439_v59 = vpop.f32.mrf.mxu3  ;;  %v2620_v35 = vld [vmem:[#allocation7 + $0x958] sm:$0xff] }
 0x41e   : > { %3245 = vmatpush.msra.mxu2 %v3171_v15  ;;  %2944 = vmatpush.msrb.mxu0 %v2683_v18  ;;  %v2728_v15 = vld [vmem:[#allocation7 + $0xcb8] sm:$0xff]  ;;  %v3095_v18 = vld [vmem:[#allocation7 + $0xec0] sm:$0xff] }
 0x41f   : > { %2983 = vmatpush.msrb.mxu3 %v2648_v32  ;;  %2853 = vmatpush.msra.mxu1 %v2614_v10  ;;  %v3139_v32 = vld [vmem:[#allocation7 + $0x1020] sm:$0xff]  ;;  %v2616_v10 = vld [vmem:[#allocation7 + $0x938] sm:$0xff] }
 0x420   : > { %3246 = vmatpush.msra.mxu2 %v3167_v38  ;;  %2945 = vmatpush.msrb.mxu0 %v2679_v17  ;;  %v2724_v38 = vld [vmem:[#allocation7 + $0xc98] sm:$0xff]  ;;  %v3091_v17 = vld [vmem:[#allocation7 + $0xea0] sm:$0xff] }
 0x421   : > { %2984 = vmatpush.msrb.mxu3 %v2644_v19  ;;  %2854 = vmatpush.msra.mxu1 %v2610_v34  ;;  %v3135_v19 = vld [vmem:[#allocation7 + $0x1000] sm:$0xff]  ;;  %v6443_v34 = vpop.f32.mrf.mxu1 }
 0x422   : > { %3247 = vmatpush.msra.mxu2 %v3163_v45  ;;  %2855 = vmatmul.f32.vlgmr.msra.gmra.mxu1 %v6379_v16  ;;  %v6445_v45 = vpop.f32.mrf.mxu2 }
 0x423   : > { %2946 = vmatpush.msrb.mxu0 %v2675_v36  ;;  %2966 = vmatpush.msrb.mxu1 %v2751_v56  ;;  %v2612_v36 = vld [vmem:[#allocation7 + $0x918] sm:$0xff] }
 0x424   : > { %2985 = vmatpush.msrb.mxu3 %v2640_v57  ;;  %2947 = vmatmul.f32.vlgmr.msrb.gmra.mxu0 %v6358_v3  ;;  %v2720_v56 = vld [vmem:[#allocation7 + $0xc78] sm:$0xff]  ;;  %v3087_v57 = vld [vmem:[#allocation7 + $0xe80] sm:$0xff] }
 0x425   : > { %3220 = vmatpush.msra.mxu0 %v3115_v2  ;;  %3248 = vmatpush.msra.mxu2 %v3159_v14  ;;  %v3131_v2 = vld [vmem:[#allocation7 + $0xfe0] sm:$0xff] }
 0x426   : > { %2967 = vmatpush.msrb.mxu1 %v2747_v30  ;;  %2986 = vmatpush.msrb.mxu3 %v2636_v46  ;;  %v3195_v14 = vld [vmem:[#allocation7 + $0x11e0] sm:$0xff]  ;;  %v2716_v46 = vld [vmem:[#allocation7 + $0xc58] sm:$0xff] }
 0x427   : > { %3221 = vmatpush.msra.mxu0 %v3111_v47  ;;  %3249 = vmatpush.msra.mxu2 %v3155_v31  ;;  %v3083_v47 = vld [vmem:[#allocation7 + $0xe60] sm:$0xff] }
 0x428   : > { %2968 = vmatpush.msrb.mxu1 %v2743_v51  ;;  %2987 = vmatpush.msrb.mxu3 %v2632_v58  ;;  %v6449_v30 = vpop.f32.mrf.mxu0  ;;  %v3127_v31 = vld [vmem:[#allocation7 + $0xfc0] sm:$0xff]  ;;  %v6452_v58 = vpop.f32.mrf.mxu3 }
 0x429   : > { %3222 = vmatpush.msra.mxu0 %v3107_v9  ;;  %3250 = vmatpush.msra.mxu2 %v3151_v61  ;;  %v3191_v51 = vld [vmem:[#allocation7 + $0x11c0] sm:$0xff]  ;;  %v2712_v9 = vld [vmem:[#allocation7 + $0xc38] sm:$0xff] }
 0x42a   : > { %2969 = vmatpush.msrb.mxu1 %v2739_v8  ;;  %2988 = vmatpush.msrb.mxu3 %v2628_v49  ;;  %v3079_v61 = vld [vmem:[#allocation7 + $0xe40] sm:$0xff] }
 0x42b   : > { %4980 = vmatmul.msk.f32.vlgmr.msrb.gmra.mxu2 %vm545_vm5, %v6374_v4  ;;  %3223 = vmatpush.msra.mxu0 %v3103_v53  ;;  %v3123_v8 = vld [vmem:[#allocation7 + $0xfa0] sm:$0xff]  ;;  %v3203_v53 = vrot.slane %v6260_v24, 3 }
 0x42c   : > { %3000 = vmatpush.msra.mxu1 %v2736_v12  ;;  %3251 = vmatpush.msra.mxu2 %v3147_v37  ;;  %v3187_v49 = vld [vmem:[#allocation7 + $0x11a0] sm:$0xff] }
 0x42d   : > { %2858 = vmatmul.f32.gmra.mxu1 %v6369_v42  ;;  %2989 = vmatpush.msrb.mxu3 %v2624_v11  ;;  %v3075_v12 = vld [vmem:[#allocation7 + $0xe20] sm:$0xff] }
 0x42e   : > { %2950 = vmatmul.f32.gmra.mxu0 %v6353_v55  ;;  %3001 = vmatpush.msra.mxu1 %v2732_v23  ;;  %v3119_v37 = vld [vmem:[#allocation7 + $0xf80] sm:$0xff]  ;;  %v6457_v23 = vpop.f32.mrf.mxu1 }
 0x42f   : > { %3224 = vmatpush.msra.mxu0 %v3099_v13  ;;  %3252 = vmatpush.msra.mxu2 %v3143_v25  ;;  %v3183_v11 = vld [vmem:[#allocation7 + $0x1180] sm:$0xff]  ;;  %v6459_v13 = vpop.f32.mrf.mxu2  ;;  %v3180_v25 = vld [vmem:[#allocation7 + $0x1168] sm:$0xff] }
 0x430   : > { %2990 = vmatpush.msrb.mxu3 %v2620_v35  ;;  %3002 = vmatpush.msra.mxu1 %v2728_v15  ;;  %v3117_v35 = vld [vmem:[#allocation7 + $0xf70] sm:$0xff] }
 0x431   : > { %3225 = vmatpush.msra.mxu0 %v3095_v18  ;;  %3253 = vmatpush.msra.mxu2 %v3139_v32  ;;  %v2704_v18 = vld [vmem:[#allocation7 + $0xbf8] sm:$0xff]  ;;  %v3071_v32 = vld [vmem:[#allocation7 + $0xe00] sm:$0xff] }
 0x432   : > { %2991 = vmatpush.msrb.mxu3 %v2616_v10  ;;  %3003 = vmatpush.msra.mxu1 %v2724_v38  ;;  %v3176_v10 = vld [vmem:[#allocation7 + $0x1148] sm:$0xff]  ;;  %v6466_v38 = vpop.f32.mrf.mxu0 }
 0x433   : > { %3226 = vmatpush.msra.mxu0 %v3091_v17  ;;  %3254 = vmatpush.msra.mxu2 %v3135_v19  ;;  %v3113_v17 = vld [vmem:[#allocation7 + $0xf50] sm:$0xff]  ;;  %v2700_v19 = vld [vmem:[#allocation7 + $0xbd8] sm:$0xff] }
 0x434   : > { %2992 = vmatpush.msrb.mxu3 %v2612_v36  ;;  %4981 = vmatmul.msk.f32.gmra.mxu2 %vm545_vm5, %v6366_v21  ;;  %v3067_v36 = vld [vmem:[#allocation7 + $0xde0] sm:$0xff] }
 0x435   : > { %2993 = vmatmul.f32.vlgmr.msrb.gmra.mxu3 %v6379_v16  ;;  %3004 = vmatpush.msra.mxu1 %v2720_v56  ;;  %v2708_v16 = vld [vmem:[#allocation7 + $0xc18] sm:$0xff]  ;;  %v3172_v56 = vld [vmem:[#allocation7 + $0x1128] sm:$0xff] }
 0x436   : > { %3227 = vmatpush.msra.mxu0 %v3087_v57  ;;  %3255 = vmatpush.msra.mxu2 %v3131_v2  ;;  %v6469_v57 = vpop.f32.mrf.mxu3  ;;  %v3109_v2 = vld [vmem:[#allocation7 + $0xf30] sm:$0xff] }
 0x437   : > { %3278 = vmatpush.msra.mxu3 %v3195_v14  ;;  %4978 = vmatmul.msk.f32.vlgmr.msrb.gmra.mxu1 %vm545_vm5, %v6374_v4  ;;  %v3202_v4 = vrot.slane %v6252_v0, 3  ;;  %v2696_v14 = vld [vmem:[#allocation7 + $0xbb8] sm:$0xff] }
 0x438   : > { %3005 = vmatpush.msra.mxu1 %v2716_v46  ;;  %3228 = vmatpush.msra.mxu0 %v3083_v47  ;;  %v3063_v46 = vld [vmem:[#allocation7 + $0xdc0] sm:$0xff]  ;;  %v3168_v47 = vld [vmem:[#allocation7 + $0x1108] sm:$0xff] }
 0x439   : > { %3256 = vmatpush.msra.mxu2 %v3127_v31  ;;  %3279 = vmatpush.msra.mxu3 %v3191_v51  ;;  %v6463_v15 = vsel %vm975_vm6, %v3202_v4, %v3203_v53  ;;  %v3105_v31 = vld [vmem:[#allocation7 + $0xf10] sm:$0xff]  ;;  %v2692_v51 = vld [vmem:[#allocation7 + $0xb98] sm:$0xff] }
 0x43a   : > { %3006 = vmatpush.msra.mxu1 %v2712_v9  ;;  %3229 = vmatpush.msra.mxu0 %v3079_v61  ;;  %v3205_v9 = vrot.slane %v6224_v39, 3  ;;  %v3206_v61 = vrot.slane %v6220_v20, 3  ;;  %v2688_v4 = vld [vmem:[#allocation7 + $0xb78] sm:$0xff] }
 0x43b   : > { %3257 = vmatpush.msra.mxu2 %v3123_v8  ;;  %3280 = vmatpush.msra.mxu3 %v3187_v49  ;;  %v6478_v8 = vpop.f32.mrf.mxu1  ;;  %v6480_v49 = vpop.f32.mrf.mxu2 }
 0x43c   : > { %3007 = vmatpush.msra.mxu1 %v2708_v16  ;;  %3230 = vmatpush.msra.mxu0 %v3075_v12  ;;  %v3164_v16 = vld [vmem:[#allocation7 + $0x10e8] sm:$0xff]  ;;  %v3101_v12 = vld [vmem:[#allocation7 + $0xef0] sm:$0xff] }
 0x43d   : > { %3258 = vmatpush.msra.mxu2 %v3119_v37  ;;  %3281 = vmatpush.msra.mxu3 %v3183_v11  ;;  %v3200_v37 = vrot.slane %v6256_v26, 3 }
 0x43e   : > { %3259 = vmatmul.f32.vlgmr.msra.gmra.mxu2 %v6463_v15  ;;  %2996 = vmatmul.f32.gmra.mxu3 %v6369_v42  ;;  %v6474_v42 = vrot.slane %v6919_v54, 3  ;;  %v3161_v54 = vld [vmem:[#allocation7 + $0x10d0] sm:$0xff] }
 0x43f   : > { %3312 = vmatpush.msrb.mxu3 %v3180_v25  ;;  %3358 = vmatpush.msrb.mxu2 %v3117_v35  ;;  %v3055_v25 = vld [vmem:[#allocation7 + $0xd80] sm:$0xff]  ;;  %v6489_v35 = vsel %vm975_vm6, %v3205_v9, %v3206_v61 }
 0x440   : > { %3008 = vmatpush.msra.mxu1 %v2704_v18  ;;  %3231 = vmatpush.msra.mxu0 %v3071_v32  ;;  %v6485_v11 = vsel %vm975_vm6, %v3203_v53, %v6474_v42  ;;  %v3199_v18 = vrot.slane %v6248_v52, 3  ;;  %v3160_v32 = vld [vmem:[#allocation7 + $0x10c8] sm:$0xff] }
 0x441   : > { %4979 = vmatmul.msk.f32.gmra.mxu1 %vm545_vm5, %v6366_v21  ;;  %3313 = vmatpush.msrb.mxu3 %v3176_v10  ;;  %v3059_v21 = vld [vmem:[#allocation7 + $0xda0] sm:$0xff]  ;;  %v3196_v10 = vld [vmem:[#allocation7 + $0x11e8] sm:$0xff] }
 0x442   : > { %3359 = vmatpush.msrb.mxu2 %v3113_v17  ;;  %3009 = vmatpush.msra.mxu1 %v2700_v19  ;;  %v6492_v17 = vpop.f32.mrf.mxu0  ;;  %v6497_v53 = vsel %vm975_vm6, %v3199_v18, %v3200_v37  ;;  %v3097_v19 = vld [vmem:[#allocation7 + $0xed0] sm:$0xff]  ;;  %v3184_v18 = vld [vmem:[#allocation7 + $0x1188] sm:$0xff] }
 0x443   : > { %3232 = vmatpush.msra.mxu0 %v3067_v36  ;;  %3314 = vmatpush.msrb.mxu3 %v3172_v56  ;;  %6959 = vst [vmem:[#allocation32_spill] sm:$0xff] %v6492_v17  ;;  %v2684_v36 = vld [vmem:[#allocation7 + $0xb58] sm:$0xff]  ;;  %v3156_v56 = vld [vmem:[#allocation7 + $0x10a8] sm:$0xff] }
 0x444   : > { %3360 = vmatpush.msrb.mxu2 %v3109_v2  ;;  %3010 = vmatpush.msra.mxu1 %v2696_v14  ;;  %v3192_v2 = vld [vmem:[#allocation7 + $0x11c8] sm:$0xff]  ;;  %v6502_v14 = vpop.f32.mrf.mxu3 }
 0x445   : > { %3233 = vmatpush.msra.mxu0 %v3063_v46  ;;  %3315 = vmatpush.msrb.mxu3 %v3168_v47  ;;  %v3093_v46 = vld [vmem:[#allocation7 + $0xeb0] sm:$0xff]  ;;  %v2680_v47 = vld [vmem:[#allocation7 + $0xb38] sm:$0xff]  ;;  %v3124_v17 = vld [vmem:[#allocation7 + $0xfa8] sm:$0xff] }
 0x446   : > { %3361 = vmatpush.msrb.mxu2 %v3105_v31  ;;  %3011 = vmatpush.msra.mxu1 %v2692_v51  ;;  %v3152_v31 = vld [vmem:[#allocation7 + $0x1088] sm:$0xff] }
 0x447   : > { %3234 = vmatpush.msra.mxu0 %v3059_v21  ;;  %3262 = vmatmul.f32.gmra.mxu2 %v6485_v11  ;;  %v3188_v51 = vld [vmem:[#allocation7 + $0x11a8] sm:$0xff]  ;;  %v3089_v21 = vld [vmem:[#allocation7 + $0xe90] sm:$0xff] }
 0x448   : > { %3316 = vmatpush.msrb.mxu3 %v3164_v16  ;;  %3362 = vmatpush.msrb.mxu2 %v3101_v12  ;;  %v2676_v16 = vld [vmem:[#allocation7 + $0xb18] sm:$0xff]  ;;  %v6506_v12 = vpop.f32.mrf.mxu2 }
 0x449   : > { %3012 = vmatpush.msra.mxu1 %v2688_v4  ;;  %3235 = vmatpush.msra.mxu0 %v3055_v25  ;;  %v3148_v4 = vld [vmem:[#allocation7 + $0x1068] sm:$0xff] }
 0x44a   : > { %4982 = vmatmul.msk.f32.vlgmr.msra.gmra.mxu3 %vm545_vm5, %v6489_v35  ;;  %3236 = vmatmul.f32.vlgmr.msra.gmra.mxu0 %v6497_v53  ;;  %v3116_v25 = vld [vmem:[#allocation7 + $0xf68] sm:$0xff] }
 0x44b   : > { %3317 = vmatpush.msrb.mxu3 %v3160_v32  ;;  %3347 = vmatpush.msrb.mxu0 %v3196_v10  ;;  %v6504_v9 = vpop.f32.mrf.mxu1  ;;  %v3085_v32 = vld [vmem:[#allocation7 + $0xe70] sm:$0xff]  ;;  %v6510_v10 = vsel %vm975_vm6, %v3206_v61, %v6474_v42  ;;  %v3108_v61 = vld [vmem:[#allocation7 + $0xf28] sm:$0xff] }
 0x44c   : > { %3363 = vmatpush.msrb.mxu2 %v3097_v19  ;;  %3013 = vmatpush.msra.mxu1 %v2684_v36  ;;  %6960 = vst [vmem:[#allocation33_spill] sm:$0xff] %v6504_v9  ;;  %v3181_v19 = vld [vmem:[#allocation7 + $0x1170] sm:$0xff]  ;;  %v3112_v36 = vld [vmem:[#allocation7 + $0xf48] sm:$0xff]  ;;  %v3106_v9 = vld [vmem:[#allocation7 + $0xf18] sm:$0xff] }
 0x44d   : > { %3318 = vmatpush.msrb.mxu3 %v3156_v56  ;;  %3348 = vmatpush.msrb.mxu0 %v3192_v2  ;;  %v3144_v56 = vld [vmem:[#allocation7 + $0x1048] sm:$0xff]  ;;  %v6513_v2 = vpop.f32.mrf.mxu0 }
 0x44e   : > { %3364 = vmatpush.msrb.mxu2 %v3093_v46  ;;  %3014 = vmatpush.msra.mxu1 %v2680_v47  ;;  %v3081_v46 = vld [vmem:[#allocation7 + $0xe50] sm:$0xff] }
 0x44f   : > { %3319 = vmatpush.msrb.mxu3 %v3152_v31  ;;  %3349 = vmatpush.msrb.mxu0 %v3188_v51  ;;  %v3177_v47 = vld [vmem:[#allocation7 + $0x1150] sm:$0xff]  ;;  %v6517_v31 = vpop.f32.mrf.mxu3  ;;  %v3140_v51 = vld [vmem:[#allocation7 + $0x1028] sm:$0xff] }
 0x450   : > { %3365 = vmatpush.msrb.mxu2 %v3089_v21  ;;  %3015 = vmatpush.msra.mxu1 %v2676_v16  ;;  %6961 = vst [vmem:[#allocation24_spill] sm:$0xff] %v6517_v31  ;;  %v3077_v21 = vld [vmem:[#allocation7 + $0xe30] sm:$0xff] }
 0x451   : > { %3016 = vmatmul.f32.vlgmr.msra.gmra.mxu1 %v6358_v3  ;;  %3320 = vmatpush.msrb.mxu3 %v3148_v4  ;;  %v6523_v3 = vsel %vm975_vm6, %v3200_v37, %v6474_v42  ;;  %v3173_v16 = vld [vmem:[#allocation7 + $0x1130] sm:$0xff]  ;;  %v3104_v4 = vld [vmem:[#allocation7 + $0xf08] sm:$0xff]  ;;  %v6528_v42 = vpop.f32.mrf.mxu2 }
 0x452   : > { %3289 = vmatpush.msrb.mxu1 %v3116_v25  ;;  %3350 = vmatpush.msrb.mxu0 %v3184_v18  ;;  %v3136_v25 = vld [vmem:[#allocation7 + $0x1008] sm:$0xff] }
 0x453   : > { %3366 = vmatpush.msrb.mxu2 %v3085_v32  ;;  %4983 = vmatmul.msk.f32.gmra.mxu3 %vm545_vm5, %v6510_v10  ;;  %v3073_v32 = vld [vmem:[#allocation7 + $0xe10] sm:$0xff]  ;;  %v3132_v37 = vld [vmem:[#allocation7 + $0xfe8] sm:$0xff] }
 0x454   : > { %3381 = vmatpush.msra.mxu0 %v3181_v19  ;;  %3290 = vmatpush.msrb.mxu1 %v3112_v36  ;;  %v3169_v19 = vld [vmem:[#allocation7 + $0x1110] sm:$0xff]  ;;  %v3100_v36 = vld [vmem:[#allocation7 + $0xee8] sm:$0xff] }
 0x455   : > { %3239 = vmatmul.f32.gmra.mxu0 %v6523_v3  ;;  %3321 = vmatpush.msrb.mxu3 %v3144_v56  ;;  %v3069_v56 = vld [vmem:[#allocation7 + $0xdf0] sm:$0xff] }
 0x456   : > { %3367 = vmatpush.msrb.mxu2 %v3081_v46  ;;  %3382 = vmatpush.msra.mxu0 %v3177_v47  ;;  %v6526_v18 = vpop.f32.mrf.mxu1  ;;  %v3165_v46 = vld [vmem:[#allocation7 + $0x10f0] sm:$0xff]  ;;  %v3128_v47 = vld [vmem:[#allocation7 + $0xfc8] sm:$0xff] }
 0x457   : > { %3291 = vmatpush.msrb.mxu1 %v3108_v61  ;;  %3322 = vmatpush.msrb.mxu3 %v3140_v51  ;;  %v3096_v61 = vld [vmem:[#allocation7 + $0xec8] sm:$0xff]  ;;  %v3065_v51 = vld [vmem:[#allocation7 + $0xdd0] sm:$0xff] }
 0x458   : > { %3368 = vmatpush.msrb.mxu2 %v3077_v21  ;;  %3383 = vmatpush.msra.mxu0 %v3173_v16  ;;  %v6531_v21 = vpop.f32.mrf.mxu0  ;;  %v3092_v16 = vld [vmem:[#allocation7 + $0xea8] sm:$0xff] }
 0x459   : > { %3292 = vmatpush.msrb.mxu1 %v3104_v4  ;;  %3323 = vmatpush.msrb.mxu3 %v3136_v25  ;;  %v3061_v4 = vld [vmem:[#allocation7 + $0xdb0] sm:$0xff]  ;;  %v6533_v25 = vpop.f32.mrf.mxu3 }
 0x45a   : > { %3369 = vmatpush.msrb.mxu2 %v3073_v32  ;;  %3384 = vmatpush.msra.mxu0 %v3169_v19  ;;  %v3157_v32 = vld [vmem:[#allocation7 + $0x10b0] sm:$0xff]  ;;  %v3120_v19 = vld [vmem:[#allocation7 + $0xf88] sm:$0xff] }
 0x45b   : > { %3019 = vmatmul.f32.gmra.mxu1 %v6353_v55  ;;  %3324 = vmatpush.msrb.mxu3 %v3132_v37  ;;  %v3088_v55 = vld [vmem:[#allocation7 + $0xe88] sm:$0xff]  ;;  %v3057_v37 = vld [vmem:[#allocation7 + $0xd90] sm:$0xff] }
 0x45c   : > { %3293 = vmatpush.msrb.mxu1 %v3100_v36  ;;  %3370 = vmatpush.msrb.mxu2 %v3069_v56  ;;  %v6535_v36 = vpop.f32.mrf.mxu2 }
 0x45d   : > { %3385 = vmatpush.msra.mxu0 %v3165_v46  ;;  %3325 = vmatpush.msrb.mxu3 %v3128_v47  ;;  %v3153_v46 = vld [vmem:[#allocation7 + $0x1090] sm:$0xff]  ;;  %v3118_v47 = vld [vmem:[#allocation7 + $0xf78] sm:$0xff] }
 0x45e   : > { %3294 = vmatpush.msrb.mxu1 %v3096_v61  ;;  %3371 = vmatpush.msrb.mxu2 %v3065_v51  ;;  %v3198_v61 = vld [vmem:[#allocation7 + $0x11f8] sm:$0xff]  ;;  %v3084_v51 = vld [vmem:[#allocation7 + $0xe68] sm:$0xff] }
 0x45f   : > { %3386 = vmatpush.msra.mxu0 %v3161_v54  ;;  %3326 = vmatpush.msrb.mxu3 %v3124_v17  ;;  %v2234_v54 = vadd.f32 %v6452_v58, %v6423_v33  ;;  %v3114_v17 = vld [vmem:[#allocation7 + $0xf58] sm:$0xff]  ;;  %v3145_v33 = vld [vmem:[#allocation7 + $0x1050] sm:$0xff] }
 0x460   : > { %3295 = vmatpush.msrb.mxu1 %v3092_v16  ;;  %3372 = vmatpush.msrb.mxu2 %v3061_v4  ;;  %v6537_v56 = vpop.f32.mrf.mxu1  ;;  %v3149_v16 = vld [vmem:[#allocation7 + $0x1070] sm:$0xff]  ;;  %v3194_v4 = vld [vmem:[#allocation7 + $0x11d8] sm:$0xff]  ;;  %v2513_v31 = vpop.f32.mrf.mxu0 }
 0x461   : > { %3387 = vmatpush.msra.mxu0 %v3157_v32  ;;  %3327 = vmatpush.msrb.mxu3 %v3120_v19  ;;  %v2257_v32 = vadd.f32 %v6443_v34, %v2234_v54  ;;  %v3080_v19 = vld [vmem:[#allocation7 + $0xe48] sm:$0xff]  ;;  %v3190_v58 = vld [vmem:[#allocation7 + $0x11b8] sm:$0xff]  ;;  %v3141_v34 = vld [vmem:[#allocation7 + $0x1030] sm:$0xff] }
 0x462   : > { %3296 = vmatpush.msrb.mxu1 %v3088_v55  ;;  %3373 = vmatpush.msrb.mxu2 %v3057_v37  ;;  %v3110_v55 = vld [vmem:[#allocation7 + $0xf38] sm:$0xff]  ;;  %v3629_v54 = vld [vmem:[#allocation7 + $0x15e0] sm:$0xff] }
 0x463   : > { %3328 = vmatmul.f32.vlgmr.msrb.gmra.mxu3 %v6463_v15  ;;  %3374 = vmatmul.f32.vlgmr.msrb.gmra.mxu2 %v6497_v53 }
 0x464   : > { %3388 = vmatpush.msra.mxu0 %v3153_v46  ;;  %3427 = vmatpush.msra.mxu3 %v3118_v47  ;;  %v6544_v37 = vpop.f32.mrf.mxu3  ;;  %v2491_v46 = vadd.f32 %v6528_v42, %v2257_v32  ;;  %v3076_v47 = vld [vmem:[#allocation7 + $0xe28] sm:$0xff]  ;;  %v6549_v48 = vpop.f32.mrf.mxu2  ;;  %v3137_v42 = vld [vmem:[#allocation7 + $0x1010] sm:$0xff] }
 0x465   : > { %3485 = vmatpush.msra.mxu2 %v3198_v61  ;;  %3297 = vmatpush.msrb.mxu1 %v3084_v51  ;;  %v3186_v61 = vld [vmem:[#allocation7 + $0x1198] sm:$0xff]  ;;  %v3072_v51 = vld [vmem:[#allocation7 + $0xe08] sm:$0xff] }
 0x466   : > { %4984 = vmatmul.msk.f32.vlgmr.msrb.gmra.mxu0 %vm545_vm5, %v6489_v35  ;;  %3428 = vmatpush.msra.mxu3 %v3114_v17  ;;  %v2514_v6 = vadd.f32 %v2513_v31, %v2491_v46  ;;  %v3068_v32 = vld [vmem:[#allocation7 + $0xde8] sm:$0xff]  ;;  %v3133_v31 = vld [vmem:[#allocation7 + $0xff0] sm:$0xff]  ;;  %v3094_v46 = vld [vmem:[#allocation7 + $0xeb8] sm:$0xff] }
 0x467   : > { %3389 = vmatpush.msra.mxu0 %v3149_v16  ;;  %3486 = vmatpush.msra.mxu2 %v3194_v4  ;;  %v3102_v16 = vld [vmem:[#allocation7 + $0xef8] sm:$0xff] }
 0x468   : > { %3298 = vmatpush.msrb.mxu1 %v3080_v19  ;;  %3429 = vmatpush.msra.mxu3 %v3110_v55  ;;  %v3625_v19 = vld [vmem:[#allocation7 + $0x15c0] sm:$0xff]  ;;  %v3098_v55 = vld [vmem:[#allocation7 + $0xed8] sm:$0xff] }
 0x469   : > { %3390 = vmatpush.msra.mxu0 %v3145_v33  ;;  %3487 = vmatpush.msra.mxu2 %v3190_v58  ;;  %v3621_v33 = vld [vmem:[#allocation7 + $0x15a0] sm:$0xff] }
 0x46a   : > { %3299 = vmatpush.msrb.mxu1 %v3076_v47  ;;  %3430 = vmatpush.msra.mxu3 %v3106_v9  ;;  %v2536_v17 = vpop.f32.mrf.mxu1  ;;  %v3064_v9 = vld [vmem:[#allocation7 + $0xdc8] sm:$0xff] }
 0x46b   : > { %3391 = vmatpush.msra.mxu0 %v3141_v34  ;;  %3488 = vmatpush.msra.mxu2 %v3186_v61  ;;  %v6551_v4 = vadd.f32 %v2536_v17, %v2514_v6  ;;  %v3129_v6 = vld [vmem:[#allocation7 + $0xfd0] sm:$0xff]  ;;  %v3060_v47 = vld [vmem:[#allocation7 + $0xda8] sm:$0xff]  ;;  %v3617_v34 = vld [vmem:[#allocation7 + $0x1580] sm:$0xff]  ;;  %v2300_v17 = vadd.f32 %v6457_v23, %v6425_v27 }
 0x46c   : > { %3300 = vmatpush.msrb.mxu1 %v3072_v51  ;;  %3331 = vmatmul.f32.gmra.mxu3 %v6485_v11  ;;  %v3125_v61 = vld [vmem:[#allocation7 + $0xfb0] sm:$0xff]  ;;  %v3090_v51 = vld [vmem:[#allocation7 + $0xe98] sm:$0xff] }
 0x46d   : > { %3693 = vmatpush.msrb.mxu2 %v3629_v54  ;;  %3392 = vmatpush.msra.mxu0 %v3137_v42  ;;  %v6557_v58 = vpop.f32.mrf.mxu3  ;;  %v3056_v54 = vld [vmem:[#allocation7 + $0xd88] sm:$0xff]  ;;  %v3613_v42 = vld [vmem:[#allocation7 + $0x1560] sm:$0xff]  ;;  %v3193_v27 = vld [vmem:[#allocation7 + $0x11d0] sm:$0xff] }
 0x46e   : > { %3377 = vmatmul.f32.gmra.mxu2 %v6523_v3  ;;  %3431 = vmatpush.msra.mxu3 %v3102_v16  ;;  %v2810_v16 = vpop.f32.mrf.mxu2  ;;  %v3082_v23 = vld [vmem:[#allocation7 + $0xe58] sm:$0xff] }
 0x46f   : > { %3301 = vmatpush.msrb.mxu1 %v3068_v32  ;;  %4985 = vmatmul.msk.f32.gmra.mxu0 %vm545_vm5, %v6510_v10 }
 0x470   : > { %3694 = vmatpush.msrb.mxu2 %v3625_v19  ;;  %3393 = vmatpush.msra.mxu0 %v3133_v31  ;;  %v3121_v19 = vld [vmem:[#allocation7 + $0xf90] sm:$0xff] }
 0x471   : > { %3432 = vmatpush.msra.mxu3 %v3098_v55  ;;  %3302 = vmatpush.msrb.mxu1 %v3064_v9  ;;  %v3197_v31 = vld [vmem:[#allocation7 + $0x11f0] sm:$0xff]  ;;  %v3086_v9 = vld [vmem:[#allocation7 + $0xe78] sm:$0xff] }
 0x472   : > { %3695 = vmatpush.msrb.mxu2 %v3621_v33  ;;  %3394 = vmatpush.msra.mxu0 %v3129_v6  ;;  %v3565_v33 = vld [vmem:[#allocation7 + $0x13e0] sm:$0xff] }
 0x473   : > { %3433 = vmatpush.msra.mxu3 %v3094_v46  ;;  %3303 = vmatpush.msrb.mxu1 %v3060_v47  ;;  %v2787_v32 = vpop.f32.mrf.mxu0  ;;  %v3609_v6 = vld [vmem:[#allocation7 + $0x1540] sm:$0xff]  ;;  %v2323_v46 = vadd.f32 %v6433_v60, %v2300_v17  ;;  %v3185_v60 = vld [vmem:[#allocation7 + $0x1190] sm:$0xff]  ;;  %v3074_v17 = vld [vmem:[#allocation7 + $0xe18] sm:$0xff] }
 0x474   : > { %3696 = vmatpush.msrb.mxu2 %v3617_v34  ;;  %3395 = vmatpush.msra.mxu0 %v3125_v61  ;;  %v2811_v55 = vadd.f32 %v2810_v16, %v2787_v32  ;;  %v3561_v47 = vld [vmem:[#allocation7 + $0x13c0] sm:$0xff]  ;;  %v3189_v61 = vld [vmem:[#allocation7 + $0x11b0] sm:$0xff] }
 0x475   : > { %3434 = vmatpush.msra.mxu3 %v3090_v51  ;;  %3304 = vmatpush.msrb.mxu1 %v3056_v54  ;;  %v3605_v34 = vld [vmem:[#allocation7 + $0x1520] sm:$0xff]  ;;  %v3078_v51 = vld [vmem:[#allocation7 + $0xe38] sm:$0xff]  ;;  %v2557_v54 = vadd.f32 %v6544_v37, %v2323_v46 }
 0x476   : > { %3697 = vmatpush.msrb.mxu2 %v3613_v42  ;;  %3305 = vmatmul.f32.vlgmr.msrb.gmra.mxu1 %v6497_v53  ;;  %v3557_v16 = vld [vmem:[#allocation7 + $0x13a0] sm:$0xff]  ;;  %v2813_v46 = vpop.f32.mrf.mxu2 }
 0x477   : > { %3396 = vmatpush.msra.mxu0 %v3121_v19  ;;  %3416 = vmatpush.msra.mxu1 %v3197_v31  ;;  %v3601_v32 = vld [vmem:[#allocation7 + $0x1500] sm:$0xff] }
 0x478   : > { %3435 = vmatpush.msra.mxu3 %v3086_v9  ;;  %3397 = vmatmul.f32.vlgmr.msra.gmra.mxu0 %v6463_v15  ;;  %v3553_v37 = vld [vmem:[#allocation7 + $0x1380] sm:$0xff] }
 0x479   : > { %3670 = vmatpush.msrb.mxu0 %v3565_v33  ;;  %3698 = vmatpush.msrb.mxu2 %v3609_v6  ;;  %v2833_v42 = vpop.f32.mrf.mxu3  ;;  %v3182_v33 = vld [vmem:[#allocation7 + $0x1178] sm:$0xff]  ;;  %v2303_v6 = vadd.f32 %v6478_v8, %v6435_v41  ;;  %v3549_v41 = vld [vmem:[#allocation7 + $0x1360] sm:$0xff] }
 0x47a   : > { %3417 = vmatpush.msra.mxu1 %v3193_v27  ;;  %3436 = vmatpush.msra.mxu3 %v3082_v23  ;;  %v6565_v19 = vadd.f32 %v2833_v42, %v2811_v55  ;;  %v2579_v31 = vpop.f32.mrf.mxu1  ;;  %v3597_v27 = vld [vmem:[#allocation7 + $0x14e0] sm:$0xff]  ;;  %v3070_v55 = vld [vmem:[#allocation7 + $0xdf8] sm:$0xff] }
 0x47b   : > { %3671 = vmatpush.msrb.mxu0 %v3561_v47  ;;  %3699 = vmatpush.msrb.mxu2 %v3605_v34  ;;  %v2580_v9 = vadd.f32 %v2579_v31, %v2557_v54  ;;  %v3178_v34 = vld [vmem:[#allocation7 + $0x1158] sm:$0xff]  ;;  %v3593_v8 = vld [vmem:[#allocation7 + $0x14c0] sm:$0xff]  ;;  %v2326_v54 = vadd.f32 %v6445_v45, %v2303_v6 }
 0x47c   : > { %3418 = vmatpush.msra.mxu1 %v3189_v61  ;;  %3437 = vmatpush.msra.mxu3 %v3078_v51  ;;  %v3174_v51 = vld [vmem:[#allocation7 + $0x1138] sm:$0xff]  ;;  %v3545_v42 = vld [vmem:[#allocation7 + $0x1340] sm:$0xff] }
 0x47d   : > { %3672 = vmatpush.msrb.mxu0 %v3557_v16  ;;  %3700 = vmatpush.msrb.mxu2 %v3601_v32  ;;  %v6570_v23 = vadd.f32 %v6535_v36, %v2580_v9  ;;  %v3066_v36 = vld [vmem:[#allocation7 + $0xdd8] sm:$0xff]  ;;  %v3589_v16 = vld [vmem:[#allocation7 + $0x14a0] sm:$0xff] }
 0x47e   : > { %3419 = vmatpush.msra.mxu1 %v3185_v60  ;;  %3438 = vmatpush.msra.mxu3 %v3074_v17  ;;  %v2790_v47 = vpop.f32.mrf.mxu0  ;;  %v3062_v31 = vld [vmem:[#allocation7 + $0xdb8] sm:$0xff]  ;;  %v2560_v17 = vadd.f32 %v6557_v58, %v2326_v54  ;;  %v3573_v54 = vld [vmem:[#allocation7 + $0x1420] sm:$0xff] }
 0x47f   : > { %4988 = vmatmul.msk.f32.vlgmr.msra.gmra.mxu2 %vm545_vm5, %v6489_v35  ;;  %v2814_v61 = vadd.f32 %v2813_v46, %v2790_v47  ;;  %3673 = vmatpush.msrb.mxu0 %v3553_v37  ;;  %v3170_v60 = vld [vmem:[#allocation7 + $0x1118] sm:$0xff]  ;;  %v3585_v37 = vld [vmem:[#allocation7 + $0x1480] sm:$0xff] }
 0x480   : > { %3450 = vmatpush.msrb.mxu1 %v3182_v33  ;;  %3701 = vmatpush.msrb.mxu2 %v3597_v27  ;;  %v3541_v33 = vld [vmem:[#allocation7 + $0x1320] sm:$0xff]  ;;  %v3058_v45 = vld [vmem:[#allocation7 + $0xd98] sm:$0xff] }
 0x481   : > { %3308 = vmatmul.f32.gmra.mxu1 %v6523_v3  ;;  %3439 = vmatpush.msra.mxu3 %v3070_v55  ;;  %v3166_v55 = vld [vmem:[#allocation7 + $0x10f8] sm:$0xff]  ;;  %v3537_v46 = vld [vmem:[#allocation7 + $0x1300] sm:$0xff] }
 0x482   : > { %3400 = vmatmul.f32.gmra.mxu0 %v6485_v11  ;;  %3451 = vmatpush.msrb.mxu1 %v3178_v34  ;;  %v2836_v32 = vpop.f32.mrf.mxu3  ;;  %v3581_v47 = vld [vmem:[#allocation7 + $0x1460] sm:$0xff] }
 0x483   : > { %3674 = vmatpush.msrb.mxu0 %v3549_v41  ;;  %3702 = vmatpush.msrb.mxu2 %v3593_v8  ;;  %v6578_v9 = vadd.f32 %v2836_v32, %v2814_v61  ;;  %v3645_v34 = vld [vmem:[#allocation7 + $0x1660] sm:$0xff]  ;;  %v3162_v61 = vld [vmem:[#allocation7 + $0x10d8] sm:$0xff]  ;;  %v3653_v32 = vrot.slane %v6260_v24, 4 }
 0x484   : > { %3440 = vmatpush.msra.mxu3 %v3066_v36  ;;  %3452 = vmatpush.msrb.mxu1 %v3174_v51  ;;  %v2582_v27 = vpop.f32.mrf.mxu1  ;;  %v3533_v41 = vld [vmem:[#allocation7 + $0x12e0] sm:$0xff]  ;;  %v3150_v24 = vld [vmem:[#allocation7 + $0x1078] sm:$0xff] }
 0x485   : > { %3675 = vmatpush.msrb.mxu0 %v3545_v42  ;;  %3703 = vmatpush.msrb.mxu2 %v3589_v16  ;;  %v2583_v6 = vadd.f32 %v2582_v27, %v2560_v17  ;;  %v3577_v8 = vld [vmem:[#allocation7 + $0x1440] sm:$0xff]  ;;  %v3630_v17 = vld [vmem:[#allocation7 + $0x15e8] sm:$0xff] }
 0x486   : > { %3441 = vmatpush.msra.mxu3 %v3062_v31  ;;  %3453 = vmatpush.msrb.mxu1 %v3170_v60  ;;  %v3641_v36 = vld [vmem:[#allocation7 + $0x1640] sm:$0xff] }
 0x487   : > { %3676 = vmatpush.msrb.mxu0 %v3541_v33  ;;  %3704 = vmatpush.msrb.mxu2 %v3585_v37  ;;  %v6581_v58 = vadd.f32 %v6549_v48, %v2583_v6  ;;  %v3158_v48 = vld [vmem:[#allocation7 + $0x10b8] sm:$0xff]  ;;  %v3529_v51 = vld [vmem:[#allocation7 + $0x12c0] sm:$0xff]  ;;  %v3567_v37 = vld [vmem:[#allocation7 + $0x13f0] sm:$0xff] }
 0x488   : > { %3442 = vmatpush.msra.mxu3 %v3058_v45  ;;  %4989 = vmatmul.msk.f32.gmra.mxu2 %vm545_vm5, %v6510_v10  ;;  %v3637_v42 = vld [vmem:[#allocation7 + $0x1620] sm:$0xff]  ;;  %v3626_v6 = vld [vmem:[#allocation7 + $0x15c8] sm:$0xff] }
 0x489   : > { %3443 = vmatmul.f32.vlgmr.msra.gmra.mxu3 %v6497_v53  ;;  %3454 = vmatpush.msrb.mxu1 %v3166_v55  ;;  %v3154_v53 = vld [vmem:[#allocation7 + $0x1098] sm:$0xff]  ;;  %v3525_v16 = vld [vmem:[#allocation7 + $0x12a0] sm:$0xff] }
 0x48a   : > { %3677 = vmatpush.msrb.mxu0 %v3537_v46  ;;  %3705 = vmatpush.msrb.mxu2 %v3581_v47  ;;  %v3569_v31 = vld [vmem:[#allocation7 + $0x1400] sm:$0xff]  ;;  %v3146_v55 = vld [vmem:[#allocation7 + $0x1058] sm:$0xff]  ;;  %v3622_v47 = vld [vmem:[#allocation7 + $0x15a8] sm:$0xff] }
 0x48b   : > { %3728 = vmatpush.msrb.mxu3 %v3645_v34  ;;  %4986 = vmatmul.msk.f32.vlgmr.msra.gmra.mxu1 %vm545_vm5, %v6489_v35  ;;  %v3633_v60 = vld [vmem:[#allocation7 + $0x1600] sm:$0xff]  ;;  %v3652_v35 = vrot.slane %v6252_v0, 4  ;;  %v3563_v0 = vld [vmem:[#allocation7 + $0x13d0] sm:$0xff] }
 0x48c   : > { %3455 = vmatpush.msrb.mxu1 %v3162_v61  ;;  %3678 = vmatpush.msrb.mxu0 %v3533_v41  ;;  %v3521_v45 = vld [vmem:[#allocation7 + $0x1280] sm:$0xff]  ;;  %v3559_v34 = vld [vmem:[#allocation7 + $0x13b0] sm:$0xff]  ;;  %v3142_v61 = vld [vmem:[#allocation7 + $0x1038] sm:$0xff] }
 0x48d   : > { %3706 = vmatpush.msrb.mxu2 %v3577_v8  ;;  %3729 = vmatpush.msrb.mxu3 %v3641_v36  ;;  %v6593_v27 = vsel %vm1140_vm7, %v3652_v35, %v3653_v32  ;;  %v3517_v46 = vld [vmem:[#allocation7 + $0x1260] sm:$0xff]  ;;  %v3618_v8 = vld [vmem:[#allocation7 + $0x1588] sm:$0xff]  ;;  %v6962_v36 = vmov 0.0  }
 0x48e   : > { %3456 = vmatpush.msrb.mxu1 %v3158_v48  ;;  %3679 = vmatpush.msrb.mxu0 %v3529_v51  ;;  %v3513_v41 = vld [vmem:[#allocation7 + $0x1240] sm:$0xff]  ;;  %v6600_v48 = vrot.slane %v6962_v36, 4  ;;  %v3138_v51 = vld [vmem:[#allocation7 + $0x1018] sm:$0xff]  ;;  %v3602_v36 = vld [vmem:[#allocation7 + $0x1508] sm:$0xff] }
 0x48f   : > { %3707 = vmatpush.msrb.mxu2 %v3573_v54  ;;  %3730 = vmatpush.msrb.mxu3 %v3637_v42  ;;  %v6590_v33 = vpop.f32.mrf.mxu0  ;;  %v3655_v54 = vrot.slane %v6224_v39, 4  ;;  %v3656_v42 = vrot.slane %v6220_v20, 4  ;;  %v3134_v39 = vld [vmem:[#allocation7 + $0xff8] sm:$0xff] }
 0x490   : > { %3457 = vmatpush.msrb.mxu1 %v3154_v53  ;;  %3680 = vmatpush.msrb.mxu0 %v3525_v16  ;;  %v3614_v16 = vld [vmem:[#allocation7 + $0x1568] sm:$0xff]  ;;  %v6609_v35 = vsel %vm1140_vm7, %v3653_v32, %v6600_v48 }
 0x491   : > { %3708 = vmatpush.msrb.mxu2 %v3569_v31  ;;  %3731 = vmatpush.msrb.mxu3 %v3633_v60  ;;  %v3551_v31 = vld [vmem:[#allocation7 + $0x1370] sm:$0xff]  ;;  %v3650_v60 = vrot.slane %v6256_v26, 4 }
 0x492   : > { %3709 = vmatmul.f32.vlgmr.msrb.gmra.mxu2 %v6593_v27  ;;  %3446 = vmatmul.f32.gmra.mxu3 %v6523_v3  ;;  %v3555_v3 = vld [vmem:[#allocation7 + $0x1390] sm:$0xff] }
 0x493   : > { %3762 = vmatpush.msra.mxu3 %v3630_v17  ;;  %3808 = vmatpush.msra.mxu2 %v3567_v37  ;;  %v3505_v17 = vld [vmem:[#allocation7 + $0x1200] sm:$0xff]  ;;  %v6615_v37 = vsel %vm1140_vm7, %v3655_v54, %v3656_v42  ;;  %v3539_v54 = vld [vmem:[#allocation7 + $0x1310] sm:$0xff]  ;;  %v6648_v20 = vsel %vm1140_vm7, %v3650_v60, %v6600_v48 }
 0x494   : > { %3458 = vmatpush.msrb.mxu1 %v3150_v24  ;;  %3681 = vmatpush.msrb.mxu0 %v3521_v45  ;;  %v3649_v24 = vrot.slane %v6248_v52, 4  ;;  %v3610_v45 = vld [vmem:[#allocation7 + $0x1548] sm:$0xff]  ;;  %v3523_v26 = vld [vmem:[#allocation7 + $0x1290] sm:$0xff] }
 0x495   : > { %4987 = vmatmul.msk.f32.gmra.mxu1 %vm545_vm5, %v6510_v10  ;;  %3763 = vmatpush.msra.mxu3 %v3626_v6  ;;  %v3509_v10 = vld [vmem:[#allocation7 + $0x1220] sm:$0xff]  ;;  %v3646_v6 = vld [vmem:[#allocation7 + $0x1668] sm:$0xff] }
 0x496   : > { %3809 = vmatpush.msra.mxu2 %v3563_v0  ;;  %3459 = vmatpush.msrb.mxu1 %v3146_v55  ;;  %v6621_v32 = vsel %vm1140_vm7, %v3649_v24, %v3650_v60  ;;  %v3547_v0 = vld [vmem:[#allocation7 + $0x1350] sm:$0xff]  ;;  %v3130_v55 = vld [vmem:[#allocation7 + $0xfd8] sm:$0xff]  ;;  %v3642_v52 = vld [vmem:[#allocation7 + $0x1648] sm:$0xff] }
 0x497   : > { %3682 = vmatpush.msrb.mxu0 %v3517_v46  ;;  %3764 = vmatpush.msra.mxu3 %v3622_v47  ;;  %v3606_v46 = vld [vmem:[#allocation7 + $0x1528] sm:$0xff]  ;;  %v2165_v47 = vadd.f32 %v6413_v22, %v6428_v29 }
 0x498   : > { %3810 = vmatpush.msra.mxu2 %v3559_v34  ;;  %3460 = vmatpush.msrb.mxu1 %v3142_v61  ;;  %v6604_v53 = vpop.f32.mrf.mxu0  ;;  %v3543_v34 = vld [vmem:[#allocation7 + $0x1330] sm:$0xff]  ;;  %v3126_v61 = vld [vmem:[#allocation7 + $0xfb8] sm:$0xff]  ;;  %v3598_v22 = vld [vmem:[#allocation7 + $0x14e8] sm:$0xff] }
 0x499   : > { %3683 = vmatpush.msrb.mxu0 %v3513_v41  ;;  %3765 = vmatpush.msra.mxu3 %v3618_v8  ;;  %v2879_v41 = vpop.f32.mrf.mxu3  ;;  %v3566_v24 = vld [vmem:[#allocation7 + $0x13e8] sm:$0xff] }
 0x49a   : > { %3811 = vmatpush.msra.mxu2 %v3555_v3  ;;  %3461 = vmatpush.msrb.mxu1 %v3138_v51  ;;  %v3638_v3 = vld [vmem:[#allocation7 + $0x1628] sm:$0xff] }
 0x49b   : > { %3684 = vmatpush.msrb.mxu0 %v3509_v10  ;;  %3712 = vmatmul.f32.gmra.mxu2 %v6609_v35  ;;  %v3122_v10 = vld [vmem:[#allocation7 + $0xf98] sm:$0xff] }
 0x49c   : > { %3766 = vmatpush.msra.mxu3 %v3614_v16  ;;  %3812 = vmatpush.msra.mxu2 %v3551_v31  ;;  %v2925_v16 = vpop.f32.mrf.mxu2 }
 0x49d   : > { %3462 = vmatpush.msrb.mxu1 %v3134_v39  ;;  %3685 = vmatpush.msrb.mxu0 %v3505_v17  ;;  %v2188_v17 = vadd.f32 %v6421_v44, %v2165_v47  ;;  %v3562_v44 = vld [vmem:[#allocation7 + $0x13c8] sm:$0xff]  ;;  %v3627_v47 = vld [vmem:[#allocation7 + $0x15d0] sm:$0xff] }
 0x49e   : > { %4990 = vmatmul.msk.f32.vlgmr.msrb.gmra.mxu3 %vm545_vm5, %v6615_v37  ;;  %3686 = vmatmul.f32.vlgmr.msrb.gmra.mxu0 %v6621_v32 }
 0x49f   : > { %3767 = vmatpush.msra.mxu3 %v3610_v45  ;;  %3797 = vmatpush.msra.mxu0 %v3646_v6  ;;  %v2856_v8 = vpop.f32.mrf.mxu1  ;;  %v3634_v45 = vld [vmem:[#allocation7 + $0x1608] sm:$0xff]  ;;  %v3535_v6 = vld [vmem:[#allocation7 + $0x12f0] sm:$0xff] }
 0x4a0   : > { %3813 = vmatpush.msra.mxu2 %v3547_v0  ;;  %3463 = vmatpush.msrb.mxu1 %v3130_v55  ;;  %v2880_v51 = vadd.f32 %v2879_v41, %v2856_v8  ;;  %v6638_v0 = vsel %vm1140_vm7, %v3656_v42, %v6600_v48  ;;  %v3631_v55 = vld [vmem:[#allocation7 + $0x15f0] sm:$0xff]  ;;  %v3554_v41 = vld [vmem:[#allocation7 + $0x1388] sm:$0xff] }
 0x4a1   : > { %3768 = vmatpush.msra.mxu3 %v3606_v46  ;;  %3798 = vmatpush.msra.mxu0 %v3642_v52  ;;  %v2948_v31 = vpop.f32.mrf.mxu0  ;;  %v3594_v46 = vld [vmem:[#allocation7 + $0x14c8] sm:$0xff]  ;;  %v3531_v52 = vld [vmem:[#allocation7 + $0x12d0] sm:$0xff] }
 0x4a2   : > { %3814 = vmatpush.msra.mxu2 %v3543_v34  ;;  %3464 = vmatpush.msrb.mxu1 %v3126_v61  ;;  %v6629_v29 = vadd.f32 %v6590_v33, %v2880_v51  ;;  %v6631_v39 = vadd.f32 %v2948_v31, %v2925_v16  ;;  %v2422_v33 = vadd.f32 %v6526_v18, %v2188_v17  ;;  %v3590_v18 = vld [vmem:[#allocation7 + $0x14a8] sm:$0xff]  ;;  %v3527_v34 = vld [vmem:[#allocation7 + $0x12b0] sm:$0xff] }
 0x4a3   : > { %3769 = vmatpush.msra.mxu3 %v3602_v36  ;;  %3799 = vmatpush.msra.mxu0 %v3638_v3  ;;  %v3623_v61 = vld [vmem:[#allocation7 + $0x15b0] sm:$0xff]  ;;  %v3586_v8 = vld [vmem:[#allocation7 + $0x1488] sm:$0xff]  ;;  %v2882_v36 = vpop.f32.mrf.mxu3  ;;  %v2231_v16 = vadd.f32 %v6439_v59, %v6411_v7 }
 0x4a4   : > { %3815 = vmatpush.msra.mxu2 %v3539_v54  ;;  %3465 = vmatpush.msrb.mxu1 %v3122_v10  ;;  %v2445_v42 = vadd.f32 %v6533_v25, %v2422_v33  ;;  %v3619_v48 = vld [vmem:[#allocation7 + $0x1590] sm:$0xff]  ;;  %v2928_v60 = vpop.f32.mrf.mxu2  ;;  %v3582_v25 = vld [vmem:[#allocation7 + $0x1468] sm:$0xff] }
 0x4a5   : > { %3466 = vmatmul.f32.vlgmr.msrb.gmra.mxu1 %v6463_v15  ;;  %3770 = vmatpush.msra.mxu3 %v3598_v22  ;;  %v3558_v15 = vld [vmem:[#allocation7 + $0x13a8] sm:$0xff]  ;;  %v3519_v17 = vld [vmem:[#allocation7 + $0x1270] sm:$0xff]  ;;  %v2254_v33 = vadd.f32 %v6431_v1, %v2231_v16  ;;  %v3648_v16 = vld [vmem:[#allocation7 + $0x1678] sm:$0xff] }
 0x4a6   : > { %3739 = vmatpush.msra.mxu1 %v3566_v24  ;;  %3800 = vmatpush.msra.mxu0 %v3634_v45  ;;  %v2468_v31 = vadd.f32 %v6513_v2, %v2445_v42  ;;  %v3550_v22 = vld [vmem:[#allocation7 + $0x1368] sm:$0xff]  ;;  %v3615_v45 = vld [vmem:[#allocation7 + $0x1570] sm:$0xff] }
 0x4a7   : > { %3816 = vmatpush.msra.mxu2 %v3535_v6  ;;  %4991 = vmatmul.msk.f32.gmra.mxu3 %vm545_vm5, %v6638_v0  ;;  %v3578_v6 = vld [vmem:[#allocation7 + $0x1448] sm:$0xff]  ;;  %v3611_v59 = vld [vmem:[#allocation7 + $0x1550] sm:$0xff] }
 0x4a8   : > { %3831 = vmatpush.msrb.mxu0 %v3631_v55  ;;  %3740 = vmatpush.msra.mxu1 %v3562_v44  ;;  %v3546_v55 = vld [vmem:[#allocation7 + $0x1348] sm:$0xff]  ;;  %v3515_v44 = vld [vmem:[#allocation7 + $0x1250] sm:$0xff] }
 0x4a9   : > { %3689 = vmatmul.f32.gmra.mxu0 %v6648_v20  ;;  %3771 = vmatpush.msra.mxu3 %v3594_v46  ;;  %v3574_v2 = vld [vmem:[#allocation7 + $0x1428] sm:$0xff]  ;;  %v2488_v46 = vadd.f32 %v6506_v12, %v2254_v33  ;;  %v3607_v1 = vld [vmem:[#allocation7 + $0x1530] sm:$0xff]  ;;  %v3644_v33 = vld [vmem:[#allocation7 + $0x1658] sm:$0xff] }
 0x4aa   : > { %3817 = vmatpush.msra.mxu2 %v3531_v52  ;;  %3832 = vmatpush.msrb.mxu0 %v3627_v47  ;;  %v2859_v3 = vpop.f32.mrf.mxu1  ;;  %v3511_v52 = vld [vmem:[#allocation7 + $0x1230] sm:$0xff]  ;;  %v3570_v47 = vld [vmem:[#allocation7 + $0x1408] sm:$0xff] }
 0x4ab   : > { %3741 = vmatpush.msra.mxu1 %v3558_v15  ;;  %3772 = vmatpush.msra.mxu3 %v3590_v18  ;;  %v2883_v51 = vadd.f32 %v2882_v36, %v2859_v3  ;;  %v2951_v54 = vpop.f32.mrf.mxu0  ;;  %v3538_v15 = vld [vmem:[#allocation7 + $0x1308] sm:$0xff]  ;;  %v3507_v18 = vld [vmem:[#allocation7 + $0x1210] sm:$0xff]  ;;  %v3564_v3 = vld [vmem:[#allocation7 + $0x13d8] sm:$0xff] }
 0x4ac   : > { %3818 = vmatpush.msra.mxu2 %v3527_v34  ;;  %3833 = vmatpush.msrb.mxu0 %v3623_v61  ;;  %v6652_v10 = vadd.f32 %v2951_v54, %v2928_v60  ;;  %v3603_v12 = vld [vmem:[#allocation7 + $0x1510] sm:$0xff]  ;;  %v3568_v61 = vld [vmem:[#allocation7 + $0x13f8] sm:$0xff] }
 0x4ad   : > { %3742 = vmatpush.msra.mxu1 %v3554_v41  ;;  %3773 = vmatpush.msra.mxu3 %v3586_v8  ;;  %v2906_v24 = vadd.f32 %v6604_v53, %v2883_v51  ;;  %v3542_v53 = vld [vmem:[#allocation7 + $0x1328] sm:$0xff]  ;;  %v3591_v54 = vld [vmem:[#allocation7 + $0x14b0] sm:$0xff] }
 0x4ae   : > { %3819 = vmatpush.msra.mxu2 %v3523_v26  ;;  %3834 = vmatpush.msrb.mxu0 %v3619_v48  ;;  %v3534_v8 = vld [vmem:[#allocation7 + $0x12e8] sm:$0xff]  ;;  %v6666_v36 = vpop.f32.mrf.mxu2  ;;  %v3560_v48 = vld [vmem:[#allocation7 + $0x13b8] sm:$0xff] }
 0x4af   : > { %3469 = vmatmul.f32.gmra.mxu1 %v6485_v11  ;;  %3774 = vmatpush.msra.mxu3 %v3582_v25  ;;  %v6660_v7 = vadd.f32 %v2906_v24, %v2468_v31  ;;  %v2511_v11 = vadd.f32 %v6531_v21, %v2488_v46  ;;  %v3599_v21 = vld [vmem:[#allocation7 + $0x14f0] sm:$0xff]  ;;  %v3526_v51 = vld [vmem:[#allocation7 + $0x12a8] sm:$0xff]  ;;  %v3556_v25 = vld [vmem:[#allocation7 + $0x1398] sm:$0xff] }
 0x4b0   : > { %3743 = vmatpush.msra.mxu1 %v3550_v22  ;;  %3820 = vmatpush.msra.mxu2 %v3519_v17  ;;  %v3522_v31 = vld [vmem:[#allocation7 + $0x1288] sm:$0xff]  ;;  %v3587_v22 = vld [vmem:[#allocation7 + $0x1490] sm:$0xff]  ;;  %v3552_v17 = vld [vmem:[#allocation7 + $0x1378] sm:$0xff] }
 0x4b1   : > { %3835 = vmatpush.msrb.mxu0 %v3615_v45  ;;  %3775 = vmatpush.msra.mxu3 %v3578_v6  ;;  %v2534_v34 = vadd.f32 %v6537_v56, %v2511_v11  ;;  %v3530_v56 = vld [vmem:[#allocation7 + $0x12c8] sm:$0xff]  ;;  %v3575_v11 = vld [vmem:[#allocation7 + $0x1430] sm:$0xff] }
 0x4b2   : > { %3744 = vmatpush.msra.mxu1 %v3546_v55  ;;  %3821 = vmatpush.msra.mxu2 %v3515_v44  ;;  %v3518_v24 = vld [vmem:[#allocation7 + $0x1268] sm:$0xff]  ;;  %v2093_v55 = vadd.f32 %v6389_v28, %v6384_v5  ;;  %v3583_v44 = vld [vmem:[#allocation7 + $0x1470] sm:$0xff] }
 0x4b3   : > { %3836 = vmatpush.msrb.mxu0 %v3611_v59  ;;  %3776 = vmatpush.msra.mxu3 %v3574_v2  ;;  %v3548_v59 = vld [vmem:[#allocation7 + $0x1358] sm:$0xff]  ;;  %v3514_v46 = vld [vmem:[#allocation7 + $0x1248] sm:$0xff] }
 0x4b4   : > { %3745 = vmatpush.msra.mxu1 %v3542_v53  ;;  %3822 = vmatpush.msra.mxu2 %v3511_v52  ;;  %v2971_v42 = vpop.f32.mrf.mxu1  ;;  %v3544_v52 = vld [vmem:[#allocation7 + $0x1338] sm:$0xff]  ;;  %v3510_v5 = vld [vmem:[#allocation7 + $0x1228] sm:$0xff] }
 0x4b5   : > { %3837 = vmatpush.msrb.mxu0 %v3607_v1  ;;  %3777 = vmatpush.msra.mxu3 %v3570_v47  ;;  %v2972_v41 = vadd.f32 %v2971_v42, %v6631_v39  ;;  %v3595_v39 = vld [vmem:[#allocation7 + $0x14d0] sm:$0xff]  ;;  %v3640_v1 = vld [vmem:[#allocation7 + $0x1638] sm:$0xff]  ;;  %v2116_v47 = vadd.f32 %v6391_v50, %v2093_v55  ;;  %v2096_v50 = vadd.f32 %v6399_v40, %v6396_v63 }
 0x4b6   : > { %3746 = vmatpush.msra.mxu1 %v3538_v15  ;;  %3823 = vmatpush.msra.mxu2 %v3507_v18  ;;  %v3540_v15 = vld [vmem:[#allocation7 + $0x1318] sm:$0xff]  ;;  %v3571_v42 = vld [vmem:[#allocation7 + $0x1410] sm:$0xff] }
 0x4b7   : > { %3778 = vmatmul.f32.vlgmr.msra.gmra.mxu3 %v6593_v27  ;;  %3824 = vmatmul.f32.vlgmr.msra.gmra.mxu2 %v6621_v32  ;;  %v6670_v26 = vadd.f32 %v2972_v41, %v2534_v34  ;;  %v6681_v2 = vpop.f32.mrf.mxu2  ;;  %v2350_v18 = vadd.f32 %v6469_v57, %v2116_v47  ;;  %v3647_v34 = vld [vmem:[#allocation7 + $0x1670] sm:$0xff]  ;;  %v2119_v40 = vadd.f32 %v6401_v62, %v2096_v50  ;;  %v3516_v62 = vld [vmem:[#allocation7 + $0x1258] sm:$0xff] }
 0x4b8   : > { %3838 = vmatpush.msrb.mxu0 %v3603_v12  ;;  %3877 = vmatpush.msrb.mxu3 %v3568_v61  ;;  %v6674_v60 = vpop.f32.mrf.mxu3  ;;  %v3536_v12 = vld [vmem:[#allocation7 + $0x12f8] sm:$0xff] }
 0x4b9   : > { %3747 = vmatpush.msra.mxu1 %v3534_v8  ;;  %4992 = vmatmul.msk.f32.vlgmr.msra.gmra.mxu0 %vm545_vm5, %v6615_v37  ;;  %v3636_v61 = vld [vmem:[#allocation7 + $0x1618] sm:$0xff]  ;;  %v3643_v8 = vld [vmem:[#allocation7 + $0x1650] sm:$0xff]  ;;  %v2373_v57 = vadd.f32 %v6459_v13, %v2350_v18 }
 0x4ba   : > { %3839 = vmatpush.msrb.mxu0 %v3599_v21  ;;  %3878 = vmatpush.msrb.mxu3 %v3564_v3  ;;  %v3532_v21 = vld [vmem:[#allocation7 + $0x12d8] sm:$0xff] }
 0x4bb   : > { %3748 = vmatpush.msra.mxu1 %v3530_v56  ;;  %3935 = vmatpush.msrb.mxu2 %v3648_v16  ;;  %v3639_v56 = vld [vmem:[#allocation7 + $0x1630] sm:$0xff]  ;;  %v3632_v16 = vld [vmem:[#allocation7 + $0x15f8] sm:$0xff] }
 0x4bc   : > { %3840 = vmatpush.msrb.mxu0 %v3595_v39  ;;  %3879 = vmatpush.msrb.mxu3 %v3560_v48  ;;  %v3528_v39 = vld [vmem:[#allocation7 + $0x12b8] sm:$0xff]  ;;  %v2396_v48 = vadd.f32 %v6449_v30, %v2373_v57 }
 0x4bd   : > { %3749 = vmatpush.msra.mxu1 %v3526_v51  ;;  %3936 = vmatpush.msrb.mxu2 %v3644_v33  ;;  %v3635_v51 = vld [vmem:[#allocation7 + $0x1610] sm:$0xff] }
 0x4be   : > { %3841 = vmatpush.msrb.mxu0 %v3591_v54  ;;  %3880 = vmatpush.msrb.mxu3 %v3556_v25  ;;  %v2974_v45 = vpop.f32.mrf.mxu1  ;;  %v3524_v54 = vld [vmem:[#allocation7 + $0x1298] sm:$0xff]  ;;  %v3046_v25 = vadd.f32 %v6565_v19, %v2396_v48 }
 0x4bf   : > { %3750 = vmatpush.msra.mxu1 %v3522_v31  ;;  %3781 = vmatmul.f32.gmra.mxu3 %v6609_v35  ;;  %v2975_v6 = vadd.f32 %v2974_v45, %v6652_v10  ;;  %v3579_v10 = vld [vmem:[#allocation7 + $0x1450] sm:$0xff]  ;;  %v3628_v45 = vld [vmem:[#allocation7 + $0x15d8] sm:$0xff] }
 0x4c0   : > { %3827 = vmatmul.f32.gmra.mxu2 %v6648_v20  ;;  %3842 = vmatpush.msrb.mxu0 %v3587_v22  ;;  %v3624_v19 = vld [vmem:[#allocation7 + $0x15b8] sm:$0xff] }
 0x4c1   : > { %3881 = vmatpush.msrb.mxu3 %v3552_v17  ;;  %3751 = vmatpush.msra.mxu1 %v3518_v24  ;;  %v6684_v53 = vadd.f32 %v2975_v6, %v6551_v4  ;;  %v6688_v28 = vpop.f32.mrf.mxu3  ;;  %v3506_v4 = vld [vmem:[#allocation7 + $0x1208] sm:$0xff]  ;;  %v3260_v3 = vpop.f32.mrf.mxu2  ;;  %v2353_v17 = vadd.f32 %v6502_v14, %v2119_v40  ;;  %v3520_v24 = vld [vmem:[#allocation7 + $0x1278] sm:$0xff] }
 0x4c2   : > { %4993 = vmatmul.msk.f32.gmra.mxu0 %vm545_vm5, %v6638_v0  ;;  %3937 = vmatpush.msrb.mxu2 %v3640_v1  ;;  %v3512_v14 = vld [vmem:[#allocation7 + $0x1238] sm:$0xff] }
 0x4c3   : > { %3843 = vmatpush.msrb.mxu0 %v3583_v44  ;;  %3882 = vmatpush.msrb.mxu3 %v3548_v59  ;;  %v2376_v44 = vadd.f32 %v6480_v49, %v2353_v17  ;;  %v3620_v59 = vld [vmem:[#allocation7 + $0x1598] sm:$0xff] }
 0x4c4   : > { %3752 = vmatpush.msra.mxu1 %v3514_v46  ;;  %3938 = vmatpush.msrb.mxu2 %v3636_v61  ;;  %v3616_v49 = vld [vmem:[#allocation7 + $0x1578] sm:$0xff] }
 0x4c5   : > { %3844 = vmatpush.msrb.mxu0 %v3579_v10  ;;  %3883 = vmatpush.msrb.mxu3 %v3544_v52  ;;  %v3508_v10 = vld [vmem:[#allocation7 + $0x1218] sm:$0xff] }
 0x4c6   : > { %3753 = vmatpush.msra.mxu1 %v3510_v5  ;;  %v3576_v61 = vld [vmem:[#allocation7 + $0x1438] sm:$0xff] }
 0x4c7   : > { %3845 = vmatpush.msrb.mxu0 %v3575_v11  ;;  %3884 = vmatpush.msrb.mxu3 %v3540_v15  ;;  %v3237_v41 = vpop.f32.mrf.mxu0 }
 0x4c8   : > { %3754 = vmatpush.msra.mxu1 %v3506_v4  ;;  %4996 = vmatmul.msk.f32.vlgmr.msrb.gmra.mxu2 %vm545_vm5, %v6615_v37  ;;  %v3261_v63 = vadd.f32 %v3260_v3, %v3237_v41  ;;  %v3608_v4 = vld [vmem:[#allocation7 + $0x1538] sm:$0xff] }
 0x4c9   : > { %3755 = vmatmul.f32.vlgmr.msra.gmra.mxu1 %v6621_v32  ;;  %3846 = vmatpush.msrb.mxu0 %v3571_v42 }
 0x4ca   : > { %3866 = vmatpush.msrb.mxu1 %v3647_v34  ;;  %3885 = vmatpush.msrb.mxu3 %v3536_v12  ;;  %v3263_v46 = vpop.f32.mrf.mxu2  ;;  %v3600_v34 = vld [vmem:[#allocation7 + $0x14f8] sm:$0xff] }
 0x4cb   : > { %3847 = vmatmul.f32.vlgmr.msrb.gmra.mxu0 %v6593_v27  ;;  %v3584_v12 = vld [vmem:[#allocation7 + $0x1478] sm:$0xff] }
 0x4cc   : > { %3867 = vmatpush.msrb.mxu1 %v3643_v8  ;;  %3886 = vmatpush.msrb.mxu3 %v3532_v21 }
 0x4cd   : > { %v3283_v13 = vpop.f32.mrf.mxu3 }
 0x4ce   : > { %3868 = vmatpush.msrb.mxu1 %v3639_v56  ;;  %3887 = vmatpush.msrb.mxu3 %v3528_v39  ;;  %v3284_v31 = vadd.f32 %v3283_v13, %v3261_v63  ;;  %v3017_v22 = vpop.f32.mrf.mxu1 }
 0x4cf   : > { %v3018_v30 = vadd.f32 %v3017_v22, %v6674_v60 }
 0x4d0   : > { %3869 = vmatpush.msrb.mxu1 %v3635_v51  ;;  %3888 = vmatpush.msrb.mxu3 %v3524_v54  ;;  %v6704_v6 = vadd.f32 %v3284_v31, %v3046_v25  ;;  %v6752_v25 = vld [vmem:[#allocation8] sm:$0xf] }
 0x4d1   : > { %v3041_v33 = vadd.f32 %v6666_v36, %v3018_v30  ;;  %3758 = vmatmul.f32.gmra.mxu1 %v6648_v20  ;;  %4997 = vmatmul.msk.f32.gmra.mxu2 %vm545_vm5, %v6638_v0  ;;  %v2399_v36 = vadd.f32 %v6466_v38, %v2376_v44  ;;  %v3956_v17 = vperm.slane %v6752_v25, 0 }
 0x4d2   : > { %3900 = vmatpush.msra.mxu1 %v3632_v16  ;;  %3889 = vmatpush.msrb.mxu3 %v3520_v24  ;;  %v3240_v55 = vpop.f32.mrf.mxu0 }
 0x4d3   : > { %3850 = vmatmul.f32.gmra.mxu0 %v6609_v35  ;;  %v6711_v60 = vadd.f32 %v3041_v33, %v6570_v23  ;;  %v3264_v52 = vadd.f32 %v3263_v46, %v3240_v55  ;;  %v3050_v1 = vadd.f32 %v6578_v9, %v2399_v36  ;;  %v3612_v23 = vld [vmem:[#allocation7 + $0x1558] sm:$0xff] }
 0x4d4   : > { %3901 = vmatpush.msra.mxu1 %v3628_v45  ;;  %3890 = vmatpush.msrb.mxu3 %v3516_v62  ;;  %v3604_v9 = vld [vmem:[#allocation7 + $0x1518] sm:$0xff] }
 0x4d6   : > { %3902 = vmatpush.msra.mxu1 %v3624_v19  ;;  %3891 = vmatpush.msrb.mxu3 %v3512_v14  ;;  %v3286_v5 = vpop.f32.mrf.mxu3 }
 0x4d7   : > { %v3287_v47 = vadd.f32 %v3286_v5, %v3264_v52 }
 0x4d8   : > { %3903 = vmatpush.msra.mxu1 %v3620_v59  ;;  %3892 = vmatpush.msrb.mxu3 %v3508_v10  ;;  %v3020_v11 = vpop.f32.mrf.mxu1 }
 0x4d9   : > { %3893 = vmatmul.f32.vlgmr.msrb.gmra.mxu3 %v6621_v32  ;;  %v6718_v15 = vadd.f32 %v3287_v47, %v3050_v1  ;;  %v3021_v38 = vadd.f32 %v3020_v11, %v6688_v28  ;;  %4994 = vmatmul.msk.f32.vlgmr.msrb.gmra.mxu1 %vm545_vm5, %v6615_v37  ;;  %v3596_v32 = vld [vmem:[#allocation7 + $0x14d8] sm:$0xff] }
 0x4da   : > { %3904 = vmatpush.msra.mxu1 %v3616_v49  ;;  %v3592_v28 = vld [vmem:[#allocation7 + $0x14b8] sm:$0xff] }
 0x4db   : > { %v3044_v18 = vadd.f32 %v6681_v2, %v3021_v38  ;;  %v3588_v37 = vld [vmem:[#allocation7 + $0x1498] sm:$0xff] }
 0x4dc   : > { %3905 = vmatpush.msra.mxu1 %v3612_v23  ;;  %v3580_v2 = vld [vmem:[#allocation7 + $0x1458] sm:$0xff] }
 0x4dd   : > { %v6725_v42 = vadd.f32 %v3044_v18, %v6581_v58  ;;  %v3572_v58 = vld [vmem:[#allocation7 + $0x1418] sm:$0xff] }
 0x4de   : > { %3906 = vmatpush.msra.mxu1 %v3608_v4 }
 0x4e0   : > { %3907 = vmatpush.msra.mxu1 %v3604_v9 }
 0x4e1   : > { %3896 = vmatmul.f32.gmra.mxu3 %v6648_v20  ;;  %4995 = vmatmul.msk.f32.gmra.mxu1 %vm545_vm5, %v6638_v0 }
 0x4e2   : > { %3908 = vmatpush.msra.mxu1 %v3600_v34 }
 0x4e3   : > { %v6731_v20 = vpop.f32.mrf.mxu0 }
 0x4e4   : > { %3909 = vmatpush.msra.mxu1 %v3596_v32 }
 0x4e6   : > { %3910 = vmatpush.msra.mxu1 %v3592_v28  ;;  %v6733_v41 = vpop.f32.mrf.mxu2  ;;  %v3329_v0 = vpop.f32.mrf.mxu3  ;;  %v6963_v28 = vld [vmem:[#allocation30_spill] sm:$0xff] }
 0x4e8   : > { %3911 = vmatpush.msra.mxu1 %v3588_v37  ;;  %v2162_v37 = vadd.f32 %v6963_v28, %v6415_v43 }
 0x4ea   : > { %3912 = vmatpush.msra.mxu1 %v3584_v12 }
 0x4ec   : > { %3913 = vmatpush.msra.mxu1 %v3580_v2  ;;  %v6736_v8 = vpop.f32.mrf.mxu0 }
 0x4ee   : > { %3914 = vmatpush.msra.mxu1 %v3576_v61 }
 0x4ef   : > { %v6740_v57 = vpop.f32.mrf.mxu3 }
 0x4f0   : > { %3915 = vmatpush.msra.mxu1 %v3572_v58 }
 0x4f1   : > { %3916 = vmatmul.f32.vlgmr.msra.gmra.mxu1 %v6593_v27  ;;  %v6738_v21 = vpop.f32.mrf.mxu2 }
 0x4f3   : > { %v3306_v50 = vpop.f32.mrf.mxu1 }
 0x4f4   : > { %v3330_v43 = vadd.f32 %v3329_v0, %v3306_v50 }
 0x4f5   : > { %v6744_v56 = vpop.f32.mrf.mxu0 }
 0x4f9   : > { %3919 = vmatmul.f32.gmra.mxu1 %v6609_v35 }
 0x4fe   : > { %v6742_v3 = vpop.f32.mrf.mxu1 }
 0x4ff   : > { %v6748_v63 = vpop.f32.mrf.mxu0 }
 0x502   : > { %v3490_v39 = vpop.f32.mrf.mxu2 }
 0x508   : > { %v6746_v48 = vpop.f32.mrf.mxu1 }
 0x50b   : > { %v3493_v40 = vpop.f32.mrf.mxu2 }
 0x50c   : > { %v3444_v27 = vpop.f32.mrf.mxu3 }
 0x512   : > { %v6750_v51 = vpop.f32.mrf.mxu1 }
 0x515   : > { %v3447_v35 = vpop.f32.mrf.mxu3  ;;  %v3710_v13 = vpop.f32.mrf.mxu2 }
 0x51b   : > { %v3687_v54 = vpop.f32.mrf.mxu0 }
 0x51c   : > { %v3711_v16 = vadd.f32 %v3710_v13, %v3687_v54 }
 0x51e   : > { %v3713_v44 = vpop.f32.mrf.mxu2 }
 0x521   : > { %v3733_v31 = vpop.f32.mrf.mxu3 }
 0x522   : > { %v3734_v22 = vadd.f32 %v3733_v31, %v3711_v16  ;;  %v3467_v24 = vpop.f32.mrf.mxu1  ;;  %v6966_v16 = vld [vmem:[#allocation24_spill] sm:$0xff] }
 0x523   : > { %v3468_v30 = vadd.f32 %v3467_v24, %v3444_v27  ;;  %v3353_v24 = vadd.f32 %v6731_v20, %v3330_v43 }
 0x524   : > { %v3946_v45 = vadd.f32 %v3734_v22, %v6704_v6  ;;  %v6967_v22 = vld [vmem:[#allocation32_spill] sm:$0xff] }
 0x525   : > { %v3491_v62 = vadd.f32 %v3490_v39, %v3468_v30  ;;  %v6964_v39 = vld [vmem:[#allocation31_spill] sm:$0xff] }
 0x526   : > { %v3964_v33 = vadd.f32 %v3956_v17, %v3946_v45  ;;  %v3690_v19 = vpop.f32.mrf.mxu0  ;;  %v2185_v27 = vadd.f32 %v6964_v39, %v2162_v37 }
 0x527   : > { %v6757_v55 = vadd.f32 %v3491_v62, %v6711_v60  ;;  %v3714_v59 = vadd.f32 %v3713_v44, %v3690_v19 }
 0x528   : > { %v3972_v14 = vmax.f32 %v3964_v33, 0.0 }
 0x52a   : > { %v3984_v46 = vrot.slane %v3972_v14, 1  ;;  %v3736_v36 = vpop.f32.mrf.mxu3 }
 0x52b   : > { %v3737_v10 = vadd.f32 %v3736_v36, %v3714_v59  ;;  %v3957_v59 = vperm.slane %v6752_v25, 1 }
 0x52c   : > { %v3992_v52 = vmax.f32 %v3972_v14, %v3984_v46  ;;  %v3470_v49 = vpop.f32.mrf.mxu1  ;;  %v3333_v46 = vadd.f32 %v6740_v57, %v6742_v3 }
 0x52d   : > { %v3950_v5 = vadd.f32 %v3737_v10, %v6718_v15  ;;  %v3471_v1 = vadd.f32 %v3470_v49, %v3447_v35  ;;  %v6965_v35 = vld [vmem:[#allocation33_spill] sm:$0xff] }
 0x52e   : > { %v4016_v47 = vrot.slane %v3992_v52, 1  ;;  %v4024_v11 = vrot.slane %v3992_v52, 2  ;;  %v4032_v32 = vrot.slane %v3992_v52, 3  ;;  %v2419_v54 = vadd.f32 %v6965_v35, %v2185_v27 }
 0x52f   : > { %v3968_v23 = vadd.f32 %v3956_v17, %v3950_v5  ;;  %v3494_v6 = vadd.f32 %v3493_v40, %v3471_v1  ;;  %v3356_v0 = vadd.f32 %v6736_v8, %v3333_v46 }
 0x530   : > { %v4068_v60 = vsel %vm1506_vm8, %v3992_v52, %v4016_v47  ;;  %v2442_v31 = vadd.f32 %v6966_v16, %v2419_v54 }
 0x531   : > { %v3976_v38 = vmax.f32 %v3968_v23, 0.0  ;;  %v6761_v4 = vadd.f32 %v3494_v6, %v6725_v42  ;;  %v4072_v34 = vsel %vm489_vm2, %v4068_v60, %v4024_v11  ;;  %v3501_v47 = vadd.f32 %v3356_v0, %v6660_v7 }
 0x532   : > { %v4076_v2 = vsel %vm1515_vm9, %v4072_v34, %v4032_v32  ;;  %v2465_v17 = vadd.f32 %v6967_v22, %v2442_v31  ;;  %v3402_v7 = vadd.f32 %v6748_v63, %v6738_v21 }
 0x533   : > { %v4000_v18 = vrot.slane %v3976_v38, 1 }
 0x534   : > { %v3047_v62 = vadd.f32 %v6629_v29, %v2465_v17  ;;  %v3399_v29 = vadd.f32 %v6744_v56, %v6733_v41  ;;  %v3958_v41 = vperm.slane %v6752_v25, 2 }
 0x535   : > { %v4008_v9 = vmax.f32 %v3976_v38, %v4000_v18 }
 0x536   : > { %v3802_v13 = vpop.f32.mrf.mxu0  ;;  %v3497_v44 = vadd.f32 %v3353_v24, %v3047_v62  ;;  %v3422_v6 = vadd.f32 %v6746_v48, %v3399_v29 }
 0x537   : > { %v4044_v15 = vrot.slane %v4008_v9, 4  ;;  %v4052_v12 = vrot.slane %v4008_v9, 5  ;;  %v4060_v61 = vrot.slane %v4008_v9, 6 }
 0x538   : > { %v3498_v18 = vadd.f32 %v3422_v6, %v6670_v26  ;;  %v3959_v6 = vperm.slane %v6752_v25, 3 }
 0x539   : > { %v4080_v58 = vsel %vm1140_vm7, %v4076_v2, %v4044_v15  ;;  %v3425_v15 = vadd.f32 %v6750_v51, %v3402_v7 }
 0x53a   : > { %v4084_v42 = vsel %vm975_vm6, %v4080_v58, %v4052_v12  ;;  %v3779_v30 = vpop.f32.mrf.mxu3  ;;  %v3825_v11 = vpop.f32.mrf.mxu2 }
 0x53b   : > { %v6772_v40 = vsel %vm500_vm3, %v4084_v42, %v4060_v61 }
 0x53f   : > { %v3805_v33 = vpop.f32.mrf.mxu0 }
 0x542   : > { %v3782_v50 = vpop.f32.mrf.mxu3 }
 0x543   : > { %v3828_v58 = vpop.f32.mrf.mxu2 }
 0x546   : > { %v3756_v45 = vpop.f32.mrf.mxu1 }
 0x547   : > { %v3780_v19 = vadd.f32 %v3779_v30, %v3756_v45 }
 0x548   : > { %v3848_v1 = vpop.f32.mrf.mxu0 }
 0x549   : > { %v3803_v14 = vadd.f32 %v3802_v13, %v3780_v19  ;;  %v3849_v60 = vadd.f32 %v3848_v1, %v3825_v11  ;;  %v3502_v13 = vadd.f32 %v3425_v15, %v6684_v53 }
 0x54b   : > { %v3947_v36 = vadd.f32 %v3803_v14, %v3497_v44  ;;  %v3940_v46 = vpop.f32.mrf.mxu2 }
 0x54d   : > { %v3965_v10 = vadd.f32 %v3957_v59, %v3947_v36 }
 0x54e   : > { %v3759_v20 = vpop.f32.mrf.mxu1 }
 0x54f   : > { %v3973_v52 = vmax.f32 %v3965_v10, 0.0  ;;  %v3783_v49 = vadd.f32 %v3782_v50, %v3759_v20 }
 0x550   : > { %v3851_v12 = vpop.f32.mrf.mxu0 }
 0x551   : > { %v3985_v5 = vrot.slane %v3973_v52, 1  ;;  %v3806_v23 = vadd.f32 %v3805_v33, %v3783_v49  ;;  %v3852_v27 = vadd.f32 %v3851_v12, %v3828_v58 }
 0x553   : > { %v3993_v57 = vmax.f32 %v3973_v52, %v3985_v5  ;;  %v3951_v3 = vadd.f32 %v3806_v23, %v3501_v47 }
 0x555   : > { %v4017_v38 = vrot.slane %v3993_v57, 1  ;;  %v3969_v8 = vadd.f32 %v3957_v59, %v3951_v3  ;;  %v4025_v34 = vrot.slane %v3993_v57, 2  ;;  %v4033_v42 = vrot.slane %v3993_v57, 3 }
 0x556   : > { %v3871_v9 = vpop.f32.mrf.mxu1 }
 0x557   : > { %v3977_v32 = vmax.f32 %v3969_v8, 0.0  ;;  %v3872_v28 = vadd.f32 %v3871_v9, %v3849_v60  ;;  %v4069_v56 = vsel %vm1506_vm8, %v3993_v57, %v4017_v38  ;;  %v3943_v38 = vpop.f32.mrf.mxu2 }
 0x558   : > { %v4073_v26 = vsel %vm489_vm2, %v4069_v56, %v4025_v34 }
 0x559   : > { %v4001_v48 = vrot.slane %v3977_v32, 1  ;;  %v3948_v37 = vadd.f32 %v3872_v28, %v3498_v18  ;;  %v4077_v63 = vsel %vm1515_vm9, %v4073_v26, %v4033_v42 }
 0x55b   : > { %v4009_v2 = vmax.f32 %v3977_v32, %v4001_v48  ;;  %v3966_v61 = vadd.f32 %v3958_v41, %v3948_v37 }
 0x55c   : > { %v3894_v10 = vpop.f32.mrf.mxu3 }
 0x55d   : > { %v4045_v39 = vrot.slane %v4009_v2, 4  ;;  %v3974_v35 = vmax.f32 %v3966_v61, 0.0  ;;  %v4053_v54 = vrot.slane %v4009_v2, 5  ;;  %v4061_v43 = vrot.slane %v4009_v2, 6 }
 0x55e   : > { %v3874_v21 = vpop.f32.mrf.mxu1 }
 0x55f   : > { %v3986_v16 = vrot.slane %v3974_v35, 1  ;;  %v3875_v31 = vadd.f32 %v3874_v21, %v3852_v27  ;;  %v4081_v51 = vsel %vm1140_vm7, %v4077_v63, %v4045_v39 }
 0x560   : > { %v4085_v22 = vsel %vm975_vm6, %v4081_v51, %v4053_v54 }
 0x561   : > { %v3994_v17 = vmax.f32 %v3974_v35, %v3986_v16  ;;  %v3952_v24 = vadd.f32 %v3875_v31, %v3502_v13  ;;  %v4089_v30 = vsel %vm500_vm3, %v4085_v22, %v4061_v43  ;;  %v4210_v16 = vld [vmem:[#allocation10 + $0x78] sm:$0xff]  ;;  %v4209_v31 = vld [vmem:[#allocation10 + $0x70] sm:$0xff]  ;;  %v4208_v43 = vld [vmem:[#allocation10 + $0x68] sm:$0xff] }
 0x562   : > { %v5179_v45 = vpack.i.bf16 %v4089_v30, %v6772_v40  ;;  %4394 = vmatpush.msra.mxu0 %v4210_v16  ;;  %v4271_v16 = vld [vmem:[#allocation10 + $0x260] sm:$0xff] }
 0x563   : > { %v4018_v62 = vrot.slane %v3994_v17, 1  ;;  %v3970_v33 = vadd.f32 %v3958_v41, %v3952_v24  ;;  %v4026_v53 = vrot.slane %v3994_v17, 2  ;;  %v4034_v0 = vrot.slane %v3994_v17, 3 }
 0x564   : > { %5180 = vrot.lane.b32.xlu2 %v5179_v45, %s5538_s2  ;;  %v3897_v60 = vpop.f32.mrf.mxu3  ;;  %4395 = vmatpush.msra.mxu0 %v4209_v31  ;;  %v4205_v45 = vld [vmem:[#allocation10 + $0x50] sm:$0xff]  ;;  %v4220_v31 = vld [vmem:[#allocation10 + $0xc8] sm:$0xff] }
 0x565   : > { %v3978_v19 = vmax.f32 %v3970_v33, 0.0  ;;  %v4070_v44 = vsel %vm1506_vm8, %v3994_v17, %v4018_v62  ;;  %v4204_v62 = vld [vmem:[#allocation10 + $0x48] sm:$0xff]  ;;  %v4203_v33 = vld [vmem:[#allocation10 + $0x40] sm:$0xff] }
 0x566   : > { %v4074_v36 = vsel %vm489_vm2, %v4070_v44, %v4026_v53  ;;  %4396 = vmatpush.msra.mxu0 %v4208_v43  ;;  %v4202_v53 = vld [vmem:[#allocation10 + $0x38] sm:$0xff]  ;;  %v4200_v44 = vld [vmem:[#allocation10 + $0x28] sm:$0xff] }
 0x567   : > { %v4002_v14 = vrot.slane %v3978_v19, 1  ;;  %v4078_v49 = vsel %vm1515_vm9, %v4074_v36, %v4034_v0  ;;  %v4196_v36 = vld [vmem:[#allocation10 + $0x8] sm:$0xff] }
 0x568   : > { %v4236_v43 = vld [vmem:[#allocation10 + $0x148] sm:$0xff] }
 0x569   : > { %v4010_v59 = vmax.f32 %v3978_v19, %v4002_v14  ;;  %v4201_v19 = vld [vmem:[#allocation10 + $0x30] sm:$0xff]  ;;  %v4199_v14 = vld [vmem:[#allocation10 + $0x20] sm:$0xff] }
 0x56b   : > { %v4046_v50 = vrot.slane %v4010_v59, 4  ;;  %v4054_v52 = vrot.slane %v4010_v59, 5  ;;  %v4062_v5 = vrot.slane %v4010_v59, 6  ;;  %v4198_v59 = vld [vmem:[#allocation10 + $0x18] sm:$0xff] }
 0x56d   : > { %v4082_v1 = vsel %vm1140_vm7, %v4078_v49, %v4046_v50 }
 0x56e   : > { %v3917_v20 = vpop.f32.mrf.mxu1  ;;  %v4086_v47 = vsel %vm975_vm6, %v4082_v1, %v4054_v52 }
 0x56f   : > { %v3918_v29 = vadd.f32 %v3917_v20, %v3894_v10  ;;  %v4090_v11 = vsel %vm500_vm3, %v4086_v47, %v4062_v5  ;;  %v4195_v10 = vld [vmem:[#allocation10] sm:$0xff] }
 0x570   : > { %4103 = vrot.lane.b32.xlu0 %v4090_v11, %s5538_s2 }
 0x571   : > { %v3941_v23 = vadd.f32 %v3940_v46, %v3918_v29  ;;  %v4197_v46 = vld [vmem:[#allocation10 + $0x10] sm:$0xff] }
 0x573   : > { %v3949_v57 = vadd.f32 %v3941_v23, %v6757_v55 }
 0x575   : > { %v3967_v3 = vadd.f32 %v3959_v6, %v3949_v57 }
 0x576   : > { %v3920_v8 = vpop.f32.mrf.mxu1 }
 0x577   : > { %v3975_v18 = vmax.f32 %v3967_v3, 0.0  ;;  %v3921_v9 = vadd.f32 %v3920_v8, %v3897_v60 }
 0x579   : > { %v3987_v34 = vrot.slane %v3975_v18, 1  ;;  %v3944_v32 = vadd.f32 %v3943_v38, %v3921_v9  ;;  %v4226_v9 = vld [vmem:[#allocation10 + $0xf8] sm:$0xff] }
 0x57a   : > { %4414 = vmatpush.msra.mxu2 %v4226_v9  ;;  %v4262_v9 = vld [vmem:[#allocation10 + $0x218] sm:$0xff] }
 0x57b   : > { %v3995_v28 = vmax.f32 %v3975_v18, %v3987_v34  ;;  %v3953_v41 = vadd.f32 %v3944_v32, %v6761_v4  ;;  %v4242_v34 = vld [vmem:[#allocation10 + $0x178] sm:$0xff] }
 0x57c   : > { %v4258_v32 = vld [vmem:[#allocation10 + $0x1f8] sm:$0xff]  ;;  %4434 = vmatpush.msra.mxu3 %v4242_v34  ;;  %v4211_v34 = vld [vmem:[#allocation10 + $0x80] sm:$0xff] }
 0x57d   : > { %v4019_v7 = vrot.slane %v3995_v28, 1  ;;  %v3971_v56 = vadd.f32 %v3959_v6, %v3953_v41  ;;  %v4027_v25 = vrot.slane %v3995_v28, 2  ;;  %v4035_v2 = vrot.slane %v3995_v28, 3  ;;  %v4241_v41 = vld [vmem:[#allocation10 + $0x170] sm:$0xff]  ;;  %4454 = vmatpush.msrb.mxu1 %v4258_v32  ;;  %v4227_v32 = vld [vmem:[#allocation10 + $0x100] sm:$0xff] }
 0x57e   : > { %4435 = vmatpush.msra.mxu3 %v4241_v41  ;;  %v4261_v41 = vld [vmem:[#allocation10 + $0x210] sm:$0xff] }
 0x57f   : > { %v3979_v48 = vmax.f32 %v3971_v56, 0.0  ;;  %v4071_v37 = vsel %vm1506_vm8, %v3995_v28, %v4019_v7  ;;  %v4225_v28 = vld [vmem:[#allocation10 + $0xf0] sm:$0xff] }
 0x580   : > { %v4075_v55 = vsel %vm489_vm2, %v4071_v37, %v4027_v25  ;;  %v4257_v7 = vld [vmem:[#allocation10 + $0x1f0] sm:$0xff]  ;;  %v4224_v25 = vld [vmem:[#allocation10 + $0xe8] sm:$0xff]  ;;  %v4274_v37 = vld [vmem:[#allocation10 + $0x278] sm:$0xff]  ;;  %4415 = vmatpush.msra.mxu2 %v4225_v28 }
 0x581   : > { %v4003_v15 = vrot.slane %v3979_v48, 1  ;;  %v4079_v58 = vsel %vm1515_vm9, %v4075_v55, %v4035_v2  ;;  %4455 = vmatpush.msrb.mxu1 %v4257_v7  ;;  %v4223_v2 = vld [vmem:[#allocation10 + $0xe0] sm:$0xff]  ;;  %v4290_v7 = vld [vmem:[#allocation10 + $0x2f8] sm:$0xff] }
 0x582   : > { %4416 = vmatpush.msra.mxu2 %v4224_v25  ;;  %v4243_v28 = vld [vmem:[#allocation10 + $0x180] sm:$0xff]  ;;  %v4322_v25 = vld [vmem:[#allocation10 + $0x3f8] sm:$0xff] }
 0x583   : > { %v4011_v12 = vmax.f32 %v3979_v48, %v4003_v15  ;;  %v4240_v48 = vld [vmem:[#allocation10 + $0x168] sm:$0xff] }
 0x584   : > { %v4256_v15 = vld [vmem:[#allocation10 + $0x1e8] sm:$0xff]  ;;  %4436 = vmatpush.msra.mxu3 %v4240_v48  ;;  %4417 = vmatpush.msra.mxu2 %v4223_v2 }
 0x585   : > { %v4047_v61 = vrot.slane %v4011_v12, 4  ;;  %v4055_v26 = vrot.slane %v4011_v12, 5  ;;  %v4063_v42 = vrot.slane %v4011_v12, 6  ;;  %4456 = vmatpush.msrb.mxu1 %v4256_v15  ;;  %v4260_v48 = vld [vmem:[#allocation10 + $0x208] sm:$0xff]  ;;  %v4305_v15 = vld [vmem:[#allocation10 + $0x370] sm:$0xff] }
 0x586   : > { %v4288_v2 = vld [vmem:[#allocation10 + $0x2e8] sm:$0xff] }
 0x587   : > { %v4083_v39 = vsel %vm1140_vm7, %v4079_v58, %v4047_v61  ;;  %v4239_v61 = vld [vmem:[#allocation10 + $0x160] sm:$0xff] }
 0x588   : > { %v4087_v4 = vsel %vm975_vm6, %v4083_v39, %v4055_v26  ;;  %v4255_v26 = vld [vmem:[#allocation10 + $0x1e0] sm:$0xff]  ;;  %4437 = vmatpush.msra.mxu3 %v4239_v61  ;;  %v4304_v61 = vld [vmem:[#allocation10 + $0x368] sm:$0xff] }
 0x589   : > { %v4091_v27 = vsel %vm500_vm3, %v4087_v4, %v4063_v42  ;;  %v4273_v42 = vld [vmem:[#allocation10 + $0x270] sm:$0xff]  ;;  %4457 = vmatpush.msrb.mxu1 %v4255_v26  ;;  %v4222_v4 = vld [vmem:[#allocation10 + $0xd8] sm:$0xff]  ;;  %v4320_v26 = vld [vmem:[#allocation10 + $0x3e8] sm:$0xff] }
 0x58a   : > { %4108 = vrot.lane.b32.xlu1 %v4091_v27, %s5538_s2  ;;  %4418 = vmatpush.msra.mxu2 %v4222_v4  ;;  %v4319_v4 = vld [vmem:[#allocation10 + $0x3e0] sm:$0xff] }
 0x5be   : > { %v5181_v35 = vpop.permute.xlu2 %5180 }
 0x5bf   : > { %v5183_v54 = vunpack.i.h.bf16 %v5181_v35  ;;  %v5182_v13 = vunpack.i.l.bf16 %v5181_v35  ;;  %v4254_v35 = vld [vmem:[#allocation10 + $0x1d8] sm:$0xff] }
 0x5c0   : > { %4458 = vmatpush.msrb.mxu1 %v4254_v35  ;;  %v4286_v35 = vld [vmem:[#allocation10 + $0x2d8] sm:$0xff] }
 0x5c1   : > { %v4101_v21 = vmax.f32 %v4089_v30, %v5183_v54  ;;  %v4096_v63 = vmax.f32 %v6772_v40, %v5182_v13  ;;  %v4207_v40 = vld [vmem:[#allocation10 + $0x60] sm:$0xff]  ;;  %v4206_v30 = vld [vmem:[#allocation10 + $0x58] sm:$0xff]  ;;  %v4272_v54 = vld [vmem:[#allocation10 + $0x268] sm:$0xff] }
 0x5c2   : > { %4397 = vmatpush.msra.mxu0 %v4207_v40  ;;  %v4221_v13 = vld [vmem:[#allocation10 + $0xd0] sm:$0xff]  ;;  %v4251_v40 = vld [vmem:[#allocation10 + $0x1c0] sm:$0xff] }
 0x5c3   : > { %4120 = vrot.lane.b32.xlu1 %v4101_v21, %s5541_s29  ;;  %4117 = vrot.lane.b32.xlu0 %v4101_v21, %s5539_s17  ;;  %v4237_v21 = vld [vmem:[#allocation10 + $0x150] sm:$0xff] }
 0x5c4   : > { %4113 = vrot.lane.b32.xlu2 %v4096_v63, %s5538_s2  ;;  %4398 = vmatpush.msra.mxu0 %v4206_v30  ;;  %v4269_v30 = vld [vmem:[#allocation10 + $0x250] sm:$0xff] }
 0x5c5   : > { %4419 = vmatpush.msra.mxu2 %v4221_v13  ;;  %v4318_v13 = vld [vmem:[#allocation10 + $0x3d8] sm:$0xff] }
 0x5c6   : > { %4399 = vmatpush.msra.mxu0 %v4205_v45  ;;  %v4218_v45 = vld [vmem:[#allocation10 + $0xb8] sm:$0xff] }
 0x5c7   : > { %4420 = vmatpush.msra.mxu2 %v4220_v31  ;;  %v4317_v31 = vld [vmem:[#allocation10 + $0x3d0] sm:$0xff] }
 0x5c8   : > { %4400 = vmatpush.msra.mxu0 %v4204_v62  ;;  %v4234_v62 = vld [vmem:[#allocation10 + $0x138] sm:$0xff] }
 0x5ca   : > { %4401 = vmatpush.msra.mxu0 %v4203_v33  ;;  %v4250_v33 = vld [vmem:[#allocation10 + $0x1b8] sm:$0xff] }
 0x5cc   : > { %4402 = vmatpush.msra.mxu0 %v4202_v53  ;;  %v4268_v53 = vld [vmem:[#allocation10 + $0x248] sm:$0xff] }
 0x5ce   : > { %4403 = vmatpush.msra.mxu0 %v4201_v19  ;;  %v4217_v19 = vld [vmem:[#allocation10 + $0xb0] sm:$0xff] }
 0x5d0   : > { %4404 = vmatpush.msra.mxu0 %v4200_v44  ;;  %v4233_v44 = vld [vmem:[#allocation10 + $0x130] sm:$0xff] }
 0x5d2   : > { %4405 = vmatpush.msra.mxu0 %v4199_v14  ;;  %v4249_v14 = vld [vmem:[#allocation10 + $0x1b0] sm:$0xff] }
 0x5d4   : > { %4406 = vmatpush.msra.mxu0 %v4198_v59  ;;  %v4267_v59 = vld [vmem:[#allocation10 + $0x240] sm:$0xff] }
 0x5d6   : > { %4407 = vmatpush.msra.mxu0 %v4197_v46  ;;  %v4216_v46 = vld [vmem:[#allocation10 + $0xa8] sm:$0xff] }
 0x5d8   : > { %4408 = vmatpush.msra.mxu0 %v4196_v36  ;;  %v4232_v36 = vld [vmem:[#allocation10 + $0x128] sm:$0xff] }
 0x5da   : > { %4409 = vmatpush.msra.mxu0 %v4195_v10  ;;  %v4248_v10 = vld [vmem:[#allocation10 + $0x1a8] sm:$0xff] }
 0x5dc   : > { %4474 = vmatpush.msrb.mxu0 %v4274_v37  ;;  %v4289_v37 = vld [vmem:[#allocation10 + $0x2f0] sm:$0xff] }
 0x5de   : > { %4475 = vmatpush.msrb.mxu0 %v4273_v42  ;;  %v4287_v42 = vld [vmem:[#allocation10 + $0x2e0] sm:$0xff] }
 0x5e0   : > { %4476 = vmatpush.msrb.mxu0 %v4272_v54  ;;  %v4302_v54 = vld [vmem:[#allocation10 + $0x358] sm:$0xff] }
 0x5e2   : > { %v4104_v51 = vpop.permute.xlu0 %4103  ;;  %4477 = vmatpush.msrb.mxu0 %v4271_v16  ;;  %v4301_v16 = vld [vmem:[#allocation10 + $0x350] sm:$0xff] }
 0x5e3   : > { %v4106_v22 = vmax.f32 %v4090_v11, %v4104_v51  ;;  %v4252_v51 = vld [vmem:[#allocation10 + $0x1c8] sm:$0xff] }
 0x5e5   : > { %4124 = vrot.lane.b32.xlu2 %v4106_v22, %s5538_s2 }
 0x5fc   : > { %v4109_v17 = vpop.permute.xlu1 %4108 }
 0x5fd   : > { %v4111_v24 = vmax.f32 %v4091_v27, %v4109_v17  ;;  %v4238_v27 = vld [vmem:[#allocation10 + $0x158] sm:$0xff]  ;;  %v4219_v17 = vld [vmem:[#allocation10 + $0xc0] sm:$0xff] }
 0x5fe   : > { %4438 = vmatpush.msra.mxu3 %v4238_v27  ;;  %4421 = vmatpush.msra.mxu2 %v4219_v17  ;;  %v4337_v27 = vld [vmem:[#allocation10 + $0x470] sm:$0xff]  ;;  %v4316_v17 = vld [vmem:[#allocation10 + $0x3c8] sm:$0xff] }
 0x5ff   : > { %4128 = vrot.lane.b32.xlu0 %v4111_v24, %s5539_s17  ;;  %v4235_v24 = vld [vmem:[#allocation10 + $0x140] sm:$0xff] }
 0x600   : > { %4439 = vmatpush.msra.mxu3 %v4237_v21  ;;  %4422 = vmatpush.msra.mxu2 %v4218_v45  ;;  %v4336_v21 = vld [vmem:[#allocation10 + $0x468] sm:$0xff]  ;;  %v4315_v45 = vld [vmem:[#allocation10 + $0x3c0] sm:$0xff] }
 0x602   : > { %4440 = vmatpush.msra.mxu3 %v4236_v43  ;;  %4423 = vmatpush.msra.mxu2 %v4217_v19  ;;  %v4335_v43 = vld [vmem:[#allocation10 + $0x460] sm:$0xff]  ;;  %v4314_v19 = vld [vmem:[#allocation10 + $0x3b8] sm:$0xff] }
 0x604   : > { %4441 = vmatpush.msra.mxu3 %v4235_v24  ;;  %4424 = vmatpush.msra.mxu2 %v4216_v46  ;;  %v4334_v24 = vld [vmem:[#allocation10 + $0x458] sm:$0xff]  ;;  %v4313_v46 = vld [vmem:[#allocation10 + $0x3b0] sm:$0xff] }
 0x606   : > { %4442 = vmatpush.msra.mxu3 %v4234_v62  ;;  %v4333_v62 = vld [vmem:[#allocation10 + $0x450] sm:$0xff] }
 0x608   : > { %4443 = vmatpush.msra.mxu3 %v4233_v44  ;;  %v4332_v44 = vld [vmem:[#allocation10 + $0x448] sm:$0xff] }
 0x60a   : > { %4444 = vmatpush.msra.mxu3 %v4232_v36  ;;  %v4331_v36 = vld [vmem:[#allocation10 + $0x440] sm:$0xff] }
 0x61e   : > { %v4114_v0 = vpop.permute.xlu2 %4113 }
 0x61f   : > { %v4131_v50 = vsel %vm545_vm5, %v4096_v63, %v4114_v0  ;;  %v4253_v63 = vld [vmem:[#allocation10 + $0x1d0] sm:$0xff]  ;;  %v4266_v0 = vld [vmem:[#allocation10 + $0x238] sm:$0xff] }
 0x620   : > { %4459 = vmatpush.msrb.mxu1 %v4253_v63  ;;  %v4285_v63 = vld [vmem:[#allocation10 + $0x2d0] sm:$0xff] }
 0x622   : > { %4460 = vmatpush.msrb.mxu1 %v4252_v51  ;;  %v4284_v51 = vld [vmem:[#allocation10 + $0x2c8] sm:$0xff] }
 0x624   : > { %4461 = vmatpush.msrb.mxu1 %v4251_v40  ;;  %v4283_v40 = vld [vmem:[#allocation10 + $0x2c0] sm:$0xff] }
 0x626   : > { %4462 = vmatpush.msrb.mxu1 %v4250_v33  ;;  %v4282_v33 = vld [vmem:[#allocation10 + $0x2b8] sm:$0xff] }
 0x628   : > { %4463 = vmatpush.msrb.mxu1 %v4249_v14  ;;  %v4281_v14 = vld [vmem:[#allocation10 + $0x2b0] sm:$0xff] }
 0x62a   : > { %4464 = vmatpush.msrb.mxu1 %v4248_v10  ;;  %v4280_v10 = vld [vmem:[#allocation10 + $0x2a8] sm:$0xff] }
 0x635   : > { %v4121_v52 = vpop.permute.xlu1 %4120  ;;  %v4118_v20 = vpop.permute.xlu0 %4117 }
 0x636   : > { %v4132_v49 = vsel %vm1684_vm11, %v4131_v50, %v4118_v20  ;;  %v4215_v50 = vld [vmem:[#allocation10 + $0xa0] sm:$0xff] }
 0x637   : > { %v6827_v29 = vsel %vm1690_vm14, %v4132_v49, %v4121_v52  ;;  %v4231_v52 = vld [vmem:[#allocation10 + $0x120] sm:$0xff]  ;;  %v4265_v49 = vld [vmem:[#allocation10 + $0x230] sm:$0xff]  ;;  %4425 = vmatpush.msra.mxu2 %v4215_v50  ;;  %v4312_v50 = vld [vmem:[#allocation10 + $0x3a8] sm:$0xff] }
 0x638   : > { %4410 = vmatmul.f32.vlgmr.msra.gmra.mxu0 %v6827_v29  ;;  %v4148_v5 = vrot.slane %v6827_v29, 2  ;;  %v4171_v11 = vrot.slane %v6827_v29, 5  ;;  %v4138_v38 = vrot.slane %v6827_v29, 1  ;;  %v4181_v12 = vrot.slane %v6827_v29, 6  ;;  %v4247_v20 = vld [vmem:[#allocation10 + $0x1a0] sm:$0xff]  ;;  %4445 = vmatpush.msra.mxu3 %v4231_v52  ;;  %v4330_v52 = vld [vmem:[#allocation10 + $0x438] sm:$0xff] }
 0x639   : > { %v4158_v55 = vrot.slane %v6827_v29, 3  ;;  %4465 = vmatpush.msrb.mxu1 %v4247_v20  ;;  %v4279_v20 = vld [vmem:[#allocation10 + $0x2a0] sm:$0xff] }
 0x63a   : > { %4150 = vrot.lane.b32.xlu2 %v4148_v5, %s5539_s17  ;;  %v4214_v5 = vld [vmem:[#allocation10 + $0x98] sm:$0xff] }
 0x63b   : > { %4426 = vmatpush.msra.mxu2 %v4214_v5  ;;  %v4311_v5 = vld [vmem:[#allocation10 + $0x3a0] sm:$0xff] }
 0x63f   : > { %v4125_v1 = vpop.permute.xlu2 %4124 }
 0x640   : > { %v4134_v47 = vsel %vm545_vm5, %v4106_v22, %v4125_v1  ;;  %v4270_v22 = vld [vmem:[#allocation10 + $0x258] sm:$0xff] }
 0x641   : > { %4478 = vmatpush.msrb.mxu0 %v4270_v22  ;;  %v4230_v1 = vld [vmem:[#allocation10 + $0x118] sm:$0xff]  ;;  %v4300_v22 = vld [vmem:[#allocation10 + $0x348] sm:$0xff] }
 0x642   : > { %4446 = vmatpush.msra.mxu3 %v4230_v1  ;;  %v4329_v1 = vld [vmem:[#allocation10 + $0x430] sm:$0xff] }
 0x643   : > { %4479 = vmatpush.msrb.mxu0 %v4269_v30  ;;  %v4299_v30 = vld [vmem:[#allocation10 + $0x340] sm:$0xff] }
 0x645   : > { %4480 = vmatpush.msrb.mxu0 %v4268_v53  ;;  %v4298_v53 = vld [vmem:[#allocation10 + $0x338] sm:$0xff] }
 0x647   : > { %4481 = vmatpush.msrb.mxu0 %v4267_v59  ;;  %v4297_v59 = vld [vmem:[#allocation10 + $0x330] sm:$0xff] }
 0x649   : > { %4482 = vmatpush.msrb.mxu0 %v4266_v0  ;;  %v4296_v0 = vld [vmem:[#allocation10 + $0x328] sm:$0xff] }
 0x64b   : > { %4483 = vmatpush.msrb.mxu0 %v4265_v49  ;;  %v4295_v49 = vld [vmem:[#allocation10 + $0x320] sm:$0xff] }
 0x671   : > { %v4129_v23 = vpop.permute.xlu0 %4128 }
 0x672   : > { %v6834_v6 = vsel %vm1684_vm11, %v4134_v47, %v4129_v23  ;;  %v4246_v47 = vld [vmem:[#allocation10 + $0x198] sm:$0xff]  ;;  %v4264_v23 = vld [vmem:[#allocation10 + $0x228] sm:$0xff] }
 0x673   : > { %v4149_v57 = vrot.slane %v6834_v6, 2  ;;  %v4172_v3 = vrot.slane %v6834_v6, 5  ;;  %v4139_v60 = vrot.slane %v6834_v6, 1  ;;  %v4159_v56 = vrot.slane %v6834_v6, 3  ;;  %4466 = vmatpush.msrb.mxu1 %v4246_v47  ;;  %4484 = vmatpush.msrb.mxu0 %v4264_v23  ;;  %v4278_v47 = vld [vmem:[#allocation10 + $0x298] sm:$0xff] }
 0x674   : > { %v4182_v39 = vrot.slane %v6834_v6, 6  ;;  %v4294_v23 = vld [vmem:[#allocation10 + $0x318] sm:$0xff] }
 0x675   : > { %4152 = vrot.lane.b32.xlu0 %v4149_v57, %s5539_s17  ;;  %v5194_v8 = vpack.i.bf16 %v4172_v3, %v4171_v11  ;;  %v5184_v18 = vpack.i.bf16 %v4139_v60, %v4138_v38  ;;  %v5189_v58 = vpack.i.bf16 %v4159_v56, %v4158_v55  ;;  %v4213_v11 = vld [vmem:[#allocation10 + $0x90] sm:$0xff]  ;;  %v4263_v38 = vld [vmem:[#allocation10 + $0x220] sm:$0xff]  ;;  %v4212_v60 = vld [vmem:[#allocation10 + $0x88] sm:$0xff] }
 0x676   : > { %v4229_v57 = vld [vmem:[#allocation10 + $0x110] sm:$0xff]  ;;  %4427 = vmatpush.msra.mxu2 %v4213_v11  ;;  %4485 = vmatpush.msrb.mxu0 %v4263_v38  ;;  %v4306_v56 = vld [vmem:[#allocation10 + $0x378] sm:$0xff]  ;;  %v4259_v55 = vld [vmem:[#allocation10 + $0x200] sm:$0xff] }
 0x677   : > { %5195 = vrot.lane.b32.xlu2 %v5194_v8, %s5538_s2  ;;  %5185 = vrot.lane.b32.xlu1 %v5184_v18, %s5538_s2  ;;  %v4245_v3 = vld [vmem:[#allocation10 + $0x190] sm:$0xff]  ;;  %v4228_v8 = vld [vmem:[#allocation10 + $0x108] sm:$0xff]  ;;  %v4310_v11 = vld [vmem:[#allocation10 + $0x398] sm:$0xff] }
 0x678   : > { %4447 = vmatpush.msra.mxu3 %v4229_v57  ;;  %v4244_v18 = vld [vmem:[#allocation10 + $0x188] sm:$0xff]  ;;  %4467 = vmatpush.msrb.mxu1 %v4245_v3  ;;  %v4277_v3 = vld [vmem:[#allocation10 + $0x290] sm:$0xff] }
 0x679   : > { %4428 = vmatpush.msra.mxu2 %v4212_v60  ;;  %4486 = vmatpush.msrb.mxu0 %v4262_v9  ;;  %v4328_v57 = vld [vmem:[#allocation10 + $0x428] sm:$0xff]  ;;  %v4293_v38 = vld [vmem:[#allocation10 + $0x310] sm:$0xff] }
 0x67a   : > { %4448 = vmatpush.msra.mxu3 %v4228_v8  ;;  %4468 = vmatpush.msrb.mxu1 %v4244_v18  ;;  %v4309_v60 = vld [vmem:[#allocation10 + $0x390] sm:$0xff]  ;;  %v4327_v8 = vld [vmem:[#allocation10 + $0x420] sm:$0xff]  ;;  %v4276_v18 = vld [vmem:[#allocation10 + $0x288] sm:$0xff] }
 0x67b   : > { %4429 = vmatpush.msra.mxu2 %v4211_v34  ;;  %4487 = vmatpush.msrb.mxu0 %v4261_v41  ;;  %v4292_v9 = vld [vmem:[#allocation10 + $0x308] sm:$0xff]  ;;  %v4291_v41 = vld [vmem:[#allocation10 + $0x300] sm:$0xff] }
 0x67c   : > { %4449 = vmatpush.msra.mxu3 %v4227_v32  ;;  %4469 = vmatpush.msrb.mxu1 %v4243_v28  ;;  %v4308_v34 = vld [vmem:[#allocation10 + $0x388] sm:$0xff]  ;;  %v4326_v32 = vld [vmem:[#allocation10 + $0x418] sm:$0xff]  ;;  %v4275_v28 = vld [vmem:[#allocation10 + $0x280] sm:$0xff] }
 0x67d   : > { %4183 = vrot.lane.b32.xlu0 %v4181_v12, %s5539_s17  ;;  %4494 = vmatpush.msrb.mxu2 %v4290_v7  ;;  %v4321_v12 = vld [vmem:[#allocation10 + $0x3f0] sm:$0xff]  ;;  %v4307_v7 = vld [vmem:[#allocation10 + $0x380] sm:$0xff] }
 0x67e   : > { %4514 = vmatpush.msrb.mxu3 %v4306_v56  ;;  %4534 = vmatpush.msra.mxu1 %v4322_v25  ;;  %v4325_v56 = vld [vmem:[#allocation10 + $0x410] sm:$0xff]  ;;  %v4324_v25 = vld [vmem:[#allocation10 + $0x408] sm:$0xff] }
 0x67f   : > { %5190 = vrot.lane.b32.xlu1 %v5189_v58, %s5541_s29  ;;  %4488 = vmatpush.msrb.mxu0 %v4260_v48  ;;  %v4338_v58 = vld [vmem:[#allocation10 + $0x478] sm:$0xff]  ;;  %v4323_v48 = vld [vmem:[#allocation10 + $0x400] sm:$0xff] }
 0x680   : > { %4495 = vmatpush.msrb.mxu2 %v4289_v37  ;;  %4515 = vmatpush.msrb.mxu3 %v4305_v15 }
 0x681   : > { %4535 = vmatpush.msra.mxu1 %v4321_v12  ;;  %4489 = vmatpush.msrb.mxu0 %v4259_v55  ;;  %v4390_v12 = vld [vmem:[#allocation10 + $0x618] sm:$0xff] }
 0x682   : > { %4496 = vmatpush.msrb.mxu2 %v4288_v2  ;;  %4516 = vmatpush.msrb.mxu3 %v4304_v61  ;;  %v4389_v61 = vld [vmem:[#allocation10 + $0x610] sm:$0xff] }
 0x683   : > { %4536 = vmatpush.msra.mxu1 %v4320_v26  ;;  %4554 = vmatpush.msra.mxu0 %v4338_v58 }
 0x684   : > { %4497 = vmatpush.msrb.mxu2 %v4287_v42 }
 0x685   : > { %4537 = vmatpush.msra.mxu1 %v4319_v4  ;;  %4555 = vmatpush.msra.mxu0 %v4337_v27 }
 0x686   : > { %4498 = vmatpush.msrb.mxu2 %v4286_v35 }
 0x687   : > { %4185 = vrot.lane.b32.xlu1 %v4182_v39, %s5539_s17  ;;  %v4303_v39 = vld [vmem:[#allocation10 + $0x360] sm:$0xff]  ;;  %4538 = vmatpush.msra.mxu1 %v4318_v13  ;;  %v4386_v13 = vld [vmem:[#allocation10 + $0x5f8] sm:$0xff] }
 0x688   : > { %4517 = vmatpush.msrb.mxu3 %v4303_v39  ;;  %4556 = vmatpush.msra.mxu0 %v4336_v21  ;;  %v4354_v39 = vld [vmem:[#allocation10 + $0x4f8] sm:$0xff] }
 0x689   : > { %4499 = vmatpush.msrb.mxu2 %v4285_v63  ;;  %4539 = vmatpush.msra.mxu1 %v4317_v31  ;;  %v4353_v63 = vld [vmem:[#allocation10 + $0x4f0] sm:$0xff] }
 0x68a   : > { %4518 = vmatpush.msrb.mxu3 %v4302_v54  ;;  %4557 = vmatpush.msra.mxu0 %v4335_v43  ;;  %v4370_v54 = vld [vmem:[#allocation10 + $0x578] sm:$0xff]  ;;  %v4369_v31 = vld [vmem:[#allocation10 + $0x570] sm:$0xff] }
 0x68b   : > { %4500 = vmatpush.msrb.mxu2 %v4284_v51  ;;  %4540 = vmatpush.msra.mxu1 %v4316_v17  ;;  %v4385_v43 = vld [vmem:[#allocation10 + $0x5f0] sm:$0xff]  ;;  %v4168_v51 = vrot.slane %v6834_v6, 4  ;;  %v4368_v17 = vld [vmem:[#allocation10 + $0x568] sm:$0xff] }
 0x68c   : > { %4519 = vmatpush.msrb.mxu3 %v4301_v16  ;;  %4558 = vmatpush.msra.mxu0 %v4334_v24  ;;  %v4388_v16 = vld [vmem:[#allocation10 + $0x608] sm:$0xff] }
 0x68d   : > { %4501 = vmatpush.msrb.mxu2 %v4283_v40  ;;  %4541 = vmatpush.msra.mxu1 %v4315_v45  ;;  %v4384_v24 = vld [vmem:[#allocation10 + $0x5e8] sm:$0xff]  ;;  %v4351_v45 = vld [vmem:[#allocation10 + $0x4e0] sm:$0xff] }
 0x68e   : > { %4520 = vmatpush.msrb.mxu3 %v4300_v22  ;;  %4559 = vmatpush.msra.mxu0 %v4333_v62  ;;  %v4352_v22 = vld [vmem:[#allocation10 + $0x4e8] sm:$0xff]  ;;  %v4387_v62 = vld [vmem:[#allocation10 + $0x600] sm:$0xff] }
 0x68f   : > { %4502 = vmatpush.msrb.mxu2 %v4282_v33  ;;  %4542 = vmatpush.msra.mxu1 %v4314_v19  ;;  %v4383_v19 = vld [vmem:[#allocation10 + $0x5e0] sm:$0xff] }
 0x690   : > { %4521 = vmatpush.msrb.mxu3 %v4299_v30  ;;  %4560 = vmatpush.msra.mxu0 %v4332_v44 }
 0x691   : > { %4503 = vmatpush.msrb.mxu2 %v4281_v14  ;;  %4543 = vmatpush.msra.mxu1 %v4313_v46  ;;  %v4167_v46 = vrot.slane %v6827_v29, 4  ;;  %v4347_v29 = vld [vmem:[#allocation10 + $0x4c0] sm:$0xff] }
 0x692   : > { %4522 = vmatpush.msrb.mxu3 %v4298_v53  ;;  %4561 = vmatpush.msra.mxu0 %v4331_v36  ;;  %v4366_v36 = vld [vmem:[#allocation10 + $0x558] sm:$0xff] }
 0x693   : > { %4504 = vmatpush.msrb.mxu2 %v4280_v10  ;;  %4544 = vmatpush.msra.mxu1 %v4312_v50  ;;  %v4382_v10 = vld [vmem:[#allocation10 + $0x5d8] sm:$0xff]  ;;  %v4365_v50 = vld [vmem:[#allocation10 + $0x550] sm:$0xff] }
 0x694   : > { %4523 = vmatpush.msrb.mxu3 %v4297_v59  ;;  %4562 = vmatpush.msra.mxu0 %v4330_v52  ;;  %v4151_v37 = vpop.permute.xlu2 %4150  ;;  %v4350_v59 = vld [vmem:[#allocation10 + $0x4d8] sm:$0xff]  ;;  %v4381_v52 = vld [vmem:[#allocation10 + $0x5d0] sm:$0xff] }
 0x695   : > { %4505 = vmatpush.msrb.mxu2 %v4279_v20  ;;  %4545 = vmatpush.msra.mxu1 %v4311_v5  ;;  %v4348_v20 = vld [vmem:[#allocation10 + $0x4c8] sm:$0xff] }
 0x696   : > { %4524 = vmatpush.msrb.mxu3 %v4296_v0  ;;  %4563 = vmatpush.msra.mxu0 %v4329_v1  ;;  %v4349_v0 = vld [vmem:[#allocation10 + $0x4d0] sm:$0xff]  ;;  %v4364_v5 = vld [vmem:[#allocation10 + $0x548] sm:$0xff] }
 0x697   : > { %4506 = vmatpush.msrb.mxu2 %v4278_v47  ;;  %4546 = vmatpush.msra.mxu1 %v4310_v11  ;;  %v4380_v1 = vld [vmem:[#allocation10 + $0x5c8] sm:$0xff]  ;;  %v4363_v47 = vld [vmem:[#allocation10 + $0x540] sm:$0xff]  ;;  %v4346_v11 = vld [vmem:[#allocation10 + $0x4b8] sm:$0xff] }
 0x698   : > { %4525 = vmatpush.msrb.mxu3 %v4295_v49  ;;  %4564 = vmatpush.msra.mxu0 %v4328_v57  ;;  %v4362_v57 = vld [vmem:[#allocation10 + $0x538] sm:$0xff] }
 0x699   : > { %4507 = vmatpush.msrb.mxu2 %v4277_v3  ;;  %4547 = vmatpush.msra.mxu1 %v4309_v60  ;;  %v4378_v3 = vld [vmem:[#allocation10 + $0x5b8] sm:$0xff]  ;;  %v4361_v60 = vld [vmem:[#allocation10 + $0x530] sm:$0xff] }
 0x69a   : > { %4526 = vmatpush.msrb.mxu3 %v4294_v23  ;;  %4565 = vmatpush.msra.mxu0 %v4327_v8  ;;  %v4379_v23 = vld [vmem:[#allocation10 + $0x5c0] sm:$0xff]  ;;  %v4377_v8 = vld [vmem:[#allocation10 + $0x5b0] sm:$0xff] }
 0x69b   : > { %4508 = vmatpush.msrb.mxu2 %v4276_v18  ;;  %4548 = vmatpush.msra.mxu1 %v4308_v34  ;;  %v4344_v18 = vld [vmem:[#allocation10 + $0x4a8] sm:$0xff] }
 0x69c   : > { %4527 = vmatpush.msrb.mxu3 %v4293_v38  ;;  %4566 = vmatpush.msra.mxu0 %v4326_v32  ;;  %v4345_v38 = vld [vmem:[#allocation10 + $0x4b0] sm:$0xff]  ;;  %v4376_v34 = vld [vmem:[#allocation10 + $0x5a8] sm:$0xff]  ;;  %v4343_v32 = vld [vmem:[#allocation10 + $0x4a0] sm:$0xff] }
 0x69d   : > { %4509 = vmatpush.msrb.mxu2 %v4275_v28  ;;  %4549 = vmatpush.msra.mxu1 %v4307_v7  ;;  %v4359_v28 = vld [vmem:[#allocation10 + $0x520] sm:$0xff]  ;;  %v4342_v7 = vld [vmem:[#allocation10 + $0x498] sm:$0xff] }
 0x69e   : > { %4528 = vmatpush.msrb.mxu3 %v4292_v9  ;;  %4567 = vmatpush.msra.mxu0 %v4325_v56  ;;  %v4360_v9 = vld [vmem:[#allocation10 + $0x528] sm:$0xff]  ;;  %v4358_v56 = vld [vmem:[#allocation10 + $0x518] sm:$0xff] }
 0x6a0   : > { %4529 = vmatpush.msrb.mxu3 %v4291_v41  ;;  %4568 = vmatpush.msra.mxu0 %v4324_v25  ;;  %v4375_v41 = vld [vmem:[#allocation10 + $0x5a0] sm:$0xff]  ;;  %v4374_v25 = vld [vmem:[#allocation10 + $0x598] sm:$0xff] }
 0x6a2   : > { %4569 = vmatpush.msra.mxu0 %v4323_v48  ;;  %v4341_v48 = vld [vmem:[#allocation10 + $0x490] sm:$0xff] }
 0x6d1   : > { %v6852_v26 = vpop.permute.xlu2 %5195 }
 0x6d2   : > { %v5197_v21 = vunpack.i.l.bf16 %v6852_v26 }
 0x6d4   : > { %v4193_v40 = vsel %vm1690_vm14, %v4168_v51, %v5197_v21  ;;  %v4663_v51 = vld [vmem:[#allocation13 + $0x40] sm:$0xff] }
 0x6e7   : > { %v4153_v15 = vpop.permute.xlu0 %4152 }
 0x6e8   : > { %v4154_v55 = vsel %vm1684_vm11, %v4151_v37, %v4153_v15 }
 0x6e9   : > { %v5186_v2 = vpop.permute.xlu1 %5185  ;;  %4490 = vmatmul.f32.vlgmr.msrb.gmra.mxu0 %v4154_v55  ;;  %v4356_v55 = vld [vmem:[#allocation10 + $0x508] sm:$0xff] }
 0x6ea   : > { %v5188_v58 = vunpack.i.h.bf16 %v5186_v2  ;;  %v5187_v42 = vunpack.i.l.bf16 %v5186_v2  ;;  %4646 = vmatpush.msrb.mxu0 %v4390_v12  ;;  %v4340_v12 = vld [vmem:[#allocation10 + $0x488] sm:$0xff] }
 0x6eb   : > { %v4372_v2 = vld [vmem:[#allocation10 + $0x588] sm:$0xff] }
 0x6ec   : > { %v4190_v4 = vsel %vm1690_vm14, %v6834_v6, %v5187_v42  ;;  %v4144_v27 = vsel %vm1690_vm14, %v5187_v42, %v5188_v58  ;;  %v4191_v35 = vsel %vm1684_vm11, %v5188_v58, %v4151_v37  ;;  %4647 = vmatpush.msrb.mxu0 %v4389_v61  ;;  %v4367_v6 = vld [vmem:[#allocation10 + $0x560] sm:$0xff]  ;;  %v4357_v37 = vld [vmem:[#allocation10 + $0x510] sm:$0xff]  ;;  %v5198_v61 = vunpack.i.h.bf16 %v6852_v26 }
 0x6ed   : > { %4430 = vmatmul.f32.vlgmr.msra.gmra.mxu2 %v4190_v4  ;;  %4450 = vmatmul.f32.vlgmr.msra.gmra.mxu3 %v4144_v27  ;;  %v4339_v58 = vld [vmem:[#allocation10 + $0x480] sm:$0xff] }
 0x6ee   : > { %4470 = vmatmul.f32.vlgmr.msrb.gmra.mxu1 %v4191_v35  ;;  %4574 = vmatpush.msra.mxu2 %v4354_v39  ;;  %v4355_v39 = vld [vmem:[#allocation10 + $0x500] sm:$0xff]  ;;  %v4177_v27 = vsel %vm1690_vm14, %v5197_v21, %v5198_v61  ;;  %v4665_v21 = vld [vmem:[#allocation13 + $0x50] sm:$0xff] }
 0x6ef   : > { %4594 = vmatpush.msra.mxu3 %v4370_v54  ;;  %4614 = vmatpush.msrb.mxu1 %v4386_v13  ;;  %v4184_v42 = vpop.permute.xlu0 %4183  ;;  %v4371_v4 = vld [vmem:[#allocation10 + $0x580] sm:$0xff] }
 0x6f0   : > { %4575 = vmatpush.msra.mxu2 %v4353_v63  ;;  %4648 = vmatpush.msrb.mxu0 %v4388_v16  ;;  %v4194_v35 = vsel %vm1684_vm11, %v5198_v61, %v4184_v42  ;;  %v4670_v13 = vld [vmem:[#allocation13 + $0x78] sm:$0xff]  ;;  %v4669_v63 = vld [vmem:[#allocation13 + $0x70] sm:$0xff]  ;;  %v4668_v16 = vld [vmem:[#allocation13 + $0x68] sm:$0xff] }
 0x6f1   : > { %4595 = vmatpush.msra.mxu3 %v4369_v31  ;;  %4615 = vmatpush.msrb.mxu1 %v4385_v43  ;;  %v5191_v30 = vpop.permute.xlu1 %5190  ;;  %v4667_v31 = vld [vmem:[#allocation13 + $0x60] sm:$0xff]  ;;  %v4666_v26 = vld [vmem:[#allocation13 + $0x58] sm:$0xff]  ;;  %v4664_v43 = vld [vmem:[#allocation13 + $0x48] sm:$0xff] }
 0x6f2   : > { %v5193_v33 = vunpack.i.h.bf16 %v5191_v30  ;;  %v5192_v53 = vunpack.i.l.bf16 %v5191_v30  ;;  %4570 = vmatmul.f32.vlgmr.msra.gmra.mxu0 %v4193_v40  ;;  %4576 = vmatpush.msra.mxu2 %v4352_v22  ;;  %v4662_v22 = vld [vmem:[#allocation13 + $0x38] sm:$0xff]  ;;  %v4411_v40 = vpop.f32.mrf.mxu0 }
 0x6f3   : > { %4596 = vmatpush.msra.mxu3 %v4368_v17  ;;  %4616 = vmatpush.msrb.mxu1 %v4384_v24  ;;  %v4661_v17 = vld [vmem:[#allocation13 + $0x30] sm:$0xff]  ;;  %v4391_v24 = vld [vmem:[#allocation11] sm:$0x1] }
 0x6f4   : > { %4577 = vmatpush.msra.mxu2 %v4351_v45  ;;  %v4192_v44 = vsel %vm545_vm5, %v4153_v15, %v5192_v53  ;;  %v4164_v14 = vsel %vm545_vm5, %v5192_v53, %v5193_v33  ;;  %4649 = vmatpush.msrb.mxu0 %v4387_v62  ;;  %v4373_v15 = vld [vmem:[#allocation10 + $0x590] sm:$0xff]  ;;  %v4412_v62 = vadd.f32 %v4411_v40, %v4391_v24  ;;  %v4659_v33 = vld [vmem:[#allocation13 + $0x20] sm:$0xff] }
 0x6f5   : > { %4597 = vmatpush.msra.mxu3 %v4367_v6  ;;  %4617 = vmatpush.msrb.mxu1 %v4383_v19  ;;  %v4660_v45 = vld [vmem:[#allocation13 + $0x28] sm:$0xff]  ;;  %v4658_v6 = vld [vmem:[#allocation13 + $0x18] sm:$0xff] }
 0x6f6   : > { %4510 = vmatmul.f32.vlgmr.msrb.gmra.mxu2 %v4192_v44  ;;  %4530 = vmatmul.f32.vlgmr.msrb.gmra.mxu3 %v4164_v14  ;;  %v4657_v44 = vld [vmem:[#allocation13 + $0x10] sm:$0xff] }
 0x6f7   : > { %4550 = vmatmul.f32.vlgmr.msra.gmra.mxu1 %v4167_v46  ;;  %4578 = vmatpush.msra.mxu2 %v4350_v59  ;;  %v4656_v59 = vld [vmem:[#allocation13 + $0x8] sm:$0xff]  ;;  %v4655_v46 = vld [vmem:[#allocation13] sm:$0xff] }
 0x6f8   : > { %4598 = vmatpush.msra.mxu3 %v4366_v36  ;;  %4618 = vmatpush.msrb.mxu1 %v4382_v10 }
 0x6f9   : > { %4579 = vmatpush.msra.mxu2 %v4349_v0  ;;  %v6866_v49 = vpop.permute.xlu1 %4185 }
 0x6fa   : > { %4599 = vmatpush.msra.mxu3 %v4365_v50  ;;  %4619 = vmatpush.msrb.mxu1 %v4381_v52  ;;  %v4187_v54 = vsel %vm1684_vm11, %v4184_v42, %v6866_v49 }
 0x6fb   : > { %4580 = vmatpush.msra.mxu2 %v4348_v20  ;;  %4998 = vmatmul.msk.f32.vlgmr.msrb.gmra.mxu0 %vm545_vm5, %v6866_v49 }
 0x6fc   : > { %4600 = vmatpush.msra.mxu3 %v4364_v5  ;;  %4620 = vmatpush.msrb.mxu1 %v4380_v1 }
 0x6fd   : > { %4581 = vmatpush.msra.mxu2 %v4347_v29 }
 0x6fe   : > { %4601 = vmatpush.msra.mxu3 %v4363_v47  ;;  %4621 = vmatpush.msrb.mxu1 %v4379_v23 }
 0x6ff   : > { %4582 = vmatpush.msra.mxu2 %v4346_v11 }
 0x700   : > { %4602 = vmatpush.msra.mxu3 %v4362_v57  ;;  %4622 = vmatpush.msrb.mxu1 %v4378_v3 }
 0x701   : > { %4583 = vmatpush.msra.mxu2 %v4345_v38 }
 0x702   : > { %4603 = vmatpush.msra.mxu3 %v4361_v60  ;;  %4623 = vmatpush.msrb.mxu1 %v4377_v8 }
 0x703   : > { %4584 = vmatpush.msra.mxu2 %v4344_v18 }
 0x704   : > { %4604 = vmatpush.msra.mxu3 %v4360_v9  ;;  %4624 = vmatpush.msrb.mxu1 %v4376_v34 }
 0x705   : > { %4585 = vmatpush.msra.mxu2 %v4343_v32  ;;  %v4671_v32 = vld [vmem:[#allocation14] sm:$0x1] }
 0x706   : > { %4605 = vmatpush.msra.mxu3 %v4359_v28  ;;  %4625 = vmatpush.msrb.mxu1 %v4375_v41 }
 0x707   : > { %4586 = vmatpush.msra.mxu2 %v4342_v7 }
 0x708   : > { %4606 = vmatpush.msra.mxu3 %v4358_v56  ;;  %4626 = vmatpush.msrb.mxu1 %v4374_v25 }
 0x709   : > { %4587 = vmatpush.msra.mxu2 %v4341_v48 }
 0x70a   : > { %4607 = vmatpush.msra.mxu3 %v4357_v37  ;;  %4627 = vmatpush.msrb.mxu1 %v4373_v15 }
 0x70b   : > { %4588 = vmatpush.msra.mxu2 %v4340_v12 }
 0x70c   : > { %4608 = vmatpush.msra.mxu3 %v4356_v55  ;;  %4628 = vmatpush.msrb.mxu1 %v4372_v2 }
 0x70d   : > { %4589 = vmatpush.msra.mxu2 %v4339_v58 }
 0x70e   : > { %4609 = vmatpush.msra.mxu3 %v4355_v39  ;;  %4629 = vmatpush.msrb.mxu1 %v4371_v4 }
 0x70f   : > { %4590 = vmatmul.f32.vlgmr.msra.gmra.mxu2 %v4177_v27  ;;  %4610 = vmatmul.f32.vlgmr.msra.gmra.mxu3 %v4194_v35 }
 0x710   : > { %4630 = vmatmul.f32.vlgmr.msrb.gmra.mxu1 %v4187_v54  ;;  %4672 = vmatpush.msrb.mxu2 %v4670_v13 }
 0x712   : > { %4673 = vmatpush.msrb.mxu2 %v4669_v63 }
 0x714   : > { %4674 = vmatpush.msrb.mxu2 %v4668_v16 }
 0x716   : > { %4675 = vmatpush.msrb.mxu2 %v4667_v31 }
 0x718   : > { %4676 = vmatpush.msrb.mxu2 %v4666_v26 }
 0x71a   : > { %4677 = vmatpush.msrb.mxu2 %v4665_v21 }
 0x71c   : > { %4678 = vmatpush.msrb.mxu2 %v4664_v43 }
 0x71e   : > { %4679 = vmatpush.msrb.mxu2 %v4663_v51 }
 0x720   : > { %4680 = vmatpush.msrb.mxu2 %v4662_v22 }
 0x722   : > { %4681 = vmatpush.msrb.mxu2 %v4661_v17 }
 0x724   : > { %4682 = vmatpush.msrb.mxu2 %v4660_v45 }
 0x726   : > { %4683 = vmatpush.msrb.mxu2 %v4659_v33 }
 0x728   : > { %4684 = vmatpush.msrb.mxu2 %v4658_v6 }
 0x72a   : > { %4685 = vmatpush.msrb.mxu2 %v4657_v44 }
 0x72c   : > { %4686 = vmatpush.msrb.mxu2 %v4656_v59 }
 0x72e   : > { %4687 = vmatpush.msrb.mxu2 %v4655_v46 }
 0x766   : > { %v4491_v0 = vpop.f32.mrf.mxu0 }
 0x76b   : > { %v4471_v36 = vpop.f32.mrf.mxu1 }
 0x76f   : > { %v4571_v47 = vpop.f32.mrf.mxu0 }
 0x770   : > { %v4431_v30 = vpop.f32.mrf.mxu2  ;;  %v4451_v19 = vpop.f32.mrf.mxu3 }
 0x771   : > { %v4432_v53 = vadd.f32 %v4431_v30, %v4412_v62 }
 0x773   : > { %v4452_v14 = vadd.f32 %v4451_v19, %v4432_v53 }
 0x774   : > { %v4551_v1 = vpop.f32.mrf.mxu1 }
 0x775   : > { %v4472_v10 = vadd.f32 %v4471_v36, %v4452_v14 }
 0x777   : > { %v4492_v50 = vadd.f32 %v4491_v0, %v4472_v10 }
 0x778   : > { %v4651_v18 = vpop.f32.mrf.mxu0 }
 0x779   : > { %v4511_v52 = vpop.f32.mrf.mxu2  ;;  %v4531_v49 = vpop.f32.mrf.mxu3 }
 0x77a   : > { %v4512_v20 = vadd.f32 %v4511_v52, %v4492_v50 }
 0x77c   : > { %v4532_v5 = vadd.f32 %v4531_v49, %v4512_v20 }
 0x77e   : > { %v4552_v29 = vadd.f32 %v4551_v1, %v4532_v5 }
 0x780   : > { %v4572_v23 = vadd.f32 %v4571_v47, %v4552_v29 }
 0x78d   : > { %v4631_v60 = vpop.f32.mrf.mxu1 }
 0x792   : > { %v4591_v11 = vpop.f32.mrf.mxu2  ;;  %v4611_v3 = vpop.f32.mrf.mxu3 }
 0x793   : > { %v4592_v57 = vadd.f32 %v4591_v11, %v4572_v23 }
 0x795   : > { %v4612_v38 = vadd.f32 %v4611_v3, %v4592_v57 }
 0x797   : > { %v4632_v8 = vadd.f32 %v4631_v60, %v4612_v38 }
 0x799   : > { %v4652_v9 = vadd.f32 %v4651_v18, %v4632_v8 }
 0x79b   : > { %v4654_v34 = vmax.f32 %v4652_v9, 0.0 }
 0x79d   : > { %4688 = vmatmul.f32.vlgmr.msrb.gmra.mxu2 %v4654_v34 }
 0x820   : > { %v4689_v28 = vpop.f32.mrf.mxu2 }
 0x821   : > { %v4690_v41 = vadd.f32 %v4689_v28, %v4671_v32 }
 0x823   : > { %4692 = vst [vmem:[%s449_s25] sm:$0x1] %v4690_v41 }
 0x824   : > { %5466 = shalt.err (!%p5463_p8)
}
 0x825   : > { %5038 = dma.vmem_to_hbm [thread:$0]  (%p5632_p5), %s4705_s3, 16, %s4707_s5, %s4694_s21  }
 0x826 PF: > { %p5085_p9 = scmp.ge.s32.totalorder %s5521_s12, 2  ;;  %s4718_s17 = sand.u32 1, %s5509_s30  }
 0x827   : > { %s4719_s26 = scalar_lea.sflag [#allocation4], %s4718_s17 }
 0x828   : > { %p5066_p10 = pnand %p5085_p9, %p5636_p6 }
 0x82a   : > { %p5067_p11 = pneg %p5066_p10 }
 0x82c   : > { %5504 = dma.done.wait (%p5067_p11), %s4719_s26, 16  }
 0x82d   : > { %5506 = vsyncadd (%p5067_p11), %s4719_s26, 4294967280  ;;  %s6968_s29 = sld [smem:[#allocation23_spill]]  ;;  %p24_p12 = scmp.ge.s32.totalorder %s5619_s15, 4  }
 0x82e   : > { %s6969_s30 = smov %s5513_s10  ;;  %s6970_s10 = smov %s5517_s11 }
 0x82f   : > { %s6972_s12 = smov %s5619_s15  ;;  %26 = sbr.rel (!%p24_p12) target bundleno = 14 (0xe), region = 132 }
 0x833   : > { %s6971_s11 = smov %s6968_s29 }
 0x834   :  { %4724 = vsyncpa [#allocation3], 1 }
 0x835   :  { %4726 = vsyncpa [#allocation3 + $0x1], 1 }
 0x836   :  { %4727 = vsyncpa [#allocation6], 1 }
 0x837   :  { %4728 = vsyncpa [#allocation9], 1 }
 0x838   :  { %4729 = vsyncpa [#allocation12], 1 }
 0x839   :  { %4730 = vsyncpa [#allocation15], 1 }
 0x83a   :  { %4731 = vsyncpa [#allocation4], 1 }
 0x83b   :  { %4733 = vsyncpa [#allocation4 + $0x1], 1 }

</bundles_post_ra>
